<compile_context>
chip_gen: v6e
topology: v6e:2x2x1
jax: 0.10.0
libtpu: 0.0.40
codegen_flags: <defaults>
</compile_context>

<pallas_src>
import functools

import numpy as np
import jax
import jax.numpy as jnp
from jax import lax
from jax.experimental import pallas as pl
from jax.experimental.pallas import tpu as pltpu


# ----------------------------------------------------------------------------
# Kernel 1: ConvTranspose2d(k=4, s=2, p=1) rows + fused BatchNorm partial stats
# ----------------------------------------------------------------------------
def _deconv_stats_kernel(x_ref, w_ref, y_ref, s_ref, rhs_ref, acc_ref):
    # x_ref   : (1, H+2, Cin, W+2)      zero-padded input (rows major, channels inside)
    # w_ref   : (4*Cout, 9*Cin)         parity-stacked, tap-merged (zero padded) weights
    # y_ref   : (2, 1, 1, Cout, th*OW)  conv rows, row-parity major, lanes = q-major * OW
    # s_ref   : (1, 1, Cout, 2)         per-(batch,row-tile) channel [sum, sum_sq]
    # rhs_ref : (9*Cin, Wd)   VMEM      shared matmul RHS (all 3x3 shifted input slabs)
    # acc_ref : (4*Cout, th*Wd) VMEM    per-parity conv rows before the width interleave
    Cin = x_ref.shape[2]
    Wd = x_ref.shape[3] - 2
    OW = 2 * Wd
    Cout = y_ref.shape[3]
    th = y_ref.shape[4] // OW

    base = pl.program_id(1) * th
    wbig = w_ref[...]                                   # (4*Cout, 9*Cin)

    # Exact 0/1 lane-scatter matrices for the width-parity interleave
    # (flat index m = 2*k + c since OW == 2*Wd).  Built once on the VPU,
    # applied on the MXU -> no unsupported reshape/interleave needed.
    k_idx = lax.broadcasted_iota(jnp.int32, (th * Wd, th * OW), 0)
    m_idx = lax.broadcasted_iota(jnp.int32, (th * Wd, th * OW), 1)
    g_even = (m_idx == 2 * k_idx).astype(jnp.float32)
    g_odd = (m_idx == 2 * k_idx + 1).astype(jnp.float32)

    # One MXU push per input row: all 4 output parities stacked along M,
    # all taps merged along K (unused taps are zero weight columns).
    # NOTE: conv bias is dropped here - it is an exact forward no-op through a
    # training-mode BatchNorm (mean shifts by the same constant, variance unchanged).
    for q in range(th):
        rows = [x_ref[0, base + q + dh] for dh in range(3)]          # each (Cin, W+2)
        for rr in range(3):
            for cc in range(3):
                off = (rr * 3 + cc) * Cin
                rhs_ref[off:off + Cin, :] = rows[rr][:, cc:cc + Wd]
        acc_ref[:, q * Wd:(q + 1) * Wd] = jnp.dot(
            wbig, rhs_ref[...], preferred_element_type=jnp.float32)   # (4*Cout, Wd)

    sum_c = jnp.zeros((Cout, 1), jnp.float32)
    sq_c = jnp.zeros((Cout, 1), jnp.float32)
    for r in range(2):
        planes = []
        for c in range(2):
            p = 2 * r + c
            plane = acc_ref[p * Cout:(p + 1) * Cout, :]               # (Cout, th*Wd)
            sum_c = sum_c + jnp.sum(plane, axis=1, keepdims=True)
            sq_c = sq_c + jnp.sum(plane * plane, axis=1, keepdims=True)
            planes.append(plane)
        # width-parity interleave -> full output rows; one lane-dense store per parity
        y_ref[r, 0, 0] = (
            jnp.dot(planes[0], g_even, preferred_element_type=jnp.float32)
            + jnp.dot(planes[1], g_odd, preferred_element_type=jnp.float32))
    s_ref[0, 0] = jnp.concatenate([sum_c, sq_c], axis=1)


# ----------------------------------------------------------------------------
# Kernel 2: BN scale/shift + row-parity interleave + channel concat with skip
# ----------------------------------------------------------------------------
def _bn_concat_kernel(y_ref, skip_ref, scale_ref, shift_ref, o_ref, *, th, ow, cout):
    # y_ref    : (2, 1, 1, Cout, th*OW)   conv rows (row-parity major, q-major lanes)
    # skip_ref : (1, Cout, 2*th*OW)       flattened skip rows for this tile
    # scale/shift : (Cout, 1)             f32 per-channel BN affine
    # o_ref    : (1, 2*Cout, 2*th*OW)     final output tile, flattened OH*OW lanes
    scale = scale_ref[...]
    shift = shift_ref[...]
    for r in range(2):
        bn = y_ref[r, 0, 0] * scale + shift                          # (Cout, th*OW)
        for q in range(th):
            o_ref[0, 0:cout, (2 * q + r) * ow:(2 * q + r + 1) * ow] = \
                bn[:, q * ow:(q + 1) * ow]
    # channel concat fused here: skip is a pure pass-through copy
    o_ref[0, cout:, :] = skip_ref[0]


# ----------------------------------------------------------------------------
# Weight repack: ConvTranspose2d weight (Cin, Cout, 4, 4) -> (4*Cout, 9*Cin)
#   M block p = 2*r + c        : weights for output parity (row%2=r, col%2=c)
#   K block k = (rr*3+cc)*Cin  : matches the in-kernel RHS slab shifted by (rr, cc)
# Taps a parity does not use stay zero, so one K=9*Cin matmul covers all parities.
# ----------------------------------------------------------------------------
def _pack_weights(Wt):
    Cin, Cout = Wt.shape[0], Wt.shape[1]
    wbig = jnp.zeros((4 * Cout, 9 * Cin), jnp.float32)
    for r in range(2):
        for c in range(2):
            p = 2 * r + c
            for dhl in range(2):
                for dwl in range(2):
                    kh, kw = 3 - r - 2 * dhl, 3 - c - 2 * dwl
                    rr, cc = r + dhl, c + dwl
                    col = (rr * 3 + cc) * Cin
                    wbig = wbig.at[p * Cout:(p + 1) * Cout, col:col + Cin].set(
                        jnp.transpose(Wt[:, :, kh, kw]).astype(jnp.float32))
    return wbig


def decoder_single_block_1(x, skip_x, Wt, bias, gamma, beta, eps=1e-5):
    # `bias` is accepted for interface parity but is a forward no-op through the
    # training-mode BatchNorm (see kernel-1 note); it is not used in the compute.
    del bias
    N, Cin, H, Wd = x.shape
    Cout = Wt.shape[1]
    OH, OW = 2 * H, 2 * Wd
    th = 8 if H % 8 == 0 else H            # input-row tile -> 2*th output rows
    HT = H // th

    # (N,Cin,H,W) -> (N,H,Cin,W) + spatial zero pad: in-kernel row slabs are clean
    # (Cin, W+2) tiles.  x is the smallest tensor; this is the only XLA pass on it.
    xpr = jnp.pad(jnp.transpose(x, (0, 2, 1, 3)).astype(jnp.float32),
                  ((0, 0), (1, 1), (0, 0), (1, 1)))
    wbig = _pack_weights(Wt)

    y_rows, stats = pl.pallas_call(
        _deconv_stats_kernel,
        out_shape=(
            jax.ShapeDtypeStruct((2, N, HT, Cout, th * OW), jnp.float32),
            jax.ShapeDtypeStruct((N, HT, Cout, 2), jnp.float32),
        ),
        grid=(N, HT),
        in_specs=[
            pl.BlockSpec((1, H + 2, Cin, Wd + 2), lambda n, i: (n, 0, 0, 0)),
            pl.BlockSpec((4 * Cout, 9 * Cin), lambda n, i: (0, 0)),
        ],
        out_specs=(
            pl.BlockSpec((2, 1, 1, Cout, th * OW), lambda n, i: (0, n, i, 0, 0)),
            pl.BlockSpec((1, 1, Cout, 2), lambda n, i: (n, i, 0, 0)),
        ),
        scratch_shapes=[
            pltpu.VMEM((9 * Cin, Wd), jnp.float32),          # shared matmul RHS
            pltpu.VMEM((4 * Cout, th * Wd), jnp.float32),    # per-parity conv rows
        ],
        compiler_params=pltpu.CompilerParams(
            dimension_semantics=("parallel", "parallel"),
            vmem_limit_bytes=32 * 1024 * 1024),
    )(xpr, wbig)

    # --- BatchNorm training-mode batch statistics (biased variance, like PyTorch) ---
    cnt = float(N * OH * OW)
    ssum = jnp.sum(stats[..., 0], axis=(0, 1))
    ssq = jnp.sum(stats[..., 1], axis=(0, 1))
    mean = ssum / cnt
    var = ssq / cnt - mean * mean                 # E[y^2] - E[y]^2 (f32; fine at these sizes)
    inv = lax.rsqrt(var + eps)
    g32 = gamma.astype(jnp.float32)
    scale = (g32 * inv).reshape(Cout, 1)
    shift = (beta.astype(jnp.float32) - mean * g32 * inv).reshape(Cout, 1)
    # TODO(synk): BatchNorm running_mean/running_var buffer updates (training-mode
    # side effect) are not materialized; only the forward output is reproduced.

    skip_flat = skip_x.astype(jnp.float32).reshape(N, Cout, OH * OW)   # metadata reshape

    out_flat = pl.pallas_call(
        functools.partial(_bn_concat_kernel, th=th, ow=OW, cout=Cout),
        out_shape=jax.ShapeDtypeStruct((N, 2 * Cout, OH * OW), jnp.float32),
        grid=(N, HT),
        in_specs=[
            pl.BlockSpec((2, 1, 1, Cout, th * OW), lambda n, i: (0, n, i, 0, 0)),
            pl.BlockSpec((1, Cout, 2 * th * OW), lambda n, i: (n, 0, i)),
            pl.BlockSpec((Cout, 1), lambda n, i: (0, 0)),
            pl.BlockSpec((Cout, 1), lambda n, i: (0, 0)),
        ],
        out_specs=pl.BlockSpec((1, 2 * Cout, 2 * th * OW), lambda n, i: (n, 0, i)),
        compiler_params=pltpu.CompilerParams(
            dimension_semantics=("parallel", "parallel"),
            vmem_limit_bytes=32 * 1024 * 1024),
    )(y_rows, skip_flat, scale, shift)

    return out_flat.reshape(N, 2 * Cout, OH, OW)   # metadata reshape, no data movement


# ----------------------------------------------------------------------------
# Pure numpy reference (follows the PyTorch op definitions literally).
# ----------------------------------------------------------------------------
def _reference(x, skip, W, b, gamma, beta, eps=1e-5):
    x, skip, W, b = (np.asarray(a, np.float64) for a in (x, skip, W, b))
    gamma, beta = np.asarray(gamma, np.float64), np.asarray(beta, np.float64)
    N, Cin, H, Wd = x.shape
    Cout = W.shape[1]
    OH, OW = 2 * H, 2 * Wd
    out = np.zeros((N, Cout, OH, OW), np.float64)
    for ih in range(H):
        for iw in range(Wd):
            for kh in range(4):
                for kw in range(4):
                    oh, ow = 2 * ih - 1 + kh, 2 * iw - 1 + kw
                    if 0 <= oh < OH and 0 <= ow < OW:
                        out[:, :, oh, ow] += x[:, :, ih, iw] @ W[:, :, kh, kw]
    out += b[None, :, None, None]
    mean = out.mean(axis=(0, 2, 3), keepdims=True)
    var = out.var(axis=(0, 2, 3), keepdims=True)          # biased
    bn = (out - mean) / np.sqrt(var + eps)
    bn = bn * gamma[None, :, None, None] + beta[None, :, None, None]
    return np.concatenate([bn, skip], axis=1)


if __name__ == "__main__":
    N, C, H, Wd = 2, 4, 16, 16            # input_channels = 4
    Cout = C // 2
    OH, OW = 2 * H, 2 * Wd

    key = jax.random.PRNGKey(0)
    k1, k2, k3, k4, k5, k6 = jax.random.split(key, 6)
    x = jax.random.normal(k1, (N, C, H, Wd), jnp.float32)
    skip_x = jax.random.normal(k2, (N, Cout, OH, OW), jnp.float32)
    Wt = jax.random.normal(k3, (C, Cout, 4, 4), jnp.float32) * 0.2   # ConvTranspose2d weight
    bias = jax.random.normal(k4, (Cout,), jnp.float32) * 0.1
    gamma = 1.0 + 0.1 * jax.random.normal(k5, (Cout,), jnp.float32)  # BN weight
    beta = 0.1 * jax.random.normal(k6, (Cout,), jnp.float32)         # BN bias

    run = jax.jit(decoder_single_block_1)
    out = run(x, skip_x, Wt, bias, gamma, beta)
    jax.block_until_ready(out)

    ref = _reference(x, skip_x, Wt, bias, gamma, beta)
    # All visible compute is f32; the tolerance leaves headroom for possible MXU
    # operand rounding on the f32 matmul path.  Any indexing/parity bug would show
    # up as O(1) errors on the BN-normalized output, so this still gates correctness.
    np.testing.assert_allclose(np.asarray(out), ref, rtol=3e-2, atol=3e-2)
    print("KERNEL_OK")
</pallas_src>

<mosaic_0001>
module attributes {stable_mosaic.version = 11 : i64} {
  func.func @_deconv_stats_kernel(%arg0: i32, %arg1: i32, %arg2: memref<1x18x4x18xf32, #tpu.memory_space<vmem>>, %arg3: memref<8x36xf32, #tpu.memory_space<vmem>>, %arg4: memref<2x1x1x2x256xf32, #tpu.memory_space<vmem>>, %arg5: memref<1x1x2x2xf32, #tpu.memory_space<vmem>>, %arg6: memref<36x16xf32, #tpu.memory_space<vmem>>, %arg7: memref<8x128xf32, #tpu.memory_space<vmem>>) attributes {dimension_semantics = [#tpu.dimension_semantics<parallel>, #tpu.dimension_semantics<parallel>], iteration_bounds = array<i64: 2, 2>, scalar_prefetch = 0 : i64, scratch_operands = 2 : i64, tpu.core_type = #tpu.core_type<tc>, window_params = [{transform_indices = @transform_0, window_bounds = array<i64: 1, 18, 4, 18>}, {pipeline_mode = #tpu.pipeline_mode<synchronous>, transform_indices = @transform_1, window_bounds = array<i64: 8, 36>}, {transform_indices = @transform_2, window_bounds = array<i64: 2, 1, 1, 2, 256>}, {transform_indices = @transform_3, window_bounds = array<i64: 1, 1, 2, 2>}]} {
    %c8_i32 = arith.constant 8 : i32
    %0 = arith.muli %arg1, %c8_i32 : i32
    %c0 = arith.constant 0 : index
    %c0_0 = arith.constant 0 : index
    %1 = vector.load %arg3[%c0, %c0_0] : memref<8x36xf32, #tpu.memory_space<vmem>>, vector<8x36xf32>
    %2 = tpu.iota {dimensions = array<i32: 0>} : vector<128x256xi32>
    %3 = tpu.iota {dimensions = array<i32: 1>} : vector<128x256xi32>
    %c2_i32 = arith.constant 2 : i32
    %4 = vector.broadcast %c2_i32 : i32 to vector<128x256xi32>
    %5 = arith.muli %4, %2 : vector<128x256xi32>
    %6 = arith.cmpi eq, %3, %5 : vector<128x256xi32>
    %7 = arith.extui %6 : vector<128x256xi1> to vector<128x256xi32>
    %8 = arith.sitofp %7 : vector<128x256xi32> to vector<128x256xf32>
    %c2_i32_1 = arith.constant 2 : i32
    %9 = vector.broadcast %c2_i32_1 : i32 to vector<128x256xi32>
    %10 = arith.muli %9, %2 : vector<128x256xi32>
    %c1_i32 = arith.constant 1 : i32
    %11 = vector.broadcast %c1_i32 : i32 to vector<128x256xi32>
    %12 = arith.addi %10, %11 : vector<128x256xi32>
    %13 = arith.cmpi eq, %3, %12 : vector<128x256xi32>
    %14 = arith.extui %13 : vector<128x256xi1> to vector<128x256xi32>
    %15 = arith.sitofp %14 : vector<128x256xi32> to vector<128x256xf32>
    %c0_i32 = arith.constant 0 : i32
    %16 = arith.addi %0, %c0_i32 : i32
    %c0_i32_2 = arith.constant 0 : i32
    %17 = arith.addi %16, %c0_i32_2 : i32
    %c0_3 = arith.constant 0 : index
    %18 = arith.index_cast %17 : i32 to index
    %c0_4 = arith.constant 0 : index
    %c0_5 = arith.constant 0 : index
    %19 = vector.load %arg2[%c0_3, %18, %c0_4, %c0_5] : memref<1x18x4x18xf32, #tpu.memory_space<vmem>>, vector<1x1x4x18xf32>
    %20 = vector.shape_cast %19 : vector<1x1x4x18xf32> to vector<4x18xf32>
    %c0_i32_6 = arith.constant 0 : i32
    %21 = arith.addi %0, %c0_i32_6 : i32
    %c1_i32_7 = arith.constant 1 : i32
    %22 = arith.addi %21, %c1_i32_7 : i32
    %c0_8 = arith.constant 0 : index
    %23 = arith.index_cast %22 : i32 to index
    %c0_9 = arith.constant 0 : index
    %c0_10 = arith.constant 0 : index
    %24 = vector.load %arg2[%c0_8, %23, %c0_9, %c0_10] : memref<1x18x4x18xf32, #tpu.memory_space<vmem>>, vector<1x1x4x18xf32>
    %25 = vector.shape_cast %24 : vector<1x1x4x18xf32> to vector<4x18xf32>
    %c0_i32_11 = arith.constant 0 : i32
    %26 = arith.addi %0, %c0_i32_11 : i32
    %c2_i32_12 = arith.constant 2 : i32
    %27 = arith.addi %26, %c2_i32_12 : i32
    %c0_13 = arith.constant 0 : index
    %28 = arith.index_cast %27 : i32 to index
    %c0_14 = arith.constant 0 : index
    %c0_15 = arith.constant 0 : index
    %29 = vector.load %arg2[%c0_13, %28, %c0_14, %c0_15] : memref<1x18x4x18xf32, #tpu.memory_space<vmem>>, vector<1x1x4x18xf32>
    %30 = vector.shape_cast %29 : vector<1x1x4x18xf32> to vector<4x18xf32>
    %31 = vector.extract_strided_slice %20 {offsets = [0, 0], sizes = [4, 16], strides = [1, 1]} : vector<4x18xf32> to vector<4x16xf32>
    %c0_16 = arith.constant 0 : index
    %c0_17 = arith.constant 0 : index
    %32 = vector.load %arg6[%c0_16, %c0_17] : memref<36x16xf32, #tpu.memory_space<vmem>>, vector<4x16xf32>
    tpu.vector_store %arg6[%c0_16, %c0_17], %31 {strides = array<i32>} : memref<36x16xf32, #tpu.memory_space<vmem>>, vector<4x16xf32>,
    %33 = vector.extract_strided_slice %20 {offsets = [0, 1], sizes = [4, 16], strides = [1, 1]} : vector<4x18xf32> to vector<4x16xf32>
    %c4 = arith.constant 4 : index
    %c0_18 = arith.constant 0 : index
    %34 = vector.load %arg6[%c4, %c0_18] : memref<36x16xf32, #tpu.memory_space<vmem>>, vector<4x16xf32>
    tpu.vector_store %arg6[%c4, %c0_18], %33 {strides = array<i32>} : memref<36x16xf32, #tpu.memory_space<vmem>>, vector<4x16xf32>,
    %35 = vector.extract_strided_slice %20 {offsets = [0, 2], sizes = [4, 16], strides = [1, 1]} : vector<4x18xf32> to vector<4x16xf32>
    %c8 = arith.constant 8 : index
    %c0_19 = arith.constant 0 : index
    %36 = vector.load %arg6[%c8, %c0_19] : memref<36x16xf32, #tpu.memory_space<vmem>>, vector<4x16xf32>
    tpu.vector_store %arg6[%c8, %c0_19], %35 {strides = array<i32>} : memref<36x16xf32, #tpu.memory_space<vmem>>, vector<4x16xf32>,
    %37 = vector.extract_strided_slice %25 {offsets = [0, 0], sizes = [4, 16], strides = [1, 1]} : vector<4x18xf32> to vector<4x16xf32>
    %c12 = arith.constant 12 : index
    %c0_20 = arith.constant 0 : index
    %38 = vector.load %arg6[%c12, %c0_20] : memref<36x16xf32, #tpu.memory_space<vmem>>, vector<4x16xf32>
    tpu.vector_store %arg6[%c12, %c0_20], %37 {strides = array<i32>} : memref<36x16xf32, #tpu.memory_space<vmem>>, vector<4x16xf32>,
    %39 = vector.extract_strided_slice %25 {offsets = [0, 1], sizes = [4, 16], strides = [1, 1]} : vector<4x18xf32> to vector<4x16xf32>
    %c16 = arith.constant 16 : index
    %c0_21 = arith.constant 0 : index
    %40 = vector.load %arg6[%c16, %c0_21] : memref<36x16xf32, #tpu.memory_space<vmem>>, vector<4x16xf32>
    tpu.vector_store %arg6[%c16, %c0_21], %39 {strides = array<i32>} : memref<36x16xf32, #tpu.memory_space<vmem>>, vector<4x16xf32>,
    %41 = vector.extract_strided_slice %25 {offsets = [0, 2], sizes = [4, 16], strides = [1, 1]} : vector<4x18xf32> to vector<4x16xf32>
    %c20 = arith.constant 20 : index
    %c0_22 = arith.constant 0 : index
    %42 = vector.load %arg6[%c20, %c0_22] : memref<36x16xf32, #tpu.memory_space<vmem>>, vector<4x16xf32>
    tpu.vector_store %arg6[%c20, %c0_22], %41 {strides = array<i32>} : memref<36x16xf32, #tpu.memory_space<vmem>>, vector<4x16xf32>,
    %43 = vector.extract_strided_slice %30 {offsets = [0, 0], sizes = [4, 16], strides = [1, 1]} : vector<4x18xf32> to vector<4x16xf32>
    %c24 = arith.constant 24 : index
    %c0_23 = arith.constant 0 : index
    %44 = vector.load %arg6[%c24, %c0_23] : memref<36x16xf32, #tpu.memory_space<vmem>>, vector<4x16xf32>
    tpu.vector_store %arg6[%c24, %c0_23], %43 {strides = array<i32>} : memref<36x16xf32, #tpu.memory_space<vmem>>, vector<4x16xf32>,
    %45 = vector.extract_strided_slice %30 {offsets = [0, 1], sizes = [4, 16], strides = [1, 1]} : vector<4x18xf32> to vector<4x16xf32>
    %c28 = arith.constant 28 : index
    %c0_24 = arith.constant 0 : index
    %46 = vector.load %arg6[%c28, %c0_24] : memref<36x16xf32, #tpu.memory_space<vmem>>, vector<4x16xf32>
    tpu.vector_store %arg6[%c28, %c0_24], %45 {strides = array<i32>} : memref<36x16xf32, #tpu.memory_space<vmem>>, vector<4x16xf32>,
    %47 = vector.extract_strided_slice %30 {offsets = [0, 2], sizes = [4, 16], strides = [1, 1]} : vector<4x18xf32> to vector<4x16xf32>
    %c32 = arith.constant 32 : index
    %c0_25 = arith.constant 0 : index
    %48 = vector.load %arg6[%c32, %c0_25] : memref<36x16xf32, #tpu.memory_space<vmem>>, vector<4x16xf32>
    tpu.vector_store %arg6[%c32, %c0_25], %47 {strides = array<i32>} : memref<36x16xf32, #tpu.memory_space<vmem>>, vector<4x16xf32>,
    %c0_26 = arith.constant 0 : index
    %c0_27 = arith.constant 0 : index
    %49 = vector.load %arg6[%c0_26, %c0_27] : memref<36x16xf32, #tpu.memory_space<vmem>>, vector<36x16xf32>
    %cst = arith.constant dense<0.000000e+00> : vector<8x16xf32>
    %50 = tpu.matmul %1, %49, %cst {dimension_numbers = #tpu.dot_dimension_numbers<[1], [0], [0], [1], [0, 0, 1, 1], [], []>} : vector<8x36xf32>, vector<36x16xf32>, vector<8x16xf32> -> vector<8x16xf32>
    %c0_28 = arith.constant 0 : index
    %c0_29 = arith.constant 0 : index
    %51 = vector.load %arg7[%c0_28, %c0_29] : memref<8x128xf32, #tpu.memory_space<vmem>>, vector<8x16xf32>
    tpu.vector_store %arg7[%c0_28, %c0_29], %50 {strides = array<i32>} : memref<8x128xf32, #tpu.memory_space<vmem>>, vector<8x16xf32>,
    %c1_i32_30 = arith.constant 1 : i32
    %52 = arith.addi %0, %c1_i32_30 : i32
    %c0_i32_31 = arith.constant 0 : i32
    %53 = arith.addi %52, %c0_i32_31 : i32
    %c0_32 = arith.constant 0 : index
    %54 = arith.index_cast %53 : i32 to index
    %c0_33 = arith.constant 0 : index
    %c0_34 = arith.constant 0 : index
    %55 = vector.load %arg2[%c0_32, %54, %c0_33, %c0_34] : memref<1x18x4x18xf32, #tpu.memory_space<vmem>>, vector<1x1x4x18xf32>
    %56 = vector.shape_cast %55 : vector<1x1x4x18xf32> to vector<4x18xf32>
    %c1_i32_35 = arith.constant 1 : i32
    %57 = arith.addi %0, %c1_i32_35 : i32
    %c1_i32_36 = arith.constant 1 : i32
    %58 = arith.addi %57, %c1_i32_36 : i32
    %c0_37 = arith.constant 0 : index
    %59 = arith.index_cast %58 : i32 to index
    %c0_38 = arith.constant 0 : index
    %c0_39 = arith.constant 0 : index
    %60 = vector.load %arg2[%c0_37, %59, %c0_38, %c0_39] : memref<1x18x4x18xf32, #tpu.memory_space<vmem>>, vector<1x1x4x18xf32>
    %61 = vector.shape_cast %60 : vector<1x1x4x18xf32> to vector<4x18xf32>
    %c1_i32_40 = arith.constant 1 : i32
    %62 = arith.addi %0, %c1_i32_40 : i32
    %c2_i32_41 = arith.constant 2 : i32
    %63 = arith.addi %62, %c2_i32_41 : i32
    %c0_42 = arith.constant 0 : index
    %64 = arith.index_cast %63 : i32 to index
    %c0_43 = arith.constant 0 : index
    %c0_44 = arith.constant 0 : index
    %65 = vector.load %arg2[%c0_42, %64, %c0_43, %c0_44] : memref<1x18x4x18xf32, #tpu.memory_space<vmem>>, vector<1x1x4x18xf32>
    %66 = vector.shape_cast %65 : vector<1x1x4x18xf32> to vector<4x18xf32>
    %67 = vector.extract_strided_slice %56 {offsets = [0, 0], sizes = [4, 16], strides = [1, 1]} : vector<4x18xf32> to vector<4x16xf32>
    %c0_45 = arith.constant 0 : index
    %c0_46 = arith.constant 0 : index
    %68 = vector.load %arg6[%c0_45, %c0_46] : memref<36x16xf32, #tpu.memory_space<vmem>>, vector<4x16xf32>
    tpu.vector_store %arg6[%c0_45, %c0_46], %67 {strides = array<i32>} : memref<36x16xf32, #tpu.memory_space<vmem>>, vector<4x16xf32>,
    %69 = vector.extract_strided_slice %56 {offsets = [0, 1], sizes = [4, 16], strides = [1, 1]} : vector<4x18xf32> to vector<4x16xf32>
    %c4_47 = arith.constant 4 : index
    %c0_48 = arith.constant 0 : index
    %70 = vector.load %arg6[%c4_47, %c0_48] : memref<36x16xf32, #tpu.memory_space<vmem>>, vector<4x16xf32>
    tpu.vector_store %arg6[%c4_47, %c0_48], %69 {strides = array<i32>} : memref<36x16xf32, #tpu.memory_space<vmem>>, vector<4x16xf32>,
    %71 = vector.extract_strided_slice %56 {offsets = [0, 2], sizes = [4, 16], strides = [1, 1]} : vector<4x18xf32> to vector<4x16xf32>
    %c8_49 = arith.constant 8 : index
    %c0_50 = arith.constant 0 : index
    %72 = vector.load %arg6[%c8_49, %c0_50] : memref<36x16xf32, #tpu.memory_space<vmem>>, vector<4x16xf32>
    tpu.vector_store %arg6[%c8_49, %c0_50], %71 {strides = array<i32>} : memref<36x16xf32, #tpu.memory_space<vmem>>, vector<4x16xf32>,
    %73 = vector.extract_strided_slice %61 {offsets = [0, 0], sizes = [4, 16], strides = [1, 1]} : vector<4x18xf32> to vector<4x16xf32>
    %c12_51 = arith.constant 12 : index
    %c0_52 = arith.constant 0 : index
    %74 = vector.load %arg6[%c12_51, %c0_52] : memref<36x16xf32, #tpu.memory_space<vmem>>, vector<4x16xf32>
    tpu.vector_store %arg6[%c12_51, %c0_52], %73 {strides = array<i32>} : memref<36x16xf32, #tpu.memory_space<vmem>>, vector<4x16xf32>,
    %75 = vector.extract_strided_slice %61 {offsets = [0, 1], sizes = [4, 16], strides = [1, 1]} : vector<4x18xf32> to vector<4x16xf32>
    %c16_53 = arith.constant 16 : index
    %c0_54 = arith.constant 0 : index
    %76 = vector.load %arg6[%c16_53, %c0_54] : memref<36x16xf32, #tpu.memory_space<vmem>>, vector<4x16xf32>
    tpu.vector_store %arg6[%c16_53, %c0_54], %75 {strides = array<i32>} : memref<36x16xf32, #tpu.memory_space<vmem>>, vector<4x16xf32>,
    %77 = vector.extract_strided_slice %61 {offsets = [0, 2], sizes = [4, 16], strides = [1, 1]} : vector<4x18xf32> to vector<4x16xf32>
    %c20_55 = arith.constant 20 : index
    %c0_56 = arith.constant 0 : index
    %78 = vector.load %arg6[%c20_55, %c0_56] : memref<36x16xf32, #tpu.memory_space<vmem>>, vector<4x16xf32>
    tpu.vector_store %arg6[%c20_55, %c0_56], %77 {strides = array<i32>} : memref<36x16xf32, #tpu.memory_space<vmem>>, vector<4x16xf32>,
    %79 = vector.extract_strided_slice %66 {offsets = [0, 0], sizes = [4, 16], strides = [1, 1]} : vector<4x18xf32> to vector<4x16xf32>
    %c24_57 = arith.constant 24 : index
    %c0_58 = arith.constant 0 : index
    %80 = vector.load %arg6[%c24_57, %c0_58] : memref<36x16xf32, #tpu.memory_space<vmem>>, vector<4x16xf32>
    tpu.vector_store %arg6[%c24_57, %c0_58], %79 {strides = array<i32>} : memref<36x16xf32, #tpu.memory_space<vmem>>, vector<4x16xf32>,
    %81 = vector.extract_strided_slice %66 {offsets = [0, 1], sizes = [4, 16], strides = [1, 1]} : vector<4x18xf32> to vector<4x16xf32>
    %c28_59 = arith.constant 28 : index
    %c0_60 = arith.constant 0 : index
    %82 = vector.load %arg6[%c28_59, %c0_60] : memref<36x16xf32, #tpu.memory_space<vmem>>, vector<4x16xf32>
    tpu.vector_store %arg6[%c28_59, %c0_60], %81 {strides = array<i32>} : memref<36x16xf32, #tpu.memory_space<vmem>>, vector<4x16xf32>,
    %83 = vector.extract_strided_slice %66 {offsets = [0, 2], sizes = [4, 16], strides = [1, 1]} : vector<4x18xf32> to vector<4x16xf32>
    %c32_61 = arith.constant 32 : index
    %c0_62 = arith.constant 0 : index
    %84 = vector.load %arg6[%c32_61, %c0_62] : memref<36x16xf32, #tpu.memory_space<vmem>>, vector<4x16xf32>
    tpu.vector_store %arg6[%c32_61, %c0_62], %83 {strides = array<i32>} : memref<36x16xf32, #tpu.memory_space<vmem>>, vector<4x16xf32>,
    %c0_63 = arith.constant 0 : index
    %c0_64 = arith.constant 0 : index
    %85 = vector.load %arg6[%c0_63, %c0_64] : memref<36x16xf32, #tpu.memory_space<vmem>>, vector<36x16xf32>
    %cst_65 = arith.constant dense<0.000000e+00> : vector<8x16xf32>
    %86 = tpu.matmul %1, %85, %cst_65 {dimension_numbers = #tpu.dot_dimension_numbers<[1], [0], [0], [1], [0, 0, 1, 1], [], []>} : vector<8x36xf32>, vector<36x16xf32>, vector<8x16xf32> -> vector<8x16xf32>
    %c0_66 = arith.constant 0 : index
    %c16_67 = arith.constant 16 : index
    %87 = vector.load %arg7[%c0_66, %c16_67] : memref<8x128xf32, #tpu.memory_space<vmem>>, vector<8x16xf32>
    tpu.vector_store %arg7[%c0_66, %c16_67], %86 {strides = array<i32>} : memref<8x128xf32, #tpu.memory_space<vmem>>, vector<8x16xf32>,
    %c2_i32_68 = arith.constant 2 : i32
    %88 = arith.addi %0, %c2_i32_68 : i32
    %c0_i32_69 = arith.constant 0 : i32
    %89 = arith.addi %88, %c0_i32_69 : i32
    %c0_70 = arith.constant 0 : index
    %90 = arith.index_cast %89 : i32 to index
    %c0_71 = arith.constant 0 : index
    %c0_72 = arith.constant 0 : index
    %91 = vector.load %arg2[%c0_70, %90, %c0_71, %c0_72] : memref<1x18x4x18xf32, #tpu.memory_space<vmem>>, vector<1x1x4x18xf32>
    %92 = vector.shape_cast %91 : vector<1x1x4x18xf32> to vector<4x18xf32>
    %c2_i32_73 = arith.constant 2 : i32
    %93 = arith.addi %0, %c2_i32_73 : i32
    %c1_i32_74 = arith.constant 1 : i32
    %94 = arith.addi %93, %c1_i32_74 : i32
    %c0_75 = arith.constant 0 : index
    %95 = arith.index_cast %94 : i32 to index
    %c0_76 = arith.constant 0 : index
    %c0_77 = arith.constant 0 : index
    %96 = vector.load %arg2[%c0_75, %95, %c0_76, %c0_77] : memref<1x18x4x18xf32, #tpu.memory_space<vmem>>, vector<1x1x4x18xf32>
    %97 = vector.shape_cast %96 : vector<1x1x4x18xf32> to vector<4x18xf32>
    %c2_i32_78 = arith.constant 2 : i32
    %98 = arith.addi %0, %c2_i32_78 : i32
    %c2_i32_79 = arith.constant 2 : i32
    %99 = arith.addi %98, %c2_i32_79 : i32
    %c0_80 = arith.constant 0 : index
    %100 = arith.index_cast %99 : i32 to index
    %c0_81 = arith.constant 0 : index
    %c0_82 = arith.constant 0 : index
    %101 = vector.load %arg2[%c0_80, %100, %c0_81, %c0_82] : memref<1x18x4x18xf32, #tpu.memory_space<vmem>>, vector<1x1x4x18xf32>
    %102 = vector.shape_cast %101 : vector<1x1x4x18xf32> to vector<4x18xf32>
    %103 = vector.extract_strided_slice %92 {offsets = [0, 0], sizes = [4, 16], strides = [1, 1]} : vector<4x18xf32> to vector<4x16xf32>
    %c0_83 = arith.constant 0 : index
    %c0_84 = arith.constant 0 : index
    %104 = vector.load %arg6[%c0_83, %c0_84] : memref<36x16xf32, #tpu.memory_space<vmem>>, vector<4x16xf32>
    tpu.vector_store %arg6[%c0_83, %c0_84], %103 {strides = array<i32>} : memref<36x16xf32, #tpu.memory_space<vmem>>, vector<4x16xf32>,
    %105 = vector.extract_strided_slice %92 {offsets = [0, 1], sizes = [4, 16], strides = [1, 1]} : vector<4x18xf32> to vector<4x16xf32>
    %c4_85 = arith.constant 4 : index
    %c0_86 = arith.constant 0 : index
    %106 = vector.load %arg6[%c4_85, %c0_86] : memref<36x16xf32, #tpu.memory_space<vmem>>, vector<4x16xf32>
    tpu.vector_store %arg6[%c4_85, %c0_86], %105 {strides = array<i32>} : memref<36x16xf32, #tpu.memory_space<vmem>>, vector<4x16xf32>,
    %107 = vector.extract_strided_slice %92 {offsets = [0, 2], sizes = [4, 16], strides = [1, 1]} : vector<4x18xf32> to vector<4x16xf32>
    %c8_87 = arith.constant 8 : index
    %c0_88 = arith.constant 0 : index
    %108 = vector.load %arg6[%c8_87, %c0_88] : memref<36x16xf32, #tpu.memory_space<vmem>>, vector<4x16xf32>
    tpu.vector_store %arg6[%c8_87, %c0_88], %107 {strides = array<i32>} : memref<36x16xf32, #tpu.memory_space<vmem>>, vector<4x16xf32>,
    %109 = vector.extract_strided_slice %97 {offsets = [0, 0], sizes = [4, 16], strides = [1, 1]} : vector<4x18xf32> to vector<4x16xf32>
    %c12_89 = arith.constant 12 : index
    %c0_90 = arith.constant 0 : index
    %110 = vector.load %arg6[%c12_89, %c0_90] : memref<36x16xf32, #tpu.memory_space<vmem>>, vector<4x16xf32>
    tpu.vector_store %arg6[%c12_89, %c0_90], %109 {strides = array<i32>} : memref<36x16xf32, #tpu.memory_space<vmem>>, vector<4x16xf32>,
    %111 = vector.extract_strided_slice %97 {offsets = [0, 1], sizes = [4, 16], strides = [1, 1]} : vector<4x18xf32> to vector<4x16xf32>
    %c16_91 = arith.constant 16 : index
    %c0_92 = arith.constant 0 : index
    %112 = vector.load %arg6[%c16_91, %c0_92] : memref<36x16xf32, #tpu.memory_space<vmem>>, vector<4x16xf32>
    tpu.vector_store %arg6[%c16_91, %c0_92], %111 {strides = array<i32>} : memref<36x16xf32, #tpu.memory_space<vmem>>, vector<4x16xf32>,
    %113 = vector.extract_strided_slice %97 {offsets = [0, 2], sizes = [4, 16], strides = [1, 1]} : vector<4x18xf32> to vector<4x16xf32>
    %c20_93 = arith.constant 20 : index
    %c0_94 = arith.constant 0 : index
    %114 = vector.load %arg6[%c20_93, %c0_94] : memref<36x16xf32, #tpu.memory_space<vmem>>, vector<4x16xf32>
    tpu.vector_store %arg6[%c20_93, %c0_94], %113 {strides = array<i32>} : memref<36x16xf32, #tpu.memory_space<vmem>>, vector<4x16xf32>,
    %115 = vector.extract_strided_slice %102 {offsets = [0, 0], sizes = [4, 16], strides = [1, 1]} : vector<4x18xf32> to vector<4x16xf32>
    %c24_95 = arith.constant 24 : index
    %c0_96 = arith.constant 0 : index
    %116 = vector.load %arg6[%c24_95, %c0_96] : memref<36x16xf32, #tpu.memory_space<vmem>>, vector<4x16xf32>
    tpu.vector_store %arg6[%c24_95, %c0_96], %115 {strides = array<i32>} : memref<36x16xf32, #tpu.memory_space<vmem>>, vector<4x16xf32>,
    %117 = vector.extract_strided_slice %102 {offsets = [0, 1], sizes = [4, 16], strides = [1, 1]} : vector<4x18xf32> to vector<4x16xf32>
    %c28_97 = arith.constant 28 : index
    %c0_98 = arith.constant 0 : index
    %118 = vector.load %arg6[%c28_97, %c0_98] : memref<36x16xf32, #tpu.memory_space<vmem>>, vector<4x16xf32>
    tpu.vector_store %arg6[%c28_97, %c0_98], %117 {strides = array<i32>} : memref<36x16xf32, #tpu.memory_space<vmem>>, vector<4x16xf32>,
    %119 = vector.extract_strided_slice %102 {offsets = [0, 2], sizes = [4, 16], strides = [1, 1]} : vector<4x18xf32> to vector<4x16xf32>
    %c32_99 = arith.constant 32 : index
    %c0_100 = arith.constant 0 : index
    %120 = vector.load %arg6[%c32_99, %c0_100] : memref<36x16xf32, #tpu.memory_space<vmem>>, vector<4x16xf32>
    tpu.vector_store %arg6[%c32_99, %c0_100], %119 {strides = array<i32>} : memref<36x16xf32, #tpu.memory_space<vmem>>, vector<4x16xf32>,
    %c0_101 = arith.constant 0 : index
    %c0_102 = arith.constant 0 : index
    %121 = vector.load %arg6[%c0_101, %c0_102] : memref<36x16xf32, #tpu.memory_space<vmem>>, vector<36x16xf32>
    %cst_103 = arith.constant dense<0.000000e+00> : vector<8x16xf32>
    %122 = tpu.matmul %1, %121, %cst_103 {dimension_numbers = #tpu.dot_dimension_numbers<[1], [0], [0], [1], [0, 0, 1, 1], [], []>} : vector<8x36xf32>, vector<36x16xf32>, vector<8x16xf32> -> vector<8x16xf32>
    %c0_104 = arith.constant 0 : index
    %c32_105 = arith.constant 32 : index
    %123 = vector.load %arg7[%c0_104, %c32_105] : memref<8x128xf32, #tpu.memory_space<vmem>>, vector<8x16xf32>
    tpu.vector_store %arg7[%c0_104, %c32_105], %122 {strides = array<i32>} : memref<8x128xf32, #tpu.memory_space<vmem>>, vector<8x16xf32>,
    %c3_i32 = arith.constant 3 : i32
    %124 = arith.addi %0, %c3_i32 : i32
    %c0_i32_106 = arith.constant 0 : i32
    %125 = arith.addi %124, %c0_i32_106 : i32
    %c0_107 = arith.constant 0 : index
    %126 = arith.index_cast %125 : i32 to index
    %c0_108 = arith.constant 0 : index
    %c0_109 = arith.constant 0 : index
    %127 = vector.load %arg2[%c0_107, %126, %c0_108, %c0_109] : memref<1x18x4x18xf32, #tpu.memory_space<vmem>>, vector<1x1x4x18xf32>
    %128 = vector.shape_cast %127 : vector<1x1x4x18xf32> to vector<4x18xf32>
    %c3_i32_110 = arith.constant 3 : i32
    %129 = arith.addi %0, %c3_i32_110 : i32
    %c1_i32_111 = arith.constant 1 : i32
    %130 = arith.addi %129, %c1_i32_111 : i32
    %c0_112 = arith.constant 0 : index
    %131 = arith.index_cast %130 : i32 to index
    %c0_113 = arith.constant 0 : index
    %c0_114 = arith.constant 0 : index
    %132 = vector.load %arg2[%c0_112, %131, %c0_113, %c0_114] : memref<1x18x4x18xf32, #tpu.memory_space<vmem>>, vector<1x1x4x18xf32>
    %133 = vector.shape_cast %132 : vector<1x1x4x18xf32> to vector<4x18xf32>
    %c3_i32_115 = arith.constant 3 : i32
    %134 = arith.addi %0, %c3_i32_115 : i32
    %c2_i32_116 = arith.constant 2 : i32
    %135 = arith.addi %134, %c2_i32_116 : i32
    %c0_117 = arith.constant 0 : index
    %136 = arith.index_cast %135 : i32 to index
    %c0_118 = arith.constant 0 : index
    %c0_119 = arith.constant 0 : index
    %137 = vector.load %arg2[%c0_117, %136, %c0_118, %c0_119] : memref<1x18x4x18xf32, #tpu.memory_space<vmem>>, vector<1x1x4x18xf32>
    %138 = vector.shape_cast %137 : vector<1x1x4x18xf32> to vector<4x18xf32>
    %139 = vector.extract_strided_slice %128 {offsets = [0, 0], sizes = [4, 16], strides = [1, 1]} : vector<4x18xf32> to vector<4x16xf32>
    %c0_120 = arith.constant 0 : index
    %c0_121 = arith.constant 0 : index
    %140 = vector.load %arg6[%c0_120, %c0_121] : memref<36x16xf32, #tpu.memory_space<vmem>>, vector<4x16xf32>
    tpu.vector_store %arg6[%c0_120, %c0_121], %139 {strides = array<i32>} : memref<36x16xf32, #tpu.memory_space<vmem>>, vector<4x16xf32>,
    %141 = vector.extract_strided_slice %128 {offsets = [0, 1], sizes = [4, 16], strides = [1, 1]} : vector<4x18xf32> to vector<4x16xf32>
    %c4_122 = arith.constant 4 : index
    %c0_123 = arith.constant 0 : index
    %142 = vector.load %arg6[%c4_122, %c0_123] : memref<36x16xf32, #tpu.memory_space<vmem>>, vector<4x16xf32>
    tpu.vector_store %arg6[%c4_122, %c0_123], %141 {strides = array<i32>} : memref<36x16xf32, #tpu.memory_space<vmem>>, vector<4x16xf32>,
    %143 = vector.extract_strided_slice %128 {offsets = [0, 2], sizes = [4, 16], strides = [1, 1]} : vector<4x18xf32> to vector<4x16xf32>
    %c8_124 = arith.constant 8 : index
    %c0_125 = arith.constant 0 : index
    %144 = vector.load %arg6[%c8_124, %c0_125] : memref<36x16xf32, #tpu.memory_space<vmem>>, vector<4x16xf32>
    tpu.vector_store %arg6[%c8_124, %c0_125], %143 {strides = array<i32>} : memref<36x16xf32, #tpu.memory_space<vmem>>, vector<4x16xf32>,
    %145 = vector.extract_strided_slice %133 {offsets = [0, 0], sizes = [4, 16], strides = [1, 1]} : vector<4x18xf32> to vector<4x16xf32>
    %c12_126 = arith.constant 12 : index
    %c0_127 = arith.constant 0 : index
    %146 = vector.load %arg6[%c12_126, %c0_127] : memref<36x16xf32, #tpu.memory_space<vmem>>, vector<4x16xf32>
    tpu.vector_store %arg6[%c12_126, %c0_127], %145 {strides = array<i32>} : memref<36x16xf32, #tpu.memory_space<vmem>>, vector<4x16xf32>,
    %147 = vector.extract_strided_slice %133 {offsets = [0, 1], sizes = [4, 16], strides = [1, 1]} : vector<4x18xf32> to vector<4x16xf32>
    %c16_128 = arith.constant 16 : index
    %c0_129 = arith.constant 0 : index
    %148 = vector.load %arg6[%c16_128, %c0_129] : memref<36x16xf32, #tpu.memory_space<vmem>>, vector<4x16xf32>
    tpu.vector_store %arg6[%c16_128, %c0_129], %147 {strides = array<i32>} : memref<36x16xf32, #tpu.memory_space<vmem>>, vector<4x16xf32>,
    %149 = vector.extract_strided_slice %133 {offsets = [0, 2], sizes = [4, 16], strides = [1, 1]} : vector<4x18xf32> to vector<4x16xf32>
    %c20_130 = arith.constant 20 : index
    %c0_131 = arith.constant 0 : index
    %150 = vector.load %arg6[%c20_130, %c0_131] : memref<36x16xf32, #tpu.memory_space<vmem>>, vector<4x16xf32>
    tpu.vector_store %arg6[%c20_130, %c0_131], %149 {strides = array<i32>} : memref<36x16xf32, #tpu.memory_space<vmem>>, vector<4x16xf32>,
    %151 = vector.extract_strided_slice %138 {offsets = [0, 0], sizes = [4, 16], strides = [1, 1]} : vector<4x18xf32> to vector<4x16xf32>
    %c24_132 = arith.constant 24 : index
    %c0_133 = arith.constant 0 : index
    %152 = vector.load %arg6[%c24_132, %c0_133] : memref<36x16xf32, #tpu.memory_space<vmem>>, vector<4x16xf32>
    tpu.vector_store %arg6[%c24_132, %c0_133], %151 {strides = array<i32>} : memref<36x16xf32, #tpu.memory_space<vmem>>, vector<4x16xf32>,
    %153 = vector.extract_strided_slice %138 {offsets = [0, 1], sizes = [4, 16], strides = [1, 1]} : vector<4x18xf32> to vector<4x16xf32>
    %c28_134 = arith.constant 28 : index
    %c0_135 = arith.constant 0 : index
    %154 = vector.load %arg6[%c28_134, %c0_135] : memref<36x16xf32, #tpu.memory_space<vmem>>, vector<4x16xf32>
    tpu.vector_store %arg6[%c28_134, %c0_135], %153 {strides = array<i32>} : memref<36x16xf32, #tpu.memory_space<vmem>>, vector<4x16xf32>,
    %155 = vector.extract_strided_slice %138 {offsets = [0, 2], sizes = [4, 16], strides = [1, 1]} : vector<4x18xf32> to vector<4x16xf32>
    %c32_136 = arith.constant 32 : index
    %c0_137 = arith.constant 0 : index
    %156 = vector.load %arg6[%c32_136, %c0_137] : memref<36x16xf32, #tpu.memory_space<vmem>>, vector<4x16xf32>
    tpu.vector_store %arg6[%c32_136, %c0_137], %155 {strides = array<i32>} : memref<36x16xf32, #tpu.memory_space<vmem>>, vector<4x16xf32>,
    %c0_138 = arith.constant 0 : index
    %c0_139 = arith.constant 0 : index
    %157 = vector.load %arg6[%c0_138, %c0_139] : memref<36x16xf32, #tpu.memory_space<vmem>>, vector<36x16xf32>
    %cst_140 = arith.constant dense<0.000000e+00> : vector<8x16xf32>
    %158 = tpu.matmul %1, %157, %cst_140 {dimension_numbers = #tpu.dot_dimension_numbers<[1], [0], [0], [1], [0, 0, 1, 1], [], []>} : vector<8x36xf32>, vector<36x16xf32>, vector<8x16xf32> -> vector<8x16xf32>
    %c0_141 = arith.constant 0 : index
    %c48 = arith.constant 48 : index
    %159 = vector.load %arg7[%c0_141, %c48] : memref<8x128xf32, #tpu.memory_space<vmem>>, vector<8x16xf32>
    tpu.vector_store %arg7[%c0_141, %c48], %158 {strides = array<i32>} : memref<8x128xf32, #tpu.memory_space<vmem>>, vector<8x16xf32>,
    %c4_i32 = arith.constant 4 : i32
    %160 = arith.addi %0, %c4_i32 : i32
    %c0_i32_142 = arith.constant 0 : i32
    %161 = arith.addi %160, %c0_i32_142 : i32
    %c0_143 = arith.constant 0 : index
    %162 = arith.index_cast %161 : i32 to index
    %c0_144 = arith.constant 0 : index
    %c0_145 = arith.constant 0 : index
    %163 = vector.load %arg2[%c0_143, %162, %c0_144, %c0_145] : memref<1x18x4x18xf32, #tpu.memory_space<vmem>>, vector<1x1x4x18xf32>
    %164 = vector.shape_cast %163 : vector<1x1x4x18xf32> to vector<4x18xf32>
    %c4_i32_146 = arith.constant 4 : i32
    %165 = arith.addi %0, %c4_i32_146 : i32
    %c1_i32_147 = arith.constant 1 : i32
    %166 = arith.addi %165, %c1_i32_147 : i32
    %c0_148 = arith.constant 0 : index
    %167 = arith.index_cast %166 : i32 to index
    %c0_149 = arith.constant 0 : index
    %c0_150 = arith.constant 0 : index
    %168 = vector.load %arg2[%c0_148, %167, %c0_149, %c0_150] : memref<1x18x4x18xf32, #tpu.memory_space<vmem>>, vector<1x1x4x18xf32>
    %169 = vector.shape_cast %168 : vector<1x1x4x18xf32> to vector<4x18xf32>
    %c4_i32_151 = arith.constant 4 : i32
    %170 = arith.addi %0, %c4_i32_151 : i32
    %c2_i32_152 = arith.constant 2 : i32
    %171 = arith.addi %170, %c2_i32_152 : i32
    %c0_153 = arith.constant 0 : index
    %172 = arith.index_cast %171 : i32 to index
    %c0_154 = arith.constant 0 : index
    %c0_155 = arith.constant 0 : index
    %173 = vector.load %arg2[%c0_153, %172, %c0_154, %c0_155] : memref<1x18x4x18xf32, #tpu.memory_space<vmem>>, vector<1x1x4x18xf32>
    %174 = vector.shape_cast %173 : vector<1x1x4x18xf32> to vector<4x18xf32>
    %175 = vector.extract_strided_slice %164 {offsets = [0, 0], sizes = [4, 16], strides = [1, 1]} : vector<4x18xf32> to vector<4x16xf32>
    %c0_156 = arith.constant 0 : index
    %c0_157 = arith.constant 0 : index
    %176 = vector.load %arg6[%c0_156, %c0_157] : memref<36x16xf32, #tpu.memory_space<vmem>>, vector<4x16xf32>
    tpu.vector_store %arg6[%c0_156, %c0_157], %175 {strides = array<i32>} : memref<36x16xf32, #tpu.memory_space<vmem>>, vector<4x16xf32>,
    %177 = vector.extract_strided_slice %164 {offsets = [0, 1], sizes = [4, 16], strides = [1, 1]} : vector<4x18xf32> to vector<4x16xf32>
    %c4_158 = arith.constant 4 : index
    %c0_159 = arith.constant 0 : index
    %178 = vector.load %arg6[%c4_158, %c0_159] : memref<36x16xf32, #tpu.memory_space<vmem>>, vector<4x16xf32>
    tpu.vector_store %arg6[%c4_158, %c0_159], %177 {strides = array<i32>} : memref<36x16xf32, #tpu.memory_space<vmem>>, vector<4x16xf32>,
    %179 = vector.extract_strided_slice %164 {offsets = [0, 2], sizes = [4, 16], strides = [1, 1]} : vector<4x18xf32> to vector<4x16xf32>
    %c8_160 = arith.constant 8 : index
    %c0_161 = arith.constant 0 : index
    %180 = vector.load %arg6[%c8_160, %c0_161] : memref<36x16xf32, #tpu.memory_space<vmem>>, vector<4x16xf32>
    tpu.vector_store %arg6[%c8_160, %c0_161], %179 {strides = array<i32>} : memref<36x16xf32, #tpu.memory_space<vmem>>, vector<4x16xf32>,
    %181 = vector.extract_strided_slice %169 {offsets = [0, 0], sizes = [4, 16], strides = [1, 1]} : vector<4x18xf32> to vector<4x16xf32>
    %c12_162 = arith.constant 12 : index
    %c0_163 = arith.constant 0 : index
    %182 = vector.load %arg6[%c12_162, %c0_163] : memref<36x16xf32, #tpu.memory_space<vmem>>, vector<4x16xf32>
    tpu.vector_store %arg6[%c12_162, %c0_163], %181 {strides = array<i32>} : memref<36x16xf32, #tpu.memory_space<vmem>>, vector<4x16xf32>,
    %183 = vector.extract_strided_slice %169 {offsets = [0, 1], sizes = [4, 16], strides = [1, 1]} : vector<4x18xf32> to vector<4x16xf32>
    %c16_164 = arith.constant 16 : index
    %c0_165 = arith.constant 0 : index
    %184 = vector.load %arg6[%c16_164, %c0_165] : memref<36x16xf32, #tpu.memory_space<vmem>>, vector<4x16xf32>
    tpu.vector_store %arg6[%c16_164, %c0_165], %183 {strides = array<i32>} : memref<36x16xf32, #tpu.memory_space<vmem>>, vector<4x16xf32>,
    %185 = vector.extract_strided_slice %169 {offsets = [0, 2], sizes = [4, 16], strides = [1, 1]} : vector<4x18xf32> to vector<4x16xf32>
    %c20_166 = arith.constant 20 : index
    %c0_167 = arith.constant 0 : index
    %186 = vector.load %arg6[%c20_166, %c0_167] : memref<36x16xf32, #tpu.memory_space<vmem>>, vector<4x16xf32>
    tpu.vector_store %arg6[%c20_166, %c0_167], %185 {strides = array<i32>} : memref<36x16xf32, #tpu.memory_space<vmem>>, vector<4x16xf32>,
    %187 = vector.extract_strided_slice %174 {offsets = [0, 0], sizes = [4, 16], strides = [1, 1]} : vector<4x18xf32> to vector<4x16xf32>
    %c24_168 = arith.constant 24 : index
    %c0_169 = arith.constant 0 : index
    %188 = vector.load %arg6[%c24_168, %c0_169] : memref<36x16xf32, #tpu.memory_space<vmem>>, vector<4x16xf32>
    tpu.vector_store %arg6[%c24_168, %c0_169], %187 {strides = array<i32>} : memref<36x16xf32, #tpu.memory_space<vmem>>, vector<4x16xf32>,
    %189 = vector.extract_strided_slice %174 {offsets = [0, 1], sizes = [4, 16], strides = [1, 1]} : vector<4x18xf32> to vector<4x16xf32>
    %c28_170 = arith.constant 28 : index
    %c0_171 = arith.constant 0 : index
    %190 = vector.load %arg6[%c28_170, %c0_171] : memref<36x16xf32, #tpu.memory_space<vmem>>, vector<4x16xf32>
    tpu.vector_store %arg6[%c28_170, %c0_171], %189 {strides = array<i32>} : memref<36x16xf32, #tpu.memory_space<vmem>>, vector<4x16xf32>,
    %191 = vector.extract_strided_slice %174 {offsets = [0, 2], sizes = [4, 16], strides = [1, 1]} : vector<4x18xf32> to vector<4x16xf32>
    %c32_172 = arith.constant 32 : index
    %c0_173 = arith.constant 0 : index
    %192 = vector.load %arg6[%c32_172, %c0_173] : memref<36x16xf32, #tpu.memory_space<vmem>>, vector<4x16xf32>
    tpu.vector_store %arg6[%c32_172, %c0_173], %191 {strides = array<i32>} : memref<36x16xf32, #tpu.memory_space<vmem>>, vector<4x16xf32>,
    %c0_174 = arith.constant 0 : index
    %c0_175 = arith.constant 0 : index
    %193 = vector.load %arg6[%c0_174, %c0_175] : memref<36x16xf32, #tpu.memory_space<vmem>>, vector<36x16xf32>
    %cst_176 = arith.constant dense<0.000000e+00> : vector<8x16xf32>
    %194 = tpu.matmul %1, %193, %cst_176 {dimension_numbers = #tpu.dot_dimension_numbers<[1], [0], [0], [1], [0, 0, 1, 1], [], []>} : vector<8x36xf32>, vector<36x16xf32>, vector<8x16xf32> -> vector<8x16xf32>
    %c0_177 = arith.constant 0 : index
    %c64 = arith.constant 64 : index
    %195 = vector.load %arg7[%c0_177, %c64] : memref<8x128xf32, #tpu.memory_space<vmem>>, vector<8x16xf32>
    tpu.vector_store %arg7[%c0_177, %c64], %194 {strides = array<i32>} : memref<8x128xf32, #tpu.memory_space<vmem>>, vector<8x16xf32>,
    %c5_i32 = arith.constant 5 : i32
    %196 = arith.addi %0, %c5_i32 : i32
    %c0_i32_178 = arith.constant 0 : i32
    %197 = arith.addi %196, %c0_i32_178 : i32
    %c0_179 = arith.constant 0 : index
    %198 = arith.index_cast %197 : i32 to index
    %c0_180 = arith.constant 0 : index
    %c0_181 = arith.constant 0 : index
    %199 = vector.load %arg2[%c0_179, %198, %c0_180, %c0_181] : memref<1x18x4x18xf32, #tpu.memory_space<vmem>>, vector<1x1x4x18xf32>
    %200 = vector.shape_cast %199 : vector<1x1x4x18xf32> to vector<4x18xf32>
    %c5_i32_182 = arith.constant 5 : i32
    %201 = arith.addi %0, %c5_i32_182 : i32
    %c1_i32_183 = arith.constant 1 : i32
    %202 = arith.addi %201, %c1_i32_183 : i32
    %c0_184 = arith.constant 0 : index
    %203 = arith.index_cast %202 : i32 to index
    %c0_185 = arith.constant 0 : index
    %c0_186 = arith.constant 0 : index
    %204 = vector.load %arg2[%c0_184, %203, %c0_185, %c0_186] : memref<1x18x4x18xf32, #tpu.memory_space<vmem>>, vector<1x1x4x18xf32>
    %205 = vector.shape_cast %204 : vector<1x1x4x18xf32> to vector<4x18xf32>
    %c5_i32_187 = arith.constant 5 : i32
    %206 = arith.addi %0, %c5_i32_187 : i32
    %c2_i32_188 = arith.constant 2 : i32
    %207 = arith.addi %206, %c2_i32_188 : i32
    %c0_189 = arith.constant 0 : index
    %208 = arith.index_cast %207 : i32 to index
    %c0_190 = arith.constant 0 : index
    %c0_191 = arith.constant 0 : index
    %209 = vector.load %arg2[%c0_189, %208, %c0_190, %c0_191] : memref<1x18x4x18xf32, #tpu.memory_space<vmem>>, vector<1x1x4x18xf32>
    %210 = vector.shape_cast %209 : vector<1x1x4x18xf32> to vector<4x18xf32>
    %211 = vector.extract_strided_slice %200 {offsets = [0, 0], sizes = [4, 16], strides = [1, 1]} : vector<4x18xf32> to vector<4x16xf32>
    %c0_192 = arith.constant 0 : index
    %c0_193 = arith.constant 0 : index
    %212 = vector.load %arg6[%c0_192, %c0_193] : memref<36x16xf32, #tpu.memory_space<vmem>>, vector<4x16xf32>
    tpu.vector_store %arg6[%c0_192, %c0_193], %211 {strides = array<i32>} : memref<36x16xf32, #tpu.memory_space<vmem>>, vector<4x16xf32>,
    %213 = vector.extract_strided_slice %200 {offsets = [0, 1], sizes = [4, 16], strides = [1, 1]} : vector<4x18xf32> to vector<4x16xf32>
    %c4_194 = arith.constant 4 : index
    %c0_195 = arith.constant 0 : index
    %214 = vector.load %arg6[%c4_194, %c0_195] : memref<36x16xf32, #tpu.memory_space<vmem>>, vector<4x16xf32>
    tpu.vector_store %arg6[%c4_194, %c0_195], %213 {strides = array<i32>} : memref<36x16xf32, #tpu.memory_space<vmem>>, vector<4x16xf32>,
    %215 = vector.extract_strided_slice %200 {offsets = [0, 2], sizes = [4, 16], strides = [1, 1]} : vector<4x18xf32> to vector<4x16xf32>
    %c8_196 = arith.constant 8 : index
    %c0_197 = arith.constant 0 : index
    %216 = vector.load %arg6[%c8_196, %c0_197] : memref<36x16xf32, #tpu.memory_space<vmem>>, vector<4x16xf32>
    tpu.vector_store %arg6[%c8_196, %c0_197], %215 {strides = array<i32>} : memref<36x16xf32, #tpu.memory_space<vmem>>, vector<4x16xf32>,
    %217 = vector.extract_strided_slice %205 {offsets = [0, 0], sizes = [4, 16], strides = [1, 1]} : vector<4x18xf32> to vector<4x16xf32>
    %c12_198 = arith.constant 12 : index
    %c0_199 = arith.constant 0 : index
    %218 = vector.load %arg6[%c12_198, %c0_199] : memref<36x16xf32, #tpu.memory_space<vmem>>, vector<4x16xf32>
    tpu.vector_store %arg6[%c12_198, %c0_199], %217 {strides = array<i32>} : memref<36x16xf32, #tpu.memory_space<vmem>>, vector<4x16xf32>,
    %219 = vector.extract_strided_slice %205 {offsets = [0, 1], sizes = [4, 16], strides = [1, 1]} : vector<4x18xf32> to vector<4x16xf32>
    %c16_200 = arith.constant 16 : index
    %c0_201 = arith.constant 0 : index
    %220 = vector.load %arg6[%c16_200, %c0_201] : memref<36x16xf32, #tpu.memory_space<vmem>>, vector<4x16xf32>
    tpu.vector_store %arg6[%c16_200, %c0_201], %219 {strides = array<i32>} : memref<36x16xf32, #tpu.memory_space<vmem>>, vector<4x16xf32>,
    %221 = vector.extract_strided_slice %205 {offsets = [0, 2], sizes = [4, 16], strides = [1, 1]} : vector<4x18xf32> to vector<4x16xf32>
    %c20_202 = arith.constant 20 : index
    %c0_203 = arith.constant 0 : index
    %222 = vector.load %arg6[%c20_202, %c0_203] : memref<36x16xf32, #tpu.memory_space<vmem>>, vector<4x16xf32>
    tpu.vector_store %arg6[%c20_202, %c0_203], %221 {strides = array<i32>} : memref<36x16xf32, #tpu.memory_space<vmem>>, vector<4x16xf32>,
    %223 = vector.extract_strided_slice %210 {offsets = [0, 0], sizes = [4, 16], strides = [1, 1]} : vector<4x18xf32> to vector<4x16xf32>
    %c24_204 = arith.constant 24 : index
    %c0_205 = arith.constant 0 : index
    %224 = vector.load %arg6[%c24_204, %c0_205] : memref<36x16xf32, #tpu.memory_space<vmem>>, vector<4x16xf32>
    tpu.vector_store %arg6[%c24_204, %c0_205], %223 {strides = array<i32>} : memref<36x16xf32, #tpu.memory_space<vmem>>, vector<4x16xf32>,
    %225 = vector.extract_strided_slice %210 {offsets = [0, 1], sizes = [4, 16], strides = [1, 1]} : vector<4x18xf32> to vector<4x16xf32>
    %c28_206 = arith.constant 28 : index
    %c0_207 = arith.constant 0 : index
    %226 = vector.load %arg6[%c28_206, %c0_207] : memref<36x16xf32, #tpu.memory_space<vmem>>, vector<4x16xf32>
    tpu.vector_store %arg6[%c28_206, %c0_207], %225 {strides = array<i32>} : memref<36x16xf32, #tpu.memory_space<vmem>>, vector<4x16xf32>,
    %227 = vector.extract_strided_slice %210 {offsets = [0, 2], sizes = [4, 16], strides = [1, 1]} : vector<4x18xf32> to vector<4x16xf32>
    %c32_208 = arith.constant 32 : index
    %c0_209 = arith.constant 0 : index
    %228 = vector.load %arg6[%c32_208, %c0_209] : memref<36x16xf32, #tpu.memory_space<vmem>>, vector<4x16xf32>
    tpu.vector_store %arg6[%c32_208, %c0_209], %227 {strides = array<i32>} : memref<36x16xf32, #tpu.memory_space<vmem>>, vector<4x16xf32>,
    %c0_210 = arith.constant 0 : index
    %c0_211 = arith.constant 0 : index
    %229 = vector.load %arg6[%c0_210, %c0_211] : memref<36x16xf32, #tpu.memory_space<vmem>>, vector<36x16xf32>
    %cst_212 = arith.constant dense<0.000000e+00> : vector<8x16xf32>
    %230 = tpu.matmul %1, %229, %cst_212 {dimension_numbers = #tpu.dot_dimension_numbers<[1], [0], [0], [1], [0, 0, 1, 1], [], []>} : vector<8x36xf32>, vector<36x16xf32>, vector<8x16xf32> -> vector<8x16xf32>
    %c0_213 = arith.constant 0 : index
    %c80 = arith.constant 80 : index
    %231 = vector.load %arg7[%c0_213, %c80] : memref<8x128xf32, #tpu.memory_space<vmem>>, vector<8x16xf32>
    tpu.vector_store %arg7[%c0_213, %c80], %230 {strides = array<i32>} : memref<8x128xf32, #tpu.memory_space<vmem>>, vector<8x16xf32>,
    %c6_i32 = arith.constant 6 : i32
    %232 = arith.addi %0, %c6_i32 : i32
    %c0_i32_214 = arith.constant 0 : i32
    %233 = arith.addi %232, %c0_i32_214 : i32
    %c0_215 = arith.constant 0 : index
    %234 = arith.index_cast %233 : i32 to index
    %c0_216 = arith.constant 0 : index
    %c0_217 = arith.constant 0 : index
    %235 = vector.load %arg2[%c0_215, %234, %c0_216, %c0_217] : memref<1x18x4x18xf32, #tpu.memory_space<vmem>>, vector<1x1x4x18xf32>
    %236 = vector.shape_cast %235 : vector<1x1x4x18xf32> to vector<4x18xf32>
    %c6_i32_218 = arith.constant 6 : i32
    %237 = arith.addi %0, %c6_i32_218 : i32
    %c1_i32_219 = arith.constant 1 : i32
    %238 = arith.addi %237, %c1_i32_219 : i32
    %c0_220 = arith.constant 0 : index
    %239 = arith.index_cast %238 : i32 to index
    %c0_221 = arith.constant 0 : index
    %c0_222 = arith.constant 0 : index
    %240 = vector.load %arg2[%c0_220, %239, %c0_221, %c0_222] : memref<1x18x4x18xf32, #tpu.memory_space<vmem>>, vector<1x1x4x18xf32>
    %241 = vector.shape_cast %240 : vector<1x1x4x18xf32> to vector<4x18xf32>
    %c6_i32_223 = arith.constant 6 : i32
    %242 = arith.addi %0, %c6_i32_223 : i32
    %c2_i32_224 = arith.constant 2 : i32
    %243 = arith.addi %242, %c2_i32_224 : i32
    %c0_225 = arith.constant 0 : index
    %244 = arith.index_cast %243 : i32 to index
    %c0_226 = arith.constant 0 : index
    %c0_227 = arith.constant 0 : index
    %245 = vector.load %arg2[%c0_225, %244, %c0_226, %c0_227] : memref<1x18x4x18xf32, #tpu.memory_space<vmem>>, vector<1x1x4x18xf32>
    %246 = vector.shape_cast %245 : vector<1x1x4x18xf32> to vector<4x18xf32>
    %247 = vector.extract_strided_slice %236 {offsets = [0, 0], sizes = [4, 16], strides = [1, 1]} : vector<4x18xf32> to vector<4x16xf32>
    %c0_228 = arith.constant 0 : index
    %c0_229 = arith.constant 0 : index
    %248 = vector.load %arg6[%c0_228, %c0_229] : memref<36x16xf32, #tpu.memory_space<vmem>>, vector<4x16xf32>
    tpu.vector_store %arg6[%c0_228, %c0_229], %247 {strides = array<i32>} : memref<36x16xf32, #tpu.memory_space<vmem>>, vector<4x16xf32>,
    %249 = vector.extract_strided_slice %236 {offsets = [0, 1], sizes = [4, 16], strides = [1, 1]} : vector<4x18xf32> to vector<4x16xf32>
    %c4_230 = arith.constant 4 : index
    %c0_231 = arith.constant 0 : index
    %250 = vector.load %arg6[%c4_230, %c0_231] : memref<36x16xf32, #tpu.memory_space<vmem>>, vector<4x16xf32>
    tpu.vector_store %arg6[%c4_230, %c0_231], %249 {strides = array<i32>} : memref<36x16xf32, #tpu.memory_space<vmem>>, vector<4x16xf32>,
    %251 = vector.extract_strided_slice %236 {offsets = [0, 2], sizes = [4, 16], strides = [1, 1]} : vector<4x18xf32> to vector<4x16xf32>
    %c8_232 = arith.constant 8 : index
    %c0_233 = arith.constant 0 : index
    %252 = vector.load %arg6[%c8_232, %c0_233] : memref<36x16xf32, #tpu.memory_space<vmem>>, vector<4x16xf32>
    tpu.vector_store %arg6[%c8_232, %c0_233], %251 {strides = array<i32>} : memref<36x16xf32, #tpu.memory_space<vmem>>, vector<4x16xf32>,
    %253 = vector.extract_strided_slice %241 {offsets = [0, 0], sizes = [4, 16], strides = [1, 1]} : vector<4x18xf32> to vector<4x16xf32>
    %c12_234 = arith.constant 12 : index
    %c0_235 = arith.constant 0 : index
    %254 = vector.load %arg6[%c12_234, %c0_235] : memref<36x16xf32, #tpu.memory_space<vmem>>, vector<4x16xf32>
    tpu.vector_store %arg6[%c12_234, %c0_235], %253 {strides = array<i32>} : memref<36x16xf32, #tpu.memory_space<vmem>>, vector<4x16xf32>,
    %255 = vector.extract_strided_slice %241 {offsets = [0, 1], sizes = [4, 16], strides = [1, 1]} : vector<4x18xf32> to vector<4x16xf32>
    %c16_236 = arith.constant 16 : index
    %c0_237 = arith.constant 0 : index
    %256 = vector.load %arg6[%c16_236, %c0_237] : memref<36x16xf32, #tpu.memory_space<vmem>>, vector<4x16xf32>
    tpu.vector_store %arg6[%c16_236, %c0_237], %255 {strides = array<i32>} : memref<36x16xf32, #tpu.memory_space<vmem>>, vector<4x16xf32>,
    %257 = vector.extract_strided_slice %241 {offsets = [0, 2], sizes = [4, 16], strides = [1, 1]} : vector<4x18xf32> to vector<4x16xf32>
    %c20_238 = arith.constant 20 : index
    %c0_239 = arith.constant 0 : index
    %258 = vector.load %arg6[%c20_238, %c0_239] : memref<36x16xf32, #tpu.memory_space<vmem>>, vector<4x16xf32>
    tpu.vector_store %arg6[%c20_238, %c0_239], %257 {strides = array<i32>} : memref<36x16xf32, #tpu.memory_space<vmem>>, vector<4x16xf32>,
    %259 = vector.extract_strided_slice %246 {offsets = [0, 0], sizes = [4, 16], strides = [1, 1]} : vector<4x18xf32> to vector<4x16xf32>
    %c24_240 = arith.constant 24 : index
    %c0_241 = arith.constant 0 : index
    %260 = vector.load %arg6[%c24_240, %c0_241] : memref<36x16xf32, #tpu.memory_space<vmem>>, vector<4x16xf32>
    tpu.vector_store %arg6[%c24_240, %c0_241], %259 {strides = array<i32>} : memref<36x16xf32, #tpu.memory_space<vmem>>, vector<4x16xf32>,
    %261 = vector.extract_strided_slice %246 {offsets = [0, 1], sizes = [4, 16], strides = [1, 1]} : vector<4x18xf32> to vector<4x16xf32>
    %c28_242 = arith.constant 28 : index
    %c0_243 = arith.constant 0 : index
    %262 = vector.load %arg6[%c28_242, %c0_243] : memref<36x16xf32, #tpu.memory_space<vmem>>, vector<4x16xf32>
    tpu.vector_store %arg6[%c28_242, %c0_243], %261 {strides = array<i32>} : memref<36x16xf32, #tpu.memory_space<vmem>>, vector<4x16xf32>,
    %263 = vector.extract_strided_slice %246 {offsets = [0, 2], sizes = [4, 16], strides = [1, 1]} : vector<4x18xf32> to vector<4x16xf32>
    %c32_244 = arith.constant 32 : index
    %c0_245 = arith.constant 0 : index
    %264 = vector.load %arg6[%c32_244, %c0_245] : memref<36x16xf32, #tpu.memory_space<vmem>>, vector<4x16xf32>
    tpu.vector_store %arg6[%c32_244, %c0_245], %263 {strides = array<i32>} : memref<36x16xf32, #tpu.memory_space<vmem>>, vector<4x16xf32>,
    %c0_246 = arith.constant 0 : index
    %c0_247 = arith.constant 0 : index
    %265 = vector.load %arg6[%c0_246, %c0_247] : memref<36x16xf32, #tpu.memory_space<vmem>>, vector<36x16xf32>
    %cst_248 = arith.constant dense<0.000000e+00> : vector<8x16xf32>
    %266 = tpu.matmul %1, %265, %cst_248 {dimension_numbers = #tpu.dot_dimension_numbers<[1], [0], [0], [1], [0, 0, 1, 1], [], []>} : vector<8x36xf32>, vector<36x16xf32>, vector<8x16xf32> -> vector<8x16xf32>
    %c0_249 = arith.constant 0 : index
    %c96 = arith.constant 96 : index
    %267 = vector.load %arg7[%c0_249, %c96] : memref<8x128xf32, #tpu.memory_space<vmem>>, vector<8x16xf32>
    tpu.vector_store %arg7[%c0_249, %c96], %266 {strides = array<i32>} : memref<8x128xf32, #tpu.memory_space<vmem>>, vector<8x16xf32>,
    %c7_i32 = arith.constant 7 : i32
    %268 = arith.addi %0, %c7_i32 : i32
    %c0_i32_250 = arith.constant 0 : i32
    %269 = arith.addi %268, %c0_i32_250 : i32
    %c0_251 = arith.constant 0 : index
    %270 = arith.index_cast %269 : i32 to index
    %c0_252 = arith.constant 0 : index
    %c0_253 = arith.constant 0 : index
    %271 = vector.load %arg2[%c0_251, %270, %c0_252, %c0_253] : memref<1x18x4x18xf32, #tpu.memory_space<vmem>>, vector<1x1x4x18xf32>
    %272 = vector.shape_cast %271 : vector<1x1x4x18xf32> to vector<4x18xf32>
    %c7_i32_254 = arith.constant 7 : i32
    %273 = arith.addi %0, %c7_i32_254 : i32
    %c1_i32_255 = arith.constant 1 : i32
    %274 = arith.addi %273, %c1_i32_255 : i32
    %c0_256 = arith.constant 0 : index
    %275 = arith.index_cast %274 : i32 to index
    %c0_257 = arith.constant 0 : index
    %c0_258 = arith.constant 0 : index
    %276 = vector.load %arg2[%c0_256, %275, %c0_257, %c0_258] : memref<1x18x4x18xf32, #tpu.memory_space<vmem>>, vector<1x1x4x18xf32>
    %277 = vector.shape_cast %276 : vector<1x1x4x18xf32> to vector<4x18xf32>
    %c7_i32_259 = arith.constant 7 : i32
    %278 = arith.addi %0, %c7_i32_259 : i32
    %c2_i32_260 = arith.constant 2 : i32
    %279 = arith.addi %278, %c2_i32_260 : i32
    %c0_261 = arith.constant 0 : index
    %280 = arith.index_cast %279 : i32 to index
    %c0_262 = arith.constant 0 : index
    %c0_263 = arith.constant 0 : index
    %281 = vector.load %arg2[%c0_261, %280, %c0_262, %c0_263] : memref<1x18x4x18xf32, #tpu.memory_space<vmem>>, vector<1x1x4x18xf32>
    %282 = vector.shape_cast %281 : vector<1x1x4x18xf32> to vector<4x18xf32>
    %283 = vector.extract_strided_slice %272 {offsets = [0, 0], sizes = [4, 16], strides = [1, 1]} : vector<4x18xf32> to vector<4x16xf32>
    %c0_264 = arith.constant 0 : index
    %c0_265 = arith.constant 0 : index
    %284 = vector.load %arg6[%c0_264, %c0_265] : memref<36x16xf32, #tpu.memory_space<vmem>>, vector<4x16xf32>
    tpu.vector_store %arg6[%c0_264, %c0_265], %283 {strides = array<i32>} : memref<36x16xf32, #tpu.memory_space<vmem>>, vector<4x16xf32>,
    %285 = vector.extract_strided_slice %272 {offsets = [0, 1], sizes = [4, 16], strides = [1, 1]} : vector<4x18xf32> to vector<4x16xf32>
    %c4_266 = arith.constant 4 : index
    %c0_267 = arith.constant 0 : index
    %286 = vector.load %arg6[%c4_266, %c0_267] : memref<36x16xf32, #tpu.memory_space<vmem>>, vector<4x16xf32>
    tpu.vector_store %arg6[%c4_266, %c0_267], %285 {strides = array<i32>} : memref<36x16xf32, #tpu.memory_space<vmem>>, vector<4x16xf32>,
    %287 = vector.extract_strided_slice %272 {offsets = [0, 2], sizes = [4, 16], strides = [1, 1]} : vector<4x18xf32> to vector<4x16xf32>
    %c8_268 = arith.constant 8 : index
    %c0_269 = arith.constant 0 : index
    %288 = vector.load %arg6[%c8_268, %c0_269] : memref<36x16xf32, #tpu.memory_space<vmem>>, vector<4x16xf32>
    tpu.vector_store %arg6[%c8_268, %c0_269], %287 {strides = array<i32>} : memref<36x16xf32, #tpu.memory_space<vmem>>, vector<4x16xf32>,
    %289 = vector.extract_strided_slice %277 {offsets = [0, 0], sizes = [4, 16], strides = [1, 1]} : vector<4x18xf32> to vector<4x16xf32>
    %c12_270 = arith.constant 12 : index
    %c0_271 = arith.constant 0 : index
    %290 = vector.load %arg6[%c12_270, %c0_271] : memref<36x16xf32, #tpu.memory_space<vmem>>, vector<4x16xf32>
    tpu.vector_store %arg6[%c12_270, %c0_271], %289 {strides = array<i32>} : memref<36x16xf32, #tpu.memory_space<vmem>>, vector<4x16xf32>,
    %291 = vector.extract_strided_slice %277 {offsets = [0, 1], sizes = [4, 16], strides = [1, 1]} : vector<4x18xf32> to vector<4x16xf32>
    %c16_272 = arith.constant 16 : index
    %c0_273 = arith.constant 0 : index
    %292 = vector.load %arg6[%c16_272, %c0_273] : memref<36x16xf32, #tpu.memory_space<vmem>>, vector<4x16xf32>
    tpu.vector_store %arg6[%c16_272, %c0_273], %291 {strides = array<i32>} : memref<36x16xf32, #tpu.memory_space<vmem>>, vector<4x16xf32>,
    %293 = vector.extract_strided_slice %277 {offsets = [0, 2], sizes = [4, 16], strides = [1, 1]} : vector<4x18xf32> to vector<4x16xf32>
    %c20_274 = arith.constant 20 : index
    %c0_275 = arith.constant 0 : index
    %294 = vector.load %arg6[%c20_274, %c0_275] : memref<36x16xf32, #tpu.memory_space<vmem>>, vector<4x16xf32>
    tpu.vector_store %arg6[%c20_274, %c0_275], %293 {strides = array<i32>} : memref<36x16xf32, #tpu.memory_space<vmem>>, vector<4x16xf32>,
    %295 = vector.extract_strided_slice %282 {offsets = [0, 0], sizes = [4, 16], strides = [1, 1]} : vector<4x18xf32> to vector<4x16xf32>
    %c24_276 = arith.constant 24 : index
    %c0_277 = arith.constant 0 : index
    %296 = vector.load %arg6[%c24_276, %c0_277] : memref<36x16xf32, #tpu.memory_space<vmem>>, vector<4x16xf32>
    tpu.vector_store %arg6[%c24_276, %c0_277], %295 {strides = array<i32>} : memref<36x16xf32, #tpu.memory_space<vmem>>, vector<4x16xf32>,
    %297 = vector.extract_strided_slice %282 {offsets = [0, 1], sizes = [4, 16], strides = [1, 1]} : vector<4x18xf32> to vector<4x16xf32>
    %c28_278 = arith.constant 28 : index
    %c0_279 = arith.constant 0 : index
    %298 = vector.load %arg6[%c28_278, %c0_279] : memref<36x16xf32, #tpu.memory_space<vmem>>, vector<4x16xf32>
    tpu.vector_store %arg6[%c28_278, %c0_279], %297 {strides = array<i32>} : memref<36x16xf32, #tpu.memory_space<vmem>>, vector<4x16xf32>,
    %299 = vector.extract_strided_slice %282 {offsets = [0, 2], sizes = [4, 16], strides = [1, 1]} : vector<4x18xf32> to vector<4x16xf32>
    %c32_280 = arith.constant 32 : index
    %c0_281 = arith.constant 0 : index
    %300 = vector.load %arg6[%c32_280, %c0_281] : memref<36x16xf32, #tpu.memory_space<vmem>>, vector<4x16xf32>
    tpu.vector_store %arg6[%c32_280, %c0_281], %299 {strides = array<i32>} : memref<36x16xf32, #tpu.memory_space<vmem>>, vector<4x16xf32>,
    %c0_282 = arith.constant 0 : index
    %c0_283 = arith.constant 0 : index
    %301 = vector.load %arg6[%c0_282, %c0_283] : memref<36x16xf32, #tpu.memory_space<vmem>>, vector<36x16xf32>
    %cst_284 = arith.constant dense<0.000000e+00> : vector<8x16xf32>
    %302 = tpu.matmul %1, %301, %cst_284 {dimension_numbers = #tpu.dot_dimension_numbers<[1], [0], [0], [1], [0, 0, 1, 1], [], []>} : vector<8x36xf32>, vector<36x16xf32>, vector<8x16xf32> -> vector<8x16xf32>
    %c0_285 = arith.constant 0 : index
    %c112 = arith.constant 112 : index
    %303 = vector.load %arg7[%c0_285, %c112] : memref<8x128xf32, #tpu.memory_space<vmem>>, vector<8x16xf32>
    tpu.vector_store %arg7[%c0_285, %c112], %302 {strides = array<i32>} : memref<8x128xf32, #tpu.memory_space<vmem>>, vector<8x16xf32>,
    %cst_286 = arith.constant 0.000000e+00 : f32
    %304 = vector.broadcast %cst_286 : f32 to vector<2x1xf32>
    %cst_287 = arith.constant 0.000000e+00 : f32
    %305 = vector.broadcast %cst_287 : f32 to vector<2x1xf32>
    %c0_288 = arith.constant 0 : index
    %c0_289 = arith.constant 0 : index
    %306 = vector.load %arg7[%c0_288, %c0_289] : memref<8x128xf32, #tpu.memory_space<vmem>>, vector<2x128xf32>
    %cst_290 = arith.constant dense<0.000000e+00> : vector<2xf32>
    %307 = vector.multi_reduction <add>, %306, %cst_290 [1] : vector<2x128xf32> to vector<2xf32>
    %308 = vector.shape_cast %307 : vector<2xf32> to vector<2x1xf32>
    %309 = arith.addf %304, %308 : vector<2x1xf32>
    %310 = arith.mulf %306, %306 : vector<2x128xf32>
    %cst_291 = arith.constant dense<0.000000e+00> : vector<2xf32>
    %311 = vector.multi_reduction <add>, %310, %cst_291 [1] : vector<2x128xf32> to vector<2xf32>
    %312 = vector.shape_cast %311 : vector<2xf32> to vector<2x1xf32>
    %313 = arith.addf %305, %312 : vector<2x1xf32>
    %c2 = arith.constant 2 : index
    %c0_292 = arith.constant 0 : index
    %314 = vector.load %arg7[%c2, %c0_292] : memref<8x128xf32, #tpu.memory_space<vmem>>, vector<2x128xf32>
    %cst_293 = arith.constant dense<0.000000e+00> : vector<2xf32>
    %315 = vector.multi_reduction <add>, %314, %cst_293 [1] : vector<2x128xf32> to vector<2xf32>
    %316 = vector.shape_cast %315 : vector<2xf32> to vector<2x1xf32>
    %317 = arith.addf %309, %316 : vector<2x1xf32>
    %318 = arith.mulf %314, %314 : vector<2x128xf32>
    %cst_294 = arith.constant dense<0.000000e+00> : vector<2xf32>
    %319 = vector.multi_reduction <add>, %318, %cst_294 [1] : vector<2x128xf32> to vector<2xf32>
    %320 = vector.shape_cast %319 : vector<2xf32> to vector<2x1xf32>
    %321 = arith.addf %313, %320 : vector<2x1xf32>
    %cst_295 = arith.constant dense<0.000000e+00> : vector<2x256xf32>
    %322 = tpu.matmul %306, %8, %cst_295 {dimension_numbers = #tpu.dot_dimension_numbers<[1], [0], [0], [1], [0, 0, 1, 1], [], []>} : vector<2x128xf32>, vector<128x256xf32>, vector<2x256xf32> -> vector<2x256xf32>
    %cst_296 = arith.constant dense<0.000000e+00> : vector<2x256xf32>
    %323 = tpu.matmul %314, %15, %cst_296 {dimension_numbers = #tpu.dot_dimension_numbers<[1], [0], [0], [1], [0, 0, 1, 1], [], []>} : vector<2x128xf32>, vector<128x256xf32>, vector<2x256xf32> -> vector<2x256xf32>
    %324 = arith.addf %322, %323 : vector<2x256xf32>
    %c0_297 = arith.constant 0 : index
    %c0_298 = arith.constant 0 : index
    %c0_299 = arith.constant 0 : index
    %c0_300 = arith.constant 0 : index
    %c0_301 = arith.constant 0 : index
    %325 = vector.load %arg4[%c0_297, %c0_298, %c0_299, %c0_300, %c0_301] : memref<2x1x1x2x256xf32, #tpu.memory_space<vmem>>, vector<1x1x1x2x256xf32>
    %326 = vector.shape_cast %325 : vector<1x1x1x2x256xf32> to vector<2x256xf32>
    %327 = vector.shape_cast %324 : vector<2x256xf32> to vector<1x1x1x2x256xf32>
    tpu.vector_store %arg4[%c0_297, %c0_298, %c0_299, %c0_300, %c0_301], %327 {strides = array<i32>} : memref<2x1x1x2x256xf32, #tpu.memory_space<vmem>>, vector<1x1x1x2x256xf32>,
    %c4_302 = arith.constant 4 : index
    %c0_303 = arith.constant 0 : index
    %328 = vector.load %arg7[%c4_302, %c0_303] : memref<8x128xf32, #tpu.memory_space<vmem>>, vector<2x128xf32>
    %cst_304 = arith.constant dense<0.000000e+00> : vector<2xf32>
    %329 = vector.multi_reduction <add>, %328, %cst_304 [1] : vector<2x128xf32> to vector<2xf32>
    %330 = vector.shape_cast %329 : vector<2xf32> to vector<2x1xf32>
    %331 = arith.addf %317, %330 : vector<2x1xf32>
    %332 = arith.mulf %328, %328 : vector<2x128xf32>
    %cst_305 = arith.constant dense<0.000000e+00> : vector<2xf32>
    %333 = vector.multi_reduction <add>, %332, %cst_305 [1] : vector<2x128xf32> to vector<2xf32>
    %334 = vector.shape_cast %333 : vector<2xf32> to vector<2x1xf32>
    %335 = arith.addf %321, %334 : vector<2x1xf32>
    %c6 = arith.constant 6 : index
    %c0_306 = arith.constant 0 : index
    %336 = vector.load %arg7[%c6, %c0_306] : memref<8x128xf32, #tpu.memory_space<vmem>>, vector<2x128xf32>
    %cst_307 = arith.constant dense<0.000000e+00> : vector<2xf32>
    %337 = vector.multi_reduction <add>, %336, %cst_307 [1] : vector<2x128xf32> to vector<2xf32>
    %338 = vector.shape_cast %337 : vector<2xf32> to vector<2x1xf32>
    %339 = arith.addf %331, %338 : vector<2x1xf32>
    %340 = arith.mulf %336, %336 : vector<2x128xf32>
    %cst_308 = arith.constant dense<0.000000e+00> : vector<2xf32>
    %341 = vector.multi_reduction <add>, %340, %cst_308 [1] : vector<2x128xf32> to vector<2xf32>
    %342 = vector.shape_cast %341 : vector<2xf32> to vector<2x1xf32>
    %343 = arith.addf %335, %342 : vector<2x1xf32>
    %cst_309 = arith.constant dense<0.000000e+00> : vector<2x256xf32>
    %344 = tpu.matmul %328, %8, %cst_309 {dimension_numbers = #tpu.dot_dimension_numbers<[1], [0], [0], [1], [0, 0, 1, 1], [], []>} : vector<2x128xf32>, vector<128x256xf32>, vector<2x256xf32> -> vector<2x256xf32>
    %cst_310 = arith.constant dense<0.000000e+00> : vector<2x256xf32>
    %345 = tpu.matmul %336, %15, %cst_310 {dimension_numbers = #tpu.dot_dimension_numbers<[1], [0], [0], [1], [0, 0, 1, 1], [], []>} : vector<2x128xf32>, vector<128x256xf32>, vector<2x256xf32> -> vector<2x256xf32>
    %346 = arith.addf %344, %345 : vector<2x256xf32>
    %c1 = arith.constant 1 : index
    %c0_311 = arith.constant 0 : index
    %c0_312 = arith.constant 0 : index
    %c0_313 = arith.constant 0 : index
    %c0_314 = arith.constant 0 : index
    %347 = vector.load %arg4[%c1, %c0_311, %c0_312, %c0_313, %c0_314] : memref<2x1x1x2x256xf32, #tpu.memory_space<vmem>>, vector<1x1x1x2x256xf32>
    %348 = vector.shape_cast %347 : vector<1x1x1x2x256xf32> to vector<2x256xf32>
    %349 = vector.shape_cast %346 : vector<2x256xf32> to vector<1x1x1x2x256xf32>
    tpu.vector_store %arg4[%c1, %c0_311, %c0_312, %c0_313, %c0_314], %349 {strides = array<i32>} : memref<2x1x1x2x256xf32, #tpu.memory_space<vmem>>, vector<1x1x1x2x256xf32>,
    %350 = tpu.concatenate %339, %343 in 1 : vector<2x1xf32>, vector<2x1xf32> -> vector<2x2xf32>
    %c0_315 = arith.constant 0 : index
    %c0_316 = arith.constant 0 : index
    %c0_317 = arith.constant 0 : index
    %c0_318 = arith.constant 0 : index
    %351 = vector.load %arg5[%c0_315, %c0_316, %c0_317, %c0_318] : memref<1x1x2x2xf32, #tpu.memory_space<vmem>>, vector<1x1x2x2xf32>
    %352 = vector.shape_cast %351 : vector<1x1x2x2xf32> to vector<2x2xf32>
    %353 = vector.shape_cast %350 : vector<2x2xf32> to vector<1x1x2x2xf32>
    tpu.vector_store %arg5[%c0_315, %c0_316, %c0_317, %c0_318], %353 {strides = array<i32>} : memref<1x1x2x2xf32, #tpu.memory_space<vmem>>, vector<1x1x2x2xf32>,
    return
  }
  func.func @transform_0(%arg0: i32, %arg1: i32) -> (i32, i32, i32, i32) {
    %c0_i32 = arith.constant 0 : i32
    %c0_i32_0 = arith.constant 0 : i32
    %c0_i32_1 = arith.constant 0 : i32
    %c0_i32_2 = arith.constant 0 : i32
    return %arg0, %c0_i32, %c0_i32_0, %c0_i32_1 : i32, i32, i32, i32
  }
  func.func @transform_1(%arg0: i32, %arg1: i32) -> (i32, i32) {
    %c0_i32 = arith.constant 0 : i32
    %c0_i32_0 = arith.constant 0 : i32
    %c0_i32_1 = arith.constant 0 : i32
    return %c0_i32, %c0_i32_0 : i32, i32
  }
  func.func @transform_2(%arg0: i32, %arg1: i32) -> (i32, i32, i32, i32, i32) {
    %c0_i32 = arith.constant 0 : i32
    %c0_i32_0 = arith.constant 0 : i32
    %c0_i32_1 = arith.constant 0 : i32
    %c0_i32_2 = arith.constant 0 : i32
    return %c0_i32, %arg0, %arg1, %c0_i32_0, %c0_i32_1 : i32, i32, i32, i32, i32
  }
  func.func @transform_3(%arg0: i32, %arg1: i32) -> (i32, i32, i32, i32) {
    %c0_i32 = arith.constant 0 : i32
    %c0_i32_0 = arith.constant 0 : i32
    %c0_i32_1 = arith.constant 0 : i32
    return %arg0, %arg1, %c0_i32, %c0_i32_0 : i32, i32, i32, i32
  }
}

module attributes {stable_mosaic.version = 11 : i64} {
  func.func @_bn_concat_kernel(%arg0: i32, %arg1: i32, %arg2: memref<2x1x1x2x256xf32, #tpu.memory_space<vmem>>, %arg3: memref<1x2x512xf32, #tpu.memory_space<vmem>>, %arg4: memref<2x1xf32, #tpu.memory_space<vmem>>, %arg5: memref<2x1xf32, #tpu.memory_space<vmem>>, %arg6: memref<1x4x512xf32, #tpu.memory_space<vmem>>) attributes {dimension_semantics = [#tpu.dimension_semantics<parallel>, #tpu.dimension_semantics<parallel>], iteration_bounds = array<i64: 2, 2>, scalar_prefetch = 0 : i64, scratch_operands = 0 : i64, tpu.core_type = #tpu.core_type<tc>, window_params = [{transform_indices = @transform_0, window_bounds = array<i64: 2, 1, 1, 2, 256>}, {transform_indices = @transform_1, window_bounds = array<i64: 1, 2, 512>}, {pipeline_mode = #tpu.pipeline_mode<synchronous>, transform_indices = @transform_2, window_bounds = array<i64: 2, 1>}, {pipeline_mode = #tpu.pipeline_mode<synchronous>, transform_indices = @transform_3, window_bounds = array<i64: 2, 1>}, {transform_indices = @transform_4, window_bounds = array<i64: 1, 4, 512>}]} {
    %c0 = arith.constant 0 : index
    %c0_0 = arith.constant 0 : index
    %0 = vector.load %arg4[%c0, %c0_0] : memref<2x1xf32, #tpu.memory_space<vmem>>, vector<2x1xf32>
    %c0_1 = arith.constant 0 : index
    %c0_2 = arith.constant 0 : index
    %1 = vector.load %arg5[%c0_1, %c0_2] : memref<2x1xf32, #tpu.memory_space<vmem>>, vector<2x1xf32>
    %c0_3 = arith.constant 0 : index
    %c0_4 = arith.constant 0 : index
    %c0_5 = arith.constant 0 : index
    %c0_6 = arith.constant 0 : index
    %c0_7 = arith.constant 0 : index
    %2 = vector.load %arg2[%c0_3, %c0_4, %c0_5, %c0_6, %c0_7] : memref<2x1x1x2x256xf32, #tpu.memory_space<vmem>>, vector<1x1x1x2x256xf32>
    %3 = vector.shape_cast %2 : vector<1x1x1x2x256xf32> to vector<2x256xf32>
    %4 = vector.broadcast %0 : vector<2x1xf32> to vector<2x256xf32>
    %5 = arith.mulf %3, %4 : vector<2x256xf32>
    %6 = vector.broadcast %1 : vector<2x1xf32> to vector<2x256xf32>
    %7 = arith.addf %5, %6 : vector<2x256xf32>
    %8 = vector.extract_strided_slice %7 {offsets = [0, 0], sizes = [2, 32], strides = [1, 1]} : vector<2x256xf32> to vector<2x32xf32>
    %c0_8 = arith.constant 0 : index
    %c0_9 = arith.constant 0 : index
    %c0_10 = arith.constant 0 : index
    %9 = vector.load %arg6[%c0_8, %c0_9, %c0_10] : memref<1x4x512xf32, #tpu.memory_space<vmem>>, vector<1x2x32xf32>
    %10 = vector.shape_cast %9 : vector<1x2x32xf32> to vector<2x32xf32>
    %11 = vector.shape_cast %8 : vector<2x32xf32> to vector<1x2x32xf32>
    tpu.vector_store %arg6[%c0_8, %c0_9, %c0_10], %11 {strides = array<i32>} : memref<1x4x512xf32, #tpu.memory_space<vmem>>, vector<1x2x32xf32>,
    %12 = vector.extract_strided_slice %7 {offsets = [0, 32], sizes = [2, 32], strides = [1, 1]} : vector<2x256xf32> to vector<2x32xf32>
    %c0_11 = arith.constant 0 : index
    %c0_12 = arith.constant 0 : index
    %c64 = arith.constant 64 : index
    %13 = vector.load %arg6[%c0_11, %c0_12, %c64] : memref<1x4x512xf32, #tpu.memory_space<vmem>>, vector<1x2x32xf32>
    %14 = vector.shape_cast %13 : vector<1x2x32xf32> to vector<2x32xf32>
    %15 = vector.shape_cast %12 : vector<2x32xf32> to vector<1x2x32xf32>
    tpu.vector_store %arg6[%c0_11, %c0_12, %c64], %15 {strides = array<i32>} : memref<1x4x512xf32, #tpu.memory_space<vmem>>, vector<1x2x32xf32>,
    %16 = vector.extract_strided_slice %7 {offsets = [0, 64], sizes = [2, 32], strides = [1, 1]} : vector<2x256xf32> to vector<2x32xf32>
    %c0_13 = arith.constant 0 : index
    %c0_14 = arith.constant 0 : index
    %c128 = arith.constant 128 : index
    %17 = vector.load %arg6[%c0_13, %c0_14, %c128] : memref<1x4x512xf32, #tpu.memory_space<vmem>>, vector<1x2x32xf32>
    %18 = vector.shape_cast %17 : vector<1x2x32xf32> to vector<2x32xf32>
    %19 = vector.shape_cast %16 : vector<2x32xf32> to vector<1x2x32xf32>
    tpu.vector_store %arg6[%c0_13, %c0_14, %c128], %19 {strides = array<i32>} : memref<1x4x512xf32, #tpu.memory_space<vmem>>, vector<1x2x32xf32>,
    %20 = vector.extract_strided_slice %7 {offsets = [0, 96], sizes = [2, 32], strides = [1, 1]} : vector<2x256xf32> to vector<2x32xf32>
    %c0_15 = arith.constant 0 : index
    %c0_16 = arith.constant 0 : index
    %c192 = arith.constant 192 : index
    %21 = vector.load %arg6[%c0_15, %c0_16, %c192] : memref<1x4x512xf32, #tpu.memory_space<vmem>>, vector<1x2x32xf32>
    %22 = vector.shape_cast %21 : vector<1x2x32xf32> to vector<2x32xf32>
    %23 = vector.shape_cast %20 : vector<2x32xf32> to vector<1x2x32xf32>
    tpu.vector_store %arg6[%c0_15, %c0_16, %c192], %23 {strides = array<i32>} : memref<1x4x512xf32, #tpu.memory_space<vmem>>, vector<1x2x32xf32>,
    %24 = vector.extract_strided_slice %7 {offsets = [0, 128], sizes = [2, 32], strides = [1, 1]} : vector<2x256xf32> to vector<2x32xf32>
    %c0_17 = arith.constant 0 : index
    %c0_18 = arith.constant 0 : index
    %c256 = arith.constant 256 : index
    %25 = vector.load %arg6[%c0_17, %c0_18, %c256] : memref<1x4x512xf32, #tpu.memory_space<vmem>>, vector<1x2x32xf32>
    %26 = vector.shape_cast %25 : vector<1x2x32xf32> to vector<2x32xf32>
    %27 = vector.shape_cast %24 : vector<2x32xf32> to vector<1x2x32xf32>
    tpu.vector_store %arg6[%c0_17, %c0_18, %c256], %27 {strides = array<i32>} : memref<1x4x512xf32, #tpu.memory_space<vmem>>, vector<1x2x32xf32>,
    %28 = vector.extract_strided_slice %7 {offsets = [0, 160], sizes = [2, 32], strides = [1, 1]} : vector<2x256xf32> to vector<2x32xf32>
    %c0_19 = arith.constant 0 : index
    %c0_20 = arith.constant 0 : index
    %c320 = arith.constant 320 : index
    %29 = vector.load %arg6[%c0_19, %c0_20, %c320] : memref<1x4x512xf32, #tpu.memory_space<vmem>>, vector<1x2x32xf32>
    %30 = vector.shape_cast %29 : vector<1x2x32xf32> to vector<2x32xf32>
    %31 = vector.shape_cast %28 : vector<2x32xf32> to vector<1x2x32xf32>
    tpu.vector_store %arg6[%c0_19, %c0_20, %c320], %31 {strides = array<i32>} : memref<1x4x512xf32, #tpu.memory_space<vmem>>, vector<1x2x32xf32>,
    %32 = vector.extract_strided_slice %7 {offsets = [0, 192], sizes = [2, 32], strides = [1, 1]} : vector<2x256xf32> to vector<2x32xf32>
    %c0_21 = arith.constant 0 : index
    %c0_22 = arith.constant 0 : index
    %c384 = arith.constant 384 : index
    %33 = vector.load %arg6[%c0_21, %c0_22, %c384] : memref<1x4x512xf32, #tpu.memory_space<vmem>>, vector<1x2x32xf32>
    %34 = vector.shape_cast %33 : vector<1x2x32xf32> to vector<2x32xf32>
    %35 = vector.shape_cast %32 : vector<2x32xf32> to vector<1x2x32xf32>
    tpu.vector_store %arg6[%c0_21, %c0_22, %c384], %35 {strides = array<i32>} : memref<1x4x512xf32, #tpu.memory_space<vmem>>, vector<1x2x32xf32>,
    %36 = vector.extract_strided_slice %7 {offsets = [0, 224], sizes = [2, 32], strides = [1, 1]} : vector<2x256xf32> to vector<2x32xf32>
    %c0_23 = arith.constant 0 : index
    %c0_24 = arith.constant 0 : index
    %c448 = arith.constant 448 : index
    %37 = vector.load %arg6[%c0_23, %c0_24, %c448] : memref<1x4x512xf32, #tpu.memory_space<vmem>>, vector<1x2x32xf32>
    %38 = vector.shape_cast %37 : vector<1x2x32xf32> to vector<2x32xf32>
    %39 = vector.shape_cast %36 : vector<2x32xf32> to vector<1x2x32xf32>
    tpu.vector_store %arg6[%c0_23, %c0_24, %c448], %39 {strides = array<i32>} : memref<1x4x512xf32, #tpu.memory_space<vmem>>, vector<1x2x32xf32>,
    %c1 = arith.constant 1 : index
    %c0_25 = arith.constant 0 : index
    %c0_26 = arith.constant 0 : index
    %c0_27 = arith.constant 0 : index
    %c0_28 = arith.constant 0 : index
    %40 = vector.load %arg2[%c1, %c0_25, %c0_26, %c0_27, %c0_28] : memref<2x1x1x2x256xf32, #tpu.memory_space<vmem>>, vector<1x1x1x2x256xf32>
    %41 = vector.shape_cast %40 : vector<1x1x1x2x256xf32> to vector<2x256xf32>
    %42 = vector.broadcast %0 : vector<2x1xf32> to vector<2x256xf32>
    %43 = arith.mulf %41, %42 : vector<2x256xf32>
    %44 = vector.broadcast %1 : vector<2x1xf32> to vector<2x256xf32>
    %45 = arith.addf %43, %44 : vector<2x256xf32>
    %46 = vector.extract_strided_slice %45 {offsets = [0, 0], sizes = [2, 32], strides = [1, 1]} : vector<2x256xf32> to vector<2x32xf32>
    %c0_29 = arith.constant 0 : index
    %c0_30 = arith.constant 0 : index
    %c32 = arith.constant 32 : index
    %47 = vector.load %arg6[%c0_29, %c0_30, %c32] : memref<1x4x512xf32, #tpu.memory_space<vmem>>, vector<1x2x32xf32>
    %48 = vector.shape_cast %47 : vector<1x2x32xf32> to vector<2x32xf32>
    %49 = vector.shape_cast %46 : vector<2x32xf32> to vector<1x2x32xf32>
    tpu.vector_store %arg6[%c0_29, %c0_30, %c32], %49 {strides = array<i32>} : memref<1x4x512xf32, #tpu.memory_space<vmem>>, vector<1x2x32xf32>,
    %50 = vector.extract_strided_slice %45 {offsets = [0, 32], sizes = [2, 32], strides = [1, 1]} : vector<2x256xf32> to vector<2x32xf32>
    %c0_31 = arith.constant 0 : index
    %c0_32 = arith.constant 0 : index
    %c96 = arith.constant 96 : index
    %51 = vector.load %arg6[%c0_31, %c0_32, %c96] : memref<1x4x512xf32, #tpu.memory_space<vmem>>, vector<1x2x32xf32>
    %52 = vector.shape_cast %51 : vector<1x2x32xf32> to vector<2x32xf32>
    %53 = vector.shape_cast %50 : vector<2x32xf32> to vector<1x2x32xf32>
    tpu.vector_store %arg6[%c0_31, %c0_32, %c96], %53 {strides = array<i32>} : memref<1x4x512xf32, #tpu.memory_space<vmem>>, vector<1x2x32xf32>,
    %54 = vector.extract_strided_slice %45 {offsets = [0, 64], sizes = [2, 32], strides = [1, 1]} : vector<2x256xf32> to vector<2x32xf32>
    %c0_33 = arith.constant 0 : index
    %c0_34 = arith.constant 0 : index
    %c160 = arith.constant 160 : index
    %55 = vector.load %arg6[%c0_33, %c0_34, %c160] : memref<1x4x512xf32, #tpu.memory_space<vmem>>, vector<1x2x32xf32>
    %56 = vector.shape_cast %55 : vector<1x2x32xf32> to vector<2x32xf32>
    %57 = vector.shape_cast %54 : vector<2x32xf32> to vector<1x2x32xf32>
    tpu.vector_store %arg6[%c0_33, %c0_34, %c160], %57 {strides = array<i32>} : memref<1x4x512xf32, #tpu.memory_space<vmem>>, vector<1x2x32xf32>,
    %58 = vector.extract_strided_slice %45 {offsets = [0, 96], sizes = [2, 32], strides = [1, 1]} : vector<2x256xf32> to vector<2x32xf32>
    %c0_35 = arith.constant 0 : index
    %c0_36 = arith.constant 0 : index
    %c224 = arith.constant 224 : index
    %59 = vector.load %arg6[%c0_35, %c0_36, %c224] : memref<1x4x512xf32, #tpu.memory_space<vmem>>, vector<1x2x32xf32>
    %60 = vector.shape_cast %59 : vector<1x2x32xf32> to vector<2x32xf32>
    %61 = vector.shape_cast %58 : vector<2x32xf32> to vector<1x2x32xf32>
    tpu.vector_store %arg6[%c0_35, %c0_36, %c224], %61 {strides = array<i32>} : memref<1x4x512xf32, #tpu.memory_space<vmem>>, vector<1x2x32xf32>,
    %62 = vector.extract_strided_slice %45 {offsets = [0, 128], sizes = [2, 32], strides = [1, 1]} : vector<2x256xf32> to vector<2x32xf32>
    %c0_37 = arith.constant 0 : index
    %c0_38 = arith.constant 0 : index
    %c288 = arith.constant 288 : index
    %63 = vector.load %arg6[%c0_37, %c0_38, %c288] : memref<1x4x512xf32, #tpu.memory_space<vmem>>, vector<1x2x32xf32>
    %64 = vector.shape_cast %63 : vector<1x2x32xf32> to vector<2x32xf32>
    %65 = vector.shape_cast %62 : vector<2x32xf32> to vector<1x2x32xf32>
    tpu.vector_store %arg6[%c0_37, %c0_38, %c288], %65 {strides = array<i32>} : memref<1x4x512xf32, #tpu.memory_space<vmem>>, vector<1x2x32xf32>,
    %66 = vector.extract_strided_slice %45 {offsets = [0, 160], sizes = [2, 32], strides = [1, 1]} : vector<2x256xf32> to vector<2x32xf32>
    %c0_39 = arith.constant 0 : index
    %c0_40 = arith.constant 0 : index
    %c352 = arith.constant 352 : index
    %67 = vector.load %arg6[%c0_39, %c0_40, %c352] : memref<1x4x512xf32, #tpu.memory_space<vmem>>, vector<1x2x32xf32>
    %68 = vector.shape_cast %67 : vector<1x2x32xf32> to vector<2x32xf32>
    %69 = vector.shape_cast %66 : vector<2x32xf32> to vector<1x2x32xf32>
    tpu.vector_store %arg6[%c0_39, %c0_40, %c352], %69 {strides = array<i32>} : memref<1x4x512xf32, #tpu.memory_space<vmem>>, vector<1x2x32xf32>,
    %70 = vector.extract_strided_slice %45 {offsets = [0, 192], sizes = [2, 32], strides = [1, 1]} : vector<2x256xf32> to vector<2x32xf32>
    %c0_41 = arith.constant 0 : index
    %c0_42 = arith.constant 0 : index
    %c416 = arith.constant 416 : index
    %71 = vector.load %arg6[%c0_41, %c0_42, %c416] : memref<1x4x512xf32, #tpu.memory_space<vmem>>, vector<1x2x32xf32>
    %72 = vector.shape_cast %71 : vector<1x2x32xf32> to vector<2x32xf32>
    %73 = vector.shape_cast %70 : vector<2x32xf32> to vector<1x2x32xf32>
    tpu.vector_store %arg6[%c0_41, %c0_42, %c416], %73 {strides = array<i32>} : memref<1x4x512xf32, #tpu.memory_space<vmem>>, vector<1x2x32xf32>,
    %74 = vector.extract_strided_slice %45 {offsets = [0, 224], sizes = [2, 32], strides = [1, 1]} : vector<2x256xf32> to vector<2x32xf32>
    %c0_43 = arith.constant 0 : index
    %c0_44 = arith.constant 0 : index
    %c480 = arith.constant 480 : index
    %75 = vector.load %arg6[%c0_43, %c0_44, %c480] : memref<1x4x512xf32, #tpu.memory_space<vmem>>, vector<1x2x32xf32>
    %76 = vector.shape_cast %75 : vector<1x2x32xf32> to vector<2x32xf32>
    %77 = vector.shape_cast %74 : vector<2x32xf32> to vector<1x2x32xf32>
    tpu.vector_store %arg6[%c0_43, %c0_44, %c480], %77 {strides = array<i32>} : memref<1x4x512xf32, #tpu.memory_space<vmem>>, vector<1x2x32xf32>,
    %c0_45 = arith.constant 0 : index
    %c0_46 = arith.constant 0 : index
    %c0_47 = arith.constant 0 : index
    %78 = vector.load %arg3[%c0_45, %c0_46, %c0_47] : memref<1x2x512xf32, #tpu.memory_space<vmem>>, vector<1x2x512xf32>
    %79 = vector.shape_cast %78 : vector<1x2x512xf32> to vector<2x512xf32>
    %c0_48 = arith.constant 0 : index
    %c2 = arith.constant 2 : index
    %c0_49 = arith.constant 0 : index
    %80 = vector.load %arg6[%c0_48, %c2, %c0_49] : memref<1x4x512xf32, #tpu.memory_space<vmem>>, vector<1x2x512xf32>
    %81 = vector.shape_cast %80 : vector<1x2x512xf32> to vector<2x512xf32>
    %82 = vector.shape_cast %79 : vector<2x512xf32> to vector<1x2x512xf32>
    tpu.vector_store %arg6[%c0_48, %c2, %c0_49], %82 {strides = array<i32>} : memref<1x4x512xf32, #tpu.memory_space<vmem>>, vector<1x2x512xf32>,
    return
  }
  func.func @transform_0(%arg0: i32, %arg1: i32) -> (i32, i32, i32, i32, i32) {
    %c0_i32 = arith.constant 0 : i32
    %c0_i32_0 = arith.constant 0 : i32
    %c0_i32_1 = arith.constant 0 : i32
    %c0_i32_2 = arith.constant 0 : i32
    return %c0_i32, %arg0, %arg1, %c0_i32_0, %c0_i32_1 : i32, i32, i32, i32, i32
  }
  func.func @transform_1(%arg0: i32, %arg1: i32) -> (i32, i32, i32) {
    %c0_i32 = arith.constant 0 : i32
    %c0_i32_0 = arith.constant 0 : i32
    return %arg0, %c0_i32, %arg1 : i32, i32, i32
  }
  func.func @transform_2(%arg0: i32, %arg1: i32) -> (i32, i32) {
    %c0_i32 = arith.constant 0 : i32
    %c0_i32_0 = arith.constant 0 : i32
    %c0_i32_1 = arith.constant 0 : i32
    return %c0_i32, %c0_i32_0 : i32, i32
  }
  func.func @transform_3(%arg0: i32, %arg1: i32) -> (i32, i32) {
    %c0_i32 = arith.constant 0 : i32
    %c0_i32_0 = arith.constant 0 : i32
    %c0_i32_1 = arith.constant 0 : i32
    return %c0_i32, %c0_i32_0 : i32, i32
  }
  func.func @transform_4(%arg0: i32, %arg1: i32) -> (i32, i32, i32) {
    %c0_i32 = arith.constant 0 : i32
    %c0_i32_0 = arith.constant 0 : i32
    return %arg0, %c0_i32, %arg1 : i32, i32, i32
  }
}

</mosaic_0001>

<bundles_post_ra>
// kernel: decoder_single_block_1.3
= control target key start
LH: loop header
LB: loop body
LE: loop exit
PB: predicated region body
PF: predicated region fallthrough
CT: control target
= control target key end

     0   :  { %s782_s15 = smov 0   ;;  %s784_s16 = smov 0   ;;  %s943_s0 = inlined_call_operand.vmem [shape: f32[2,2,2,2,256], index: 0, kind: input, shape index: {}]   ;;  %s944_s1 = inlined_call_operand.vmem [shape: f32[2,2,1024], index: 1, kind: input, shape index: {}]   ;;  %s945_s2 = inlined_call_operand.vmem [shape: f32[2,1], index: 2, kind: input, shape index: {}]   ;;  %s946_s3 = inlined_call_operand.vmem [shape: f32[2,1], index: 3, kind: input, shape index: {}]   ;;  %s947_s4 = inlined_call_operand.vmem [shape: f32[2,4,1024], index: 4, kind: output, shape index: {}]  }
   0x1   :  { %s786_s17 = smov 0   ;;  %s788_s18 = smov 0  }
   0x2   :  { %s790_s19 = smov 0   ;;  %s792_s20 = smov 0  }
   0x3   :  { %s794_s21 = smov 0  }
   0x4 LB: > { %s23_s22 = sadd.s32 1, %s741_s19  ;;  %s26_s23 = sadd.s32 1, %s745_s20  ;;  %s749_s21 = sphi %s794_s21, %s14_s21   ;;  %s745_s20 = sphi %s792_s20, %s953_s20   ;;  %s741_s19 = sphi %s790_s19, %s952_s19   ;;  %s737_s18 = sphi %s788_s18, %s951_s18   ;;  %s733_s17 = sphi %s786_s17, %s950_s17   ;;  %s729_s16 = sphi %s784_s16, %s949_s16   ;;  %s725_s15 = sphi %s782_s15, %s948_s15  }
   0x5   : > { %p24_p0 = scmp.ge.s32.totalorder %s23_s22, 2  ;;  %p42_p1 = scmp.ne.s32.totalorder %s729_s16, %s725_s15 }
   0x6   : > { %p43_p2 = scmp.eq.s32.totalorder %s749_s21, 0  ;;  %s35_s27 = sadd.s32 1, %s729_s16 }
   0x7   : > { %s955_s22 = smov (%p24_p0, %s23_s22), 0  ;;  %s957_s23 = smov (!%p24_p0, %s26_s23), %s745_s20 }
   0x8   : > { %p44_p3 = por %p43_p2, %p42_p1  ;;  %p28_p4 = scmp.ge.s32.totalorder %s957_s23, 2 }
   0x9   : > { %s31_s24 = ssub.s32 %s741_s19, %s955_s22  ;;  %p613_p6 = scmp.ge.s32.totalorder %s749_s21, 4 }
   0xa   : > { %s959_s23 = smov (%p28_p4, %s957_s23), 0 }
   0xb   : > { %s30_s25 = ssub.s32 %s745_s20, %s959_s23  ;;  %172 = sbr.rel (%p613_p6) target bundleno = 24 (0x18), region = 24 }
   0xc   : > { %s32_s26 = sor.u32 %s31_s24, %s30_s25 }
   0xd   : > { %p33_p5 = scmp.eq.s32.totalorder %s32_s26, 0 }
   0xf   : > { %s833_s28 = scalar_select %p33_p5, %s729_s16, %s35_s27  }
  0x10   : > { %175 = sbr.rel (!%p44_p3) target bundleno = 24 (0x18), region = 28  ;;  %s177_s29 = sand.u32 (%p44_p3), 1, %s729_s16  }
  0x11   : > { %s615_s30 = sshll.u32 (%p44_p3), %s741_s19, 1  ;;  %s614_s5 = sshll.u32 (%p44_p3), %s177_s29, 3 }
  0x12   : > { %s616_s6 = sshll.u32 (%p44_p3), %s745_s20, 2  ;;  %s179_s12 = scalar_lea.vmem (%p44_p3), [#allocation2], %s614_s5 }
  0x13   : > { %s182_s7 = sadd.s32 (%p44_p3), %s616_s6, %s615_s30 }
  0x14   : > { %s617_s8 = sshll.u32 (%p44_p3), %s182_s7, 1 }
  0x15   : > { %s184_s11 = scalar_lea.vmem %s943_s0, %s617_s8 }
  0x16   : > { %v201_v0 = vld [vmem:[%s184_s11] sm:$0xf]  ;;  %v203_v1 = vld [vmem:[%s184_s11 + $0x10] sm:$0xf] }
  0x17   : > { %202 = vst [vmem:[%s179_s12] sm:$0xf] %v201_v0  ;;  %204 = vst [vmem:[%s179_s12 + $0x4] sm:$0xf] %v203_v1 }
  0x18 PF: > { %p618_p7 = scmp.ge.s32.totalorder %s749_s21, 1  ;;  %p244_p8 = scmp.lt.s32.totalorder %s749_s21, 5 }
  0x1a   : > { %p245_p9 = pnand %p618_p7, %p244_p8 }
  0x1b   : > { %s620_s26 = sshll.u32 (!%p245_p9), %s733_s17, 2  ;;  %p290_p10 = scmp.lt.s32.totalorder (!%p245_p9), %s737_s18, 1 }
  0x1c   : > { %248 = sbr.rel (%p245_p9) target bundleno = 414 (0x19e), region = 73  ;;  %s251_s27 = sand.u32 (!%p245_p9), 1, %s725_s15  }
  0x1d   : > { %p292_p11 = scmp.lt.s32.totalorder (!%p245_p9), %s620_s26, 7  ;;  %s619_s29 = sshll.u32 (!%p245_p9), %s251_s27, 3 }
  0x1e   : > { %s253_s6 = scalar_lea.vmem (!%p245_p9), [#allocation2], %s619_s29  ;;  %s754_s12 = smov (!%p245_p9), 64  }
  0x1f   : > { %s755_s13 = smov (!%p245_p9), 96   ;;  %s756_s14 = smov (!%p245_p9), 32  }
  0x21   : > { %v309_v2 = vld [vmem:[%s945_s2] sm:$0x3]  ;;  %v751_v3 = vmov 0   ;;  %v752_v5 = vmov 269488144   ;;  %v319_v7 = vlaneseq  ;;  %s961_s18 = smov (!%p290_p10, %s737_s18), 1 }
  0x22   : > { %693 = vset.pattern.permute.xlu0 %v751_v3  ;;  %v310_v4 = vld [vmem:[%s946_s3] sm:$0x3]  ;;  %v317_v6 = vunpack.c.l.s4 %v752_v5  ;;  %s963_s26 = smov (!%p292_p11, %s620_s26), 7  ;;  %s621_s30 = sshll.u32 %s961_s18, 3  ;;  %v626_v14 = vld [vmem:[%s253_s6 + $0x4] sm:$0xf] }
  0x23   : > { %314 = vperm.xlu0 %693, %v309_v2   ;;  %v320_v9 = vshrl.u32 %v319_v7, 7  ;;  %s295_s5 = sadd.s32 %s621_s30, %s963_s26  ;;  %v311_v13 = vld [vmem:[%s253_s6] sm:$0xf]  ;;  %v753_v15 = vmov 1983009808   ;;  %vm338_vm0 = vcmask 254976  }
  0x24   : > { %v318_v8 = vunpack.c.0.s8 %v317_v6  ;;  %v342_v16 = vunpack.c.l.s4 %v753_v15  ;;  %s625_s7 = sshll.u32 %s295_s5, 2  ;;  %s622_s15 = sshll.u32 %s295_s5, 1  ;;  %vm351_vm1 = vcmask 779776   ;;  %vm412_vm2 = vcmask 517376  }
  0x25   : > { %s857_s9 = scalar_lea.vmem %s947_s4, %s625_s7  ;;  %s297_s11 = scalar_lea.vmem %s944_s1, %s622_s15  ;;  %vm417_vm3 = vcmask 1042176  }
  0x26   : > { %v321_v10 = vsub.s32 %v318_v8, %v320_v9  ;;  %v343_v21 = vunpack.c.0.s8 %v342_v16  ;;  %v478_v24 = vld [vmem:[%s297_s11] sm:$0xff] }
  0x27   : > { %327 = vperm.xlu0 %693, %v310_v4   ;;  %v480_v25 = vcombine.low %v478_v24, %v478_v24  ;;  %628 = vst.sshfl [vmem:[%s857_s9 + $0x8] sm:$0xf0 pattern:$0x76325410] %v478_v24 }
  0x28   : > { %v346_v27 = vsub.s32 %v343_v21, %v320_v9 }
  0x29   : > { %627 = vst.sshfl [vmem:[%s857_s9] sm:$0xf0 pattern:$0x76325410] %v480_v25 }
  0x9e   : > { %v315_v11 = vpop.permute.xlu0 %314 }
  0x9f   : > { %v322_v12 = vrot.slane %v315_v11, %v321_v10 }
  0xa1   : > { %v324_v18 = vmul.f32 %v322_v12, %v311_v13  ;;  %v399_v19 = vmul.f32 %v626_v14, %v322_v12 }
  0xa2   : > { %v328_v17 = vpop.permute.xlu0 %327 }
  0xa3   : > { %v335_v20 = vrot.slane %v328_v17, %v321_v10 }
  0xa5   : > { %v337_v22 = vadd.f32 %v335_v20, %v324_v18  ;;  %v859_v23 = vadd.f32 %v399_v19, %v335_v20 }
  0xa7   : > { %450 = vrot.lane.b32.xlu0 %v859_v23, %s754_s12  ;;  %364 = vrot.lane.b32.xlu1 %v337_v22, %s755_s13  ;;  %339 = vst.msk [vmem:[%s857_s9] sm:$0x3] %vm338_vm0, %v337_v22  ;;  %v361_v26 = vrot.slane %v337_v22, 2  ;;  %v347_v28 = vrot.slane %v337_v22, %v346_v27  ;;  %v408_v29 = vrot.slane %v859_v23, %v346_v27  ;;  %v424_v30 = vrot.slane %v859_v23, 2 }
  0xa9   : > { %363 = vst.msk [vmem:[%s857_s9 + $0x8] sm:$0x3] %vm338_vm0, %v361_v26  ;;  %v431_v31 = vrot.slane %v424_v30, %v346_v27 }
  0xab   : > { %464 = vrot.lane.b32.xlu0 %v859_v23, %s756_s14  ;;  %383 = vrot.lane.b32.xlu1 %v337_v22, %s756_s14 }
  0xaf   : > { %436 = vrot.lane.b32.xlu1 %v859_v23, %s755_s13  ;;  %353 = vrot.lane.b32.xlu0 %v347_v28, %s754_s12 }
  0xb3   : > { %378 = vrot.lane.b32.xlu1 %v337_v22, %s754_s12  ;;  %357 = vrot.lane.b32.xlu0 %v347_v28, %s755_s13 }
  0xb7   : > { %348 = vrot.lane.b32.xlu1 %v347_v28, %s756_s14  ;;  %419 = vrot.lane.b32.xlu0 %v408_v29, %s755_s13 }
  0xbb   : > { %409 = vrot.lane.b32.xlu1 %v408_v29, %s756_s14 }
  0xbf   : > { %414 = vrot.lane.b32.xlu1 %v408_v29, %s754_s12 }
  0xc3   : > { %432 = vrot.lane.b32.xlu1 %v431_v31, %s756_s14 }
 0x119   : > { %v451_v32 = vpop.permute.xlu0 %450  ;;  %v365_v33 = vpop.permute.xlu1 %364 }
 0x11a   : > { %v366_v34 = vrot.slane %v365_v33, 2  ;;  %v452_v40 = vrot.slane %v451_v32, 2 }
 0x11c   : > { %v373_v35 = vrot.slane %v366_v34, %v346_v27  ;;  %v459_v45 = vrot.slane %v452_v40, %v346_v27 }
 0x11d   : > { %v465_v36 = vpop.permute.xlu0 %464  ;;  %v384_v37 = vpop.permute.xlu1 %383 }
 0x11e   : > { %v466_v38 = vrot.slane %v465_v36, 2  ;;  %v385_v39 = vrot.slane %v384_v37, 2  ;;  %374 = vrot.lane.b32.xlu1 %v373_v35, %s754_s12 }
 0x120   : > { %v473_v41 = vrot.slane %v466_v38, %v346_v27  ;;  %v392_v42 = vrot.slane %v385_v39, %v346_v27 }
 0x121   : > { %v437_v43 = vpop.permute.xlu1 %436  ;;  %v354_v44 = vpop.permute.xlu0 %353 }
 0x122   : > { %356 = vst.msk [vmem:[%s857_s9 + $0x4] sm:$0x3] %vm338_vm0, %v354_v44  ;;  %474 = vrot.lane.b32.xlu1 %v473_v41, %s755_s13  ;;  %393 = vrot.lane.b32.xlu0 %v392_v42, %s754_s12  ;;  %v438_v46 = vrot.slane %v437_v43, 2 }
 0x124   : > { %v445_v50 = vrot.slane %v438_v46, %v346_v27 }
 0x125   : > { %v379_v47 = vpop.permute.xlu1 %378  ;;  %v358_v48 = vpop.permute.xlu0 %357 }
 0x126   : > { %v380_v49 = vrot.slane %v379_v47, 2  ;;  %360 = vst.msk [vmem:[%s857_s9 + $0x4] sm:$0x3] %vm351_vm1, %v358_v48  ;;  %460 = vrot.lane.b32.xlu0 %v459_v45, %s756_s14 }
 0x128   : > { %382 = vst.msk [vmem:[%s857_s9 + $0xc] sm:$0x3] %vm338_vm0, %v380_v49 }
 0x129   : > { %v349_v51 = vpop.permute.xlu1 %348  ;;  %v420_v52 = vpop.permute.xlu0 %419 }
 0x12a   : > { %352 = vst.msk [vmem:[%s857_s9] sm:$0x3] %vm351_vm1, %v349_v51  ;;  %446 = vrot.lane.b32.xlu0 %v445_v50, %s755_s13 }
 0x12b   : > { %422 = vst.msk [vmem:[%s857_s9 + $0x4] sm:$0x3] %vm412_vm2, %v420_v52 }
 0x12c   : > { %423 = vst.msk [vmem:[%s857_s9 + $0x4] sm:$0x3] %vm417_vm3, %v859_v23 }
 0x12d   : > { %v410_v53 = vpop.permute.xlu1 %409 }
 0x12e   : > { %413 = vst.msk [vmem:[%s857_s9] sm:$0x3] %vm412_vm2, %v410_v53 }
 0x131   : > { %v415_v54 = vpop.permute.xlu1 %414 }
 0x132   : > { %418 = vst.msk [vmem:[%s857_s9] sm:$0x3] %vm417_vm3, %v415_v54 }
 0x135   : > { %v433_v55 = vpop.permute.xlu1 %432 }
 0x190   : > { %v375_v56 = vpop.permute.xlu1 %374 }
 0x191   : > { %377 = vst.msk [vmem:[%s857_s9 + $0x8] sm:$0x3] %vm351_vm1, %v375_v56 }
 0x192   : > { %435 = vst.msk [vmem:[%s857_s9 + $0x8] sm:$0x3] %vm412_vm2, %v433_v55 }
 0x194   : > { %v394_v57 = vpop.permute.xlu0 %393  ;;  %v475_v59 = vpop.permute.xlu1 %474 }
 0x195   : > { %396 = vst.msk [vmem:[%s857_s9 + $0xc] sm:$0x3] %vm351_vm1, %v394_v57 }
 0x198   : > { %v461_v58 = vpop.permute.xlu0 %460 }
 0x199   : > { %463 = vst.msk [vmem:[%s857_s9 + $0xc] sm:$0x3] %vm412_vm2, %v461_v58 }
 0x19a   : > { %477 = vst.msk [vmem:[%s857_s9 + $0xc] sm:$0x3] %vm417_vm3, %v475_v59 }
 0x19c   : > { %v447_v60 = vpop.permute.xlu0 %446 }
 0x19d   : > { %449 = vst.msk [vmem:[%s857_s9 + $0x8] sm:$0x3] %vm417_vm3, %v447_v60 }
 0x19e PF: > { %s14_s21 = sadd.s32 1, %s749_s21   ;;  %s948_s15 = smov %s729_s16 }
 0x19f   : > { %p11_p12 = scmp.ge.s32.totalorder %s14_s21, 6   ;;  %s949_s16 = smov %s833_s28 }
 0x1a0   : > { %s950_s17 = smov %s741_s19  ;;  %s951_s18 = smov %s745_s20 }
 0x1a1   : > { %s952_s19 = smov %s955_s22  ;;  %s953_s20 = smov %s959_s23 }
 0x1a2   :  { %13 = sbr.rel (!%p11_p12) target bundleno = 4 (0x4), region = 116 }

// kernel: decoder_single_block_1.2
= control target key start
LH: loop header
LB: loop body
LE: loop exit
PB: predicated region body
PF: predicated region fallthrough
CT: control target
= control target key end

     0   :  { %s2562_s12 = smov 0   ;;  %s2564_s13 = smov 0   ;;  %s3762_s0 = inlined_call_operand.vmem [shape: f32[2,18,4,18], index: 0, kind: input, shape index: {}]   ;;  %s3763_s1 = inlined_call_operand.vmem [shape: f32[8,36], index: 1, kind: input, shape index: {}]   ;;  %s3764_s2 = inlined_call_operand.vmem [shape: f32[2,2,2,2,256], index: 2, kind: output, shape index: {0}]   ;;  %s3765_s3 = inlined_call_operand.vmem [shape: f32[2,2,2,2], index: 3, kind: output, shape index: {1}]  }
   0x1   :  { %s2566_s14 = smov 0   ;;  %s2568_s15 = smov 0  }
   0x2   :  { %s2570_s16 = smov 0   ;;  %s2572_s17 = smov 0  }
   0x3   :  { %s2574_s18 = smov 0  }
   0x4 LB: > { %s23_s19 = sadd.s32 1, %s2520_s16  ;;  %s26_s20 = sadd.s32 1, %s2524_s17  ;;  %s2528_s18 = sphi %s2574_s18, %s14_s18   ;;  %s2524_s17 = sphi %s2572_s17, %s3880_s17   ;;  %s2520_s16 = sphi %s2570_s16, %s3879_s16   ;;  %s2516_s15 = sphi %s2568_s15, %s3878_s15   ;;  %s2512_s14 = sphi %s2566_s14, %s3877_s14   ;;  %s2508_s13 = sphi %s2564_s13, %s3876_s13   ;;  %s2504_s12 = sphi %s2562_s12, %s3875_s12  }
   0x5   : > { %p24_p0 = scmp.ge.s32.totalorder %s23_s19, 2  ;;  %s1974_s21 = sadd.s32 4294967295, %s2528_s18  }
   0x6   : > { %p92_p1 = scmp.ne.s32.totalorder %s2508_s13, %s2504_s12  ;;  %p93_p2 = scmp.eq.s32.totalorder %s1974_s21, 3 }
   0x7   : > { %s3882_s19 = smov (%p24_p0, %s23_s19), 0  ;;  %s3884_s20 = smov (!%p24_p0, %s26_s20), %s2524_s17 }
   0x8   : > { %s78_s22 = ssub.s32 %s2520_s16, %s3882_s19  ;;  %p28_p3 = scmp.ge.s32.totalorder %s3884_s20, 2 }
   0x9   : > { %p1978_p4 = scmp.ge.s32.totalorder %s2528_s18, 1  ;;  %p2608_p5 = por %p93_p2, %p92_p1 }
   0xa   : > { %p156_p6 = scmp.lt.s32.totalorder %s2528_s18, 5  ;;  %s3886_s20 = smov (%p28_p3, %s3884_s20), 0 }
   0xb   : > { %s77_s24 = ssub.s32 %s2524_s17, %s3886_s20  ;;  %s82_s26 = sadd.s32 1, %s2508_s13 }
   0xc   : > { %p157_p7 = pnand %p1978_p4, %p156_p6  ;;  %s79_s25 = sor.u32 %s78_s22, %s77_s24 }
   0xd   : > { %p80_p8 = scmp.eq.s32.totalorder %s79_s25, 0  ;;  %p187_p9 = scmp.lt.s32.totalorder (!%p157_p7), %s2516_s15, 1 }
   0xe   : > { %160 = sbr.rel (%p157_p7) target bundleno = 805 (0x325), region = 28  ;;  %s2242_s30 = sshll.u32 (!%p157_p7), %s2512_s14, 5 }
   0xf   : > { %s2619_s27 = scalar_select %p80_p8, %s2508_s13, %s82_s26  }
  0x10   : > { %s2531_s8 = smov (!%p157_p7), 126   ;;  %s2532_s9 = smov (!%p157_p7), 127  }
  0x11   : > { %s2535_s21 = smov (!%p157_p7), 16   ;;  %s2536_s22 = smov (!%p157_p7), 32  }
  0x12   : > { %s2537_s24 = smov (!%p157_p7), 48   ;;  %s2538_s25 = smov (!%p157_p7), 64  }
  0x13   : > { %s2623_s28 = scalar_select %p187_p9, %s2516_s15, 1  ;;  %v2530_v0 = vmov 0.0   ;;  %vm457_vm0 = vcmask 125952   ;;  %vm2533_vm1 = vmmov 0   ;;  %vm497_vm2 = vcmask 1043456   ;;  %v2820_v40 = vld [vmem:[%s3763_s1] sm:$0xff] }
  0x14   : > { %2301 = vmatprep.subr.mxu0 %v2530_v0  ;;  %2314 = vmatprep.subr.mxu1 %v2530_v0  ;;  %vm493_vm3 = vcmask 293888   ;;  %vm571_vm4 = vcmask 130048   ;;  %s2539_s26 = smov 80   ;;  %p194_p10 = scmp.lt.s32.totalorder %s2512_s14, 1 }
  0x15   : > { %s2405_s29 = smul.u32 72, %s2623_s28  ;;  %2311 = vmatprep.mubr.msk.f32.mxu0 %vm2533_vm1, %v2530_v0  ;;  %2324 = vmatprep.mubr.msk.f32.mxu1 %vm2533_vm1, %v2530_v0  ;;  %s1981_s5 = sshll.u32 %s2623_s28, 1 }
  0x16   : > { %s195_s4 = scalar_select %p194_p10, %s2512_s14, 1 }
  0x17   : > { %s191_s6 = scalar_lea.vmem %s3762_s0, %s2405_s29  ;;  %s2540_s29 = smov 96  }
  0x18   : > { %s2632_s7 = scalar_lea.vmem %s191_s6, %s2242_s30  ;;  %s2541_s30 = smov 112  }
  0x19   : > { %v2054_v1 = vld [vmem:[%s2632_s7 + $0x8] sm:$0xf]  ;;  %v2051_v2 = vld [vmem:[%s2632_s7 + $0x4] sm:$0xf]  ;;  %v448_v3 = vld [vmem:[%s2632_s7] sm:$0xf]  ;;  %s197_s6 = sadd.s32 %s1981_s5, %s195_s4 }
  0x1a   : > { %484 = vrot.lane.b32.xlu0 %v2054_v1, %s2531_s8  ;;  %478 = vst.msk [vmem:[#allocation2 + $0x18] sm:$0xf] %vm457_vm0, %v2054_v1  ;;  %470 = vrot.lane.b32.xlu1 %v2051_v2, %s2532_s9  ;;  %468 = vst.msk [vmem:[#allocation2 + $0xc] sm:$0xf] %vm457_vm0, %v2051_v2  ;;  %v2647_v4 = vld [vmem:[%s2632_s7 + $0xc] sm:$0xf] }
  0x1b   : > { %458 = vst.msk [vmem:[#allocation2] sm:$0xf] %vm457_vm0, %v448_v3  ;;  %v2654_v5 = vld [vmem:[%s2632_s7 + $0x8] sm:$0xf]  ;;  %v2661_v6 = vld [vmem:[%s2632_s7 + $0x4] sm:$0xf] }
  0x1c   : > { %v2672_v7 = vld [vmem:[%s2632_s7 + $0x10] sm:$0xf]  ;;  %v2679_v8 = vld [vmem:[%s2632_s7 + $0xc] sm:$0xf]  ;;  %v2686_v9 = vld [vmem:[%s2632_s7 + $0x8] sm:$0xf] }
  0x1d   : > { %v2693_v10 = vld [vmem:[%s2632_s7 + $0x14] sm:$0xf]  ;;  %v2700_v11 = vld [vmem:[%s2632_s7 + $0x10] sm:$0xf]  ;;  %v2707_v12 = vld [vmem:[%s2632_s7 + $0xc] sm:$0xf] }
  0x1e   : > { %480 = vrot.lane.b32.xlu0 %v2054_v1, %s2532_s9  ;;  %474 = vrot.lane.b32.xlu1 %v2051_v2, %s2531_s8  ;;  %v2714_v13 = vld [vmem:[%s2632_s7 + $0x18] sm:$0xf]  ;;  %v2721_v14 = vld [vmem:[%s2632_s7 + $0x14] sm:$0xf]  ;;  %s174_s28 = sand.u32 1, %s2504_s12   ;;  %s2237_s12 = sshll.u32 (%p2608_p5), %s2512_s14, 1 }
  0x1f   : > { %v2728_v15 = vld [vmem:[%s2632_s7 + $0x10] sm:$0xf]  ;;  %v2735_v16 = vld [vmem:[%s2632_s7 + $0x1c] sm:$0xf]  ;;  %v2742_v17 = vld [vmem:[%s2632_s7 + $0x18] sm:$0xf] }
  0x20   : > { %v2749_v18 = vld [vmem:[%s2632_s7 + $0x14] sm:$0xf]  ;;  %v2756_v19 = vld [vmem:[%s2632_s7 + $0x20] sm:$0xf]  ;;  %v2763_v20 = vld [vmem:[%s2632_s7 + $0x1c] sm:$0xf] }
  0x21   : > { %v2770_v21 = vld [vmem:[%s2632_s7 + $0x18] sm:$0xf]  ;;  %v2777_v22 = vld [vmem:[%s2632_s7 + $0x24] sm:$0xf]  ;;  %v2784_v23 = vld [vmem:[%s2632_s7 + $0x20] sm:$0xf] }
  0x22   : > { %460 = vrot.lane.b32.xlu1 %v448_v3, %s2532_s9  ;;  %464 = vrot.lane.b32.xlu0 %v448_v3, %s2531_s8  ;;  %v2791_v24 = vld [vmem:[%s2632_s7 + $0x1c] sm:$0xf]  ;;  %s1982_s7 = sshll.u32 %s197_s6, 1  ;;  %s1979_s11 = sshll.u32 %s174_s28, 3 }
  0x23   : > { %s199_s10 = scalar_lea.vmem %s3765_s3, %s1982_s7 }
  0x26   : > { %601 = vrot.lane.b32.xlu1 %v2647_v4, %s2532_s9  ;;  %605 = vrot.lane.b32.xlu0 %v2647_v4, %s2531_s8 }
  0x2a   : > { %595 = vrot.lane.b32.xlu1 %v2654_v5, %s2531_s8  ;;  %591 = vrot.lane.b32.xlu0 %v2654_v5, %s2532_s9 }
  0x2e   : > { %581 = vrot.lane.b32.xlu1 %v2661_v6, %s2532_s9  ;;  %585 = vrot.lane.b32.xlu0 %v2661_v6, %s2531_s8 }
  0x32   : > { %721 = vrot.lane.b32.xlu1 %v2672_v7, %s2532_s9  ;;  %725 = vrot.lane.b32.xlu0 %v2672_v7, %s2531_s8 }
  0x36   : > { %715 = vrot.lane.b32.xlu1 %v2679_v8, %s2531_s8  ;;  %711 = vrot.lane.b32.xlu0 %v2679_v8, %s2532_s9 }
  0x3a   : > { %701 = vrot.lane.b32.xlu1 %v2686_v9, %s2532_s9  ;;  %705 = vrot.lane.b32.xlu0 %v2686_v9, %s2531_s8 }
  0x3e   : > { %841 = vrot.lane.b32.xlu1 %v2693_v10, %s2532_s9  ;;  %845 = vrot.lane.b32.xlu0 %v2693_v10, %s2531_s8 }
  0x42   : > { %835 = vrot.lane.b32.xlu1 %v2700_v11, %s2531_s8  ;;  %831 = vrot.lane.b32.xlu0 %v2700_v11, %s2532_s9 }
  0x46   : > { %821 = vrot.lane.b32.xlu1 %v2707_v12, %s2532_s9  ;;  %825 = vrot.lane.b32.xlu0 %v2707_v12, %s2531_s8 }
  0x4a   : > { %961 = vrot.lane.b32.xlu1 %v2714_v13, %s2532_s9  ;;  %965 = vrot.lane.b32.xlu0 %v2714_v13, %s2531_s8 }
  0x4e   : > { %955 = vrot.lane.b32.xlu1 %v2721_v14, %s2531_s8  ;;  %951 = vrot.lane.b32.xlu0 %v2721_v14, %s2532_s9 }
  0x52   : > { %941 = vrot.lane.b32.xlu1 %v2728_v15, %s2532_s9  ;;  %945 = vrot.lane.b32.xlu0 %v2728_v15, %s2531_s8 }
  0x56   : > { %1081 = vrot.lane.b32.xlu1 %v2735_v16, %s2532_s9  ;;  %1085 = vrot.lane.b32.xlu0 %v2735_v16, %s2531_s8 }
  0x5a   : > { %1075 = vrot.lane.b32.xlu1 %v2742_v17, %s2531_s8  ;;  %1071 = vrot.lane.b32.xlu0 %v2742_v17, %s2532_s9 }
  0x5e   : > { %1061 = vrot.lane.b32.xlu1 %v2749_v18, %s2532_s9  ;;  %1065 = vrot.lane.b32.xlu0 %v2749_v18, %s2531_s8 }
  0x62   : > { %1201 = vrot.lane.b32.xlu1 %v2756_v19, %s2532_s9  ;;  %1205 = vrot.lane.b32.xlu0 %v2756_v19, %s2531_s8 }
  0x66   : > { %1195 = vrot.lane.b32.xlu1 %v2763_v20, %s2531_s8  ;;  %1191 = vrot.lane.b32.xlu0 %v2763_v20, %s2532_s9 }
  0x6a   : > { %1181 = vrot.lane.b32.xlu1 %v2770_v21, %s2532_s9  ;;  %1185 = vrot.lane.b32.xlu0 %v2770_v21, %s2531_s8 }
  0x6e   : > { %1321 = vrot.lane.b32.xlu1 %v2777_v22, %s2532_s9  ;;  %1325 = vrot.lane.b32.xlu0 %v2777_v22, %s2531_s8 }
  0x72   : > { %1315 = vrot.lane.b32.xlu1 %v2784_v23, %s2531_s8  ;;  %1311 = vrot.lane.b32.xlu0 %v2784_v23, %s2532_s9 }
  0x76   : > { %1305 = vrot.lane.b32.xlu0 %v2791_v24, %s2531_s8  ;;  %1301 = vrot.lane.b32.xlu1 %v2791_v24, %s2532_s9 }
  0x8c   : > { %v485_v25 = vpop.permute.xlu0 %484  ;;  %v471_v26 = vpop.permute.xlu1 %470 }
  0x8d   : > { %487 = vst.msk [vmem:[#allocation2 + $0x20] sm:$0xf] %vm457_vm0, %v485_v25  ;;  %473 = vst.msk [vmem:[#allocation2 + $0x10] sm:$0xf] %vm457_vm0, %v471_v26 }
  0x90   : > { %v481_v27 = vpop.permute.xlu0 %480  ;;  %v475_v28 = vpop.permute.xlu1 %474 }
  0x91   : > { %483 = vst.msk [vmem:[#allocation2 + $0x1c] sm:$0xf] %vm457_vm0, %v481_v27  ;;  %477 = vst.msk [vmem:[#allocation2 + $0x14] sm:$0xf] %vm457_vm0, %v475_v28 }
  0x94   : > { %v461_v29 = vpop.permute.xlu1 %460  ;;  %v465_v30 = vpop.permute.xlu0 %464  ;;  %v492_v31 = vld [vmem:[#allocation2 + $0x20] sm:$0xf] }
  0x95   : > { %463 = vst.msk [vmem:[#allocation2 + $0x4] sm:$0xf] %vm457_vm0, %v461_v29  ;;  %467 = vst.msk [vmem:[#allocation2 + $0x8] sm:$0xf] %vm457_vm0, %v465_v30  ;;  %2302 = vmatpush3.msk.msra.mxu0 %vm497_vm2, %v492_v31 }
  0x96   : > { %2303 = vmatprep.subr.mxu0 %v2530_v0 }
  0x98   : > { %v491_v32 = vld [vmem:[#allocation2 + $0x18] sm:$0xff]  ;;  %v602_v33 = vpop.permute.xlu1 %601  ;;  %v606_v34 = vpop.permute.xlu0 %605  ;;  %v490_v35 = vld [vmem:[#allocation2 + $0x10] sm:$0xff] }
  0x99   : > { %599 = vst.msk [vmem:[#allocation2 + $0x18] sm:$0xf] %vm457_vm0, %v2647_v4  ;;  %604 = vst.msk [vmem:[#allocation2 + $0x1c] sm:$0xf] %vm457_vm0, %v602_v33  ;;  %2304 = vmatpush3.msra.mxu0 %v491_v32 }
  0x9a   : > { %608 = vst.msk [vmem:[#allocation2 + $0x20] sm:$0xf] %vm457_vm0, %v606_v34  ;;  %2305 = vmatprep.subr.mxu0 %v2530_v0 }
  0x9b   : > { %2306 = vmatpush3.msra.mxu0 %v490_v35 }
  0x9c   : > { %v488_v36 = vld [vmem:[#allocation2] sm:$0xff]  ;;  %v489_v37 = vld [vmem:[#allocation2 + $0x8] sm:$0xff]  ;;  %2307 = vmatprep.subr.mxu0 %v2530_v0  ;;  %v596_v38 = vpop.permute.xlu1 %595  ;;  %v592_v39 = vpop.permute.xlu0 %591 }
  0x9d   : > { %579 = vst.msk [vmem:[#allocation2] sm:$0xf] %vm457_vm0, %v2661_v6  ;;  %589 = vst.msk [vmem:[#allocation2 + $0xc] sm:$0xf] %vm457_vm0, %v2654_v5  ;;  %2308 = vmatpush3.msra.mxu0 %v489_v37 }
  0x9e   : > { %598 = vst.msk [vmem:[#allocation2 + $0x14] sm:$0xf] %vm457_vm0, %v596_v38  ;;  %594 = vst.msk [vmem:[#allocation2 + $0x10] sm:$0xf] %vm457_vm0, %v592_v39  ;;  %2309 = vmatprep.subr.mxu0 %v2530_v0 }
  0x9f   : > { %2310 = vmatpush3.msra.mxu0 %v488_v36 }
  0xa0   : > { %v612_v41 = vld [vmem:[#allocation2 + $0x18] sm:$0xff]  ;;  %v582_v42 = vpop.permute.xlu1 %581  ;;  %v586_v43 = vpop.permute.xlu0 %585  ;;  %2327 = vmatprep.subr.mxu0 %v2530_v0  ;;  %2312 = vmatmul.mubr.msk.f32.vlgmr.msra.gmra.mxu0 %vm493_vm3, %v2820_v40 }
  0xa1   : > { %v613_v44 = vld [vmem:[#allocation2 + $0x20] sm:$0xf]  ;;  %719 = vst.msk [vmem:[#allocation2 + $0x18] sm:$0xf] %vm457_vm0, %v2672_v7  ;;  %584 = vst.msk [vmem:[#allocation2 + $0x4] sm:$0xf] %vm457_vm0, %v582_v42  ;;  %2337 = vmatprep.mubr.msk.f32.mxu0 %vm2533_vm1, %v2530_v0 }
  0xa2   : > { %588 = vst.msk [vmem:[#allocation2 + $0x8] sm:$0xf] %vm457_vm0, %v586_v43  ;;  %2315 = vmatpush3.msk.msra.mxu1 %vm497_vm2, %v613_v44 }
  0xa3   : > { %2316 = vmatprep.subr.mxu1 %v2530_v0 }
  0xa4   : > { %2317 = vmatpush3.msra.mxu1 %v612_v41  ;;  %v722_v46 = vpop.permute.xlu1 %721  ;;  %v726_v47 = vpop.permute.xlu0 %725 }
  0xa5   : > { %v611_v45 = vld [vmem:[#allocation2 + $0x10] sm:$0xff]  ;;  %2318 = vmatprep.subr.mxu1 %v2530_v0  ;;  %724 = vst.msk [vmem:[#allocation2 + $0x1c] sm:$0xf] %vm457_vm0, %v722_v46  ;;  %728 = vst.msk [vmem:[#allocation2 + $0x20] sm:$0xf] %vm457_vm0, %v726_v47 }
  0xa6   : > { %2319 = vmatpush3.msra.mxu1 %v611_v45 }
  0xa7   : > { %2320 = vmatprep.subr.mxu1 %v2530_v0 }
  0xa8   : > { %v609_v48 = vld [vmem:[#allocation2] sm:$0xff]  ;;  %v716_v50 = vpop.permute.xlu1 %715  ;;  %v712_v51 = vpop.permute.xlu0 %711 }
  0xa9   : > { %v610_v49 = vld [vmem:[#allocation2 + $0x8] sm:$0xff]  ;;  %699 = vst.msk [vmem:[#allocation2] sm:$0xf] %vm457_vm0, %v2686_v9  ;;  %718 = vst.msk [vmem:[#allocation2 + $0x14] sm:$0xf] %vm457_vm0, %v716_v50 }
  0xaa   : > { %709 = vst.msk [vmem:[#allocation2 + $0xc] sm:$0xf] %vm457_vm0, %v2679_v8  ;;  %714 = vst.msk [vmem:[#allocation2 + $0x10] sm:$0xf] %vm457_vm0, %v712_v51  ;;  %2321 = vmatpush3.msra.mxu1 %v610_v49 }
  0xab   : > { %2322 = vmatprep.subr.mxu1 %v2530_v0 }
  0xac   : > { %2323 = vmatpush3.msra.mxu1 %v609_v48  ;;  %v702_v52 = vpop.permute.xlu1 %701  ;;  %v706_v53 = vpop.permute.xlu0 %705  ;;  %v733_v54 = vld [vmem:[#allocation2 + $0x20] sm:$0xf]  ;;  %v732_v55 = vld [vmem:[#allocation2 + $0x18] sm:$0xff] }
  0xad   : > { %2340 = vmatprep.subr.mxu1 %v2530_v0  ;;  %2325 = vmatmul.mubr.msk.f32.vlgmr.msra.gmra.mxu1 %vm493_vm3, %v2820_v40  ;;  %704 = vst.msk [vmem:[#allocation2 + $0x4] sm:$0xf] %vm457_vm0, %v702_v52  ;;  %708 = vst.msk [vmem:[#allocation2 + $0x8] sm:$0xf] %vm457_vm0, %v706_v53  ;;  %v202_v53 = vlaneseq }
  0xae   : > { %2328 = vmatpush3.msk.msra.mxu0 %vm497_vm2, %v733_v54  ;;  %839 = vst.msk [vmem:[#allocation2 + $0x18] sm:$0xf] %vm457_vm0, %v2693_v10  ;;  %2350 = vmatprep.mubr.msk.f32.mxu1 %vm2533_vm1, %v2530_v0 }
  0xaf   : > { %2329 = vmatprep.subr.mxu0 %v2530_v0 }
  0xb0   : > { %2330 = vmatpush3.msra.mxu0 %v732_v55  ;;  %v842_v56 = vpop.permute.xlu1 %841  ;;  %v846_v57 = vpop.permute.xlu0 %845  ;;  %v2968_v55 = vshrl.u32 %v202_v53, 7 }
  0xb1   : > { %2331 = vmatprep.subr.mxu0 %v2530_v0  ;;  %v731_v58 = vld [vmem:[#allocation2 + $0x10] sm:$0xff]  ;;  %844 = vst.msk [vmem:[#allocation2 + $0x1c] sm:$0xf] %vm457_vm0, %v842_v56  ;;  %848 = vst.msk [vmem:[#allocation2 + $0x20] sm:$0xf] %vm457_vm0, %v846_v57  ;;  %v2970_v56 = vand.u32 127, %v202_v53 }
  0xb2   : > { %2332 = vmatpush3.msra.mxu0 %v731_v58  ;;  %v218_v57 = vadd.s32 120, %v2968_v55 }
  0xb3   : > { %2333 = vmatprep.subr.mxu0 %v2530_v0  ;;  %v2974_v58 = vadd.s32 128, %v2970_v56 }
  0xb4   : > { %v836_v59 = vpop.permute.xlu1 %835  ;;  %v832_v60 = vpop.permute.xlu0 %831  ;;  %v730_v61 = vld [vmem:[#allocation2 + $0x8] sm:$0xff]  ;;  %v729_v62 = vld [vmem:[#allocation2] sm:$0xff] }
  0xb5   : > { %838 = vst.msk [vmem:[#allocation2 + $0x14] sm:$0xf] %vm457_vm0, %v836_v59  ;;  %834 = vst.msk [vmem:[#allocation2 + $0x10] sm:$0xf] %vm457_vm0, %v832_v60  ;;  %2334 = vmatpush3.msra.mxu0 %v730_v61  ;;  %v217_v59 = vadd.s32 112, %v2968_v55  ;;  %v2978_v60 = vmul.u32 2, %v218_v57 }
  0xb6   : > { %829 = vst.msk [vmem:[#allocation2 + $0xc] sm:$0xf] %vm457_vm0, %v2700_v11  ;;  %819 = vst.msk [vmem:[#allocation2] sm:$0xf] %vm457_vm0, %v2707_v12  ;;  %2335 = vmatprep.subr.mxu0 %v2530_v0 }
  0xb7   : > { %2336 = vmatpush3.msra.mxu0 %v729_v62  ;;  %v2980_v61 = vmul.u32 2, %v217_v59  ;;  %vm269_vm5 = vcmp.eq.s32.totalorder %v2974_v58, %v2978_v60  ;;  %vm268_vm6 = vcmp.eq.s32.totalorder %v2970_v56, %v2978_v60 }
  0xb8   : > { %v822_v63 = vpop.permute.xlu1 %821  ;;  %v826_v1 = vpop.permute.xlu0 %825  ;;  %v853_v2 = vld [vmem:[#allocation2 + $0x20] sm:$0xf]  ;;  %v852_v3 = vld [vmem:[#allocation2 + $0x18] sm:$0xff]  ;;  %2353 = vmatprep.subr.mxu0 %v2530_v0  ;;  %2338 = vmatmul.mubr.msk.f32.vlgmr.msra.gmra.mxu0 %vm493_vm3, %v2820_v40 }
  0xb9   : > { %824 = vst.msk [vmem:[#allocation2 + $0x4] sm:$0xf] %vm457_vm0, %v822_v63  ;;  %828 = vst.msk [vmem:[#allocation2 + $0x8] sm:$0xf] %vm457_vm0, %v826_v1  ;;  %2341 = vmatpush3.msk.msra.mxu1 %vm497_vm2, %v853_v2  ;;  %2363 = vmatprep.mubr.msk.f32.mxu0 %vm2533_vm1, %v2530_v0  ;;  %v2985_v63 = vadd.s32 1, %v2978_v60  ;;  %v2992_v1 = vadd.s32 1, %v2980_v61  ;;  %vm267_vm7 = vcmp.eq.s32.totalorder %v2974_v58, %v2980_v61 }
  0xba   : > { %959 = vst.msk [vmem:[#allocation2 + $0x18] sm:$0xf] %vm457_vm0, %v2714_v13  ;;  %2342 = vmatprep.subr.mxu1 %v2530_v0  ;;  %v2534_v2 = vmov 1.0   ;;  %vm266_vm8 = vcmp.eq.s32.totalorder %v2970_v56, %v2980_v61 }
  0xbb   : > { %2343 = vmatpush3.msra.mxu1 %v852_v3  ;;  %vm381_vm9 = vcmp.eq.s32.totalorder %v2974_v58, %v2985_v63  ;;  %vm380_vm10 = vcmp.eq.s32.totalorder %v2970_v56, %v2985_v63  ;;  %vm379_vm11 = vcmp.eq.s32.totalorder %v2974_v58, %v2992_v1  ;;  %vm378_vm12 = vcmp.eq.s32.totalorder %v2970_v56, %v2992_v1 }
  0xbc   : > { %v962_v4 = vpop.permute.xlu1 %961  ;;  %v966_v5 = vpop.permute.xlu0 %965  ;;  %2344 = vmatprep.subr.mxu1 %v2530_v0  ;;  %v851_v6 = vld [vmem:[#allocation2 + $0x10] sm:$0xff] }
  0xbd   : > { %964 = vst.msk [vmem:[#allocation2 + $0x1c] sm:$0xf] %vm457_vm0, %v962_v4  ;;  %968 = vst.msk [vmem:[#allocation2 + $0x20] sm:$0xf] %vm457_vm0, %v966_v5  ;;  %2345 = vmatpush3.msra.mxu1 %v851_v6 }
  0xbe   : > { %2346 = vmatprep.subr.mxu1 %v2530_v0 }
  0xc0   : > { %v956_v7 = vpop.permute.xlu1 %955  ;;  %v952_v8 = vpop.permute.xlu0 %951  ;;  %v850_v9 = vld [vmem:[#allocation2 + $0x8] sm:$0xff]  ;;  %v849_v10 = vld [vmem:[#allocation2] sm:$0xff] }
  0xc1   : > { %958 = vst.msk [vmem:[#allocation2 + $0x14] sm:$0xf] %vm457_vm0, %v956_v7  ;;  %954 = vst.msk [vmem:[#allocation2 + $0x10] sm:$0xf] %vm457_vm0, %v952_v8  ;;  %2347 = vmatpush3.msra.mxu1 %v850_v9  ;;  %v215_v7 = vadd.s32 96, %v2968_v55  ;;  %v214_v8 = vadd.s32 88, %v2968_v55 }
  0xc2   : > { %949 = vst.msk [vmem:[#allocation2 + $0xc] sm:$0xf] %vm457_vm0, %v2721_v14  ;;  %939 = vst.msk [vmem:[#allocation2] sm:$0xf] %vm457_vm0, %v2728_v15  ;;  %2348 = vmatprep.subr.mxu1 %v2530_v0  ;;  %v213_v9 = vadd.s32 80, %v2968_v55 }
  0xc3   : > { %2349 = vmatpush3.msra.mxu1 %v849_v10  ;;  %v212_v10 = vadd.s32 72, %v2968_v55 }
  0xc4   : > { %v942_v11 = vpop.permute.xlu1 %941  ;;  %v946_v12 = vpop.permute.xlu0 %945  ;;  %v973_v13 = vld [vmem:[#allocation2 + $0x20] sm:$0xf]  ;;  %v972_v25 = vld [vmem:[#allocation2 + $0x18] sm:$0xff]  ;;  %2366 = vmatprep.subr.mxu1 %v2530_v0  ;;  %2351 = vmatmul.mubr.msk.f32.vlgmr.msra.gmra.mxu1 %vm493_vm3, %v2820_v40 }
  0xc5   : > { %944 = vst.msk [vmem:[#allocation2 + $0x4] sm:$0xf] %vm457_vm0, %v942_v11  ;;  %948 = vst.msk [vmem:[#allocation2 + $0x8] sm:$0xf] %vm457_vm0, %v946_v12  ;;  %2354 = vmatpush3.msk.msra.mxu0 %vm497_vm2, %v973_v13  ;;  %2376 = vmatprep.mubr.msk.f32.mxu1 %vm2533_vm1, %v2530_v0  ;;  %v3069_v12 = vmul.u32 2, %v215_v7  ;;  %v3071_v13 = vmul.u32 2, %v214_v8 }
  0xc6   : > { %1079 = vst.msk [vmem:[#allocation2 + $0x18] sm:$0xf] %vm457_vm0, %v2735_v16  ;;  %2355 = vmatprep.subr.mxu0 %v2530_v0 }
  0xc7   : > { %2356 = vmatpush3.msra.mxu0 %v972_v25  ;;  %v3073_v25 = vmul.u32 2, %v213_v9 }
  0xc8   : > { %v1082_v14 = vpop.permute.xlu1 %1081  ;;  %v1086_v15 = vpop.permute.xlu0 %1085  ;;  %2357 = vmatprep.subr.mxu0 %v2530_v0  ;;  %v971_v26 = vld [vmem:[#allocation2 + $0x10] sm:$0xff] }
  0xc9   : > { %1084 = vst.msk [vmem:[#allocation2 + $0x1c] sm:$0xf] %vm457_vm0, %v1082_v14  ;;  %1088 = vst.msk [vmem:[#allocation2 + $0x20] sm:$0xf] %vm457_vm0, %v1086_v15  ;;  %2358 = vmatpush3.msra.mxu0 %v971_v26  ;;  %v3075_v14 = vmul.u32 2, %v212_v10  ;;  %v211_v15 = vadd.s32 64, %v2968_v55 }
  0xca   : > { %2359 = vmatprep.subr.mxu0 %v2530_v0  ;;  %v3079_v26 = vadd.s32 1, %v3069_v12 }
  0xcc   : > { %v1076_v27 = vpop.permute.xlu1 %1075  ;;  %v1072_v16 = vpop.permute.xlu0 %1071  ;;  %v970_v28 = vld [vmem:[#allocation2 + $0x8] sm:$0xff]  ;;  %v969_v29 = vld [vmem:[#allocation2] sm:$0xff] }
  0xcd   : > { %1078 = vst.msk [vmem:[#allocation2 + $0x14] sm:$0xf] %vm457_vm0, %v1076_v27  ;;  %1074 = vst.msk [vmem:[#allocation2 + $0x10] sm:$0xf] %vm457_vm0, %v1072_v16  ;;  %2360 = vmatpush3.msra.mxu0 %v970_v28  ;;  %v3086_v27 = vadd.s32 1, %v3071_v13  ;;  %v3097_v16 = vadd.s32 1, %v3073_v25 }
  0xce   : > { %1069 = vst.msk [vmem:[#allocation2 + $0xc] sm:$0xf] %vm457_vm0, %v2742_v17  ;;  %1059 = vst.msk [vmem:[#allocation2] sm:$0xf] %vm457_vm0, %v2749_v18  ;;  %2361 = vmatprep.subr.mxu0 %v2530_v0  ;;  %v3124_v28 = vadd.s32 1, %v3075_v14 }
  0xcf   : > { %2362 = vmatpush3.msra.mxu0 %v969_v29  ;;  %v3138_v29 = vmul.u32 2, %v211_v15 }
  0xd0   : > { %v1062_v30 = vpop.permute.xlu1 %1061  ;;  %v1066_v31 = vpop.permute.xlu0 %1065  ;;  %v1093_v32 = vld [vmem:[#allocation2 + $0x20] sm:$0xf]  ;;  %v1092_v33 = vld [vmem:[#allocation2 + $0x18] sm:$0xff]  ;;  %2379 = vmatprep.subr.mxu0 %v2530_v0  ;;  %2364 = vmatmul.mubr.msk.f32.vlgmr.msra.gmra.mxu0 %vm493_vm3, %v2820_v40 }
  0xd1   : > { %1064 = vst.msk [vmem:[#allocation2 + $0x4] sm:$0xf] %vm457_vm0, %v1062_v30  ;;  %1068 = vst.msk [vmem:[#allocation2 + $0x8] sm:$0xf] %vm457_vm0, %v1066_v31  ;;  %2367 = vmatpush3.msk.msra.mxu1 %vm497_vm2, %v1093_v32  ;;  %2389 = vmatprep.mubr.msk.f32.mxu0 %vm2533_vm1, %v2530_v0  ;;  %v3163_v30 = vadd.s32 1, %v3138_v29 }
  0xd2   : > { %1199 = vst.msk [vmem:[#allocation2 + $0x18] sm:$0xf] %vm457_vm0, %v2756_v19  ;;  %2368 = vmatprep.subr.mxu1 %v2530_v0 }
  0xd3   : > { %2369 = vmatpush3.msra.mxu1 %v1092_v33 }
  0xd4   : > { %v1202_v17 = vpop.permute.xlu1 %1201  ;;  %v1206_v18 = vpop.permute.xlu0 %1205  ;;  %2370 = vmatprep.subr.mxu1 %v2530_v0  ;;  %v1091_v34 = vld [vmem:[#allocation2 + $0x10] sm:$0xff] }
  0xd5   : > { %1204 = vst.msk [vmem:[#allocation2 + $0x1c] sm:$0xf] %vm457_vm0, %v1202_v17  ;;  %1208 = vst.msk [vmem:[#allocation2 + $0x20] sm:$0xf] %vm457_vm0, %v1206_v18  ;;  %2371 = vmatpush3.msra.mxu1 %v1091_v34  ;;  %v210_v17 = vadd.s32 56, %v2968_v55  ;;  %v209_v18 = vadd.s32 48, %v2968_v55 }
  0xd6   : > { %2372 = vmatprep.subr.mxu1 %v2530_v0  ;;  %v208_v34 = vadd.s32 40, %v2968_v55 }
  0xd8   : > { %v1196_v35 = vpop.permute.xlu1 %1195  ;;  %v1192_v19 = vpop.permute.xlu0 %1191  ;;  %v1090_v36 = vld [vmem:[#allocation2 + $0x8] sm:$0xff]  ;;  %v1089_v37 = vld [vmem:[#allocation2] sm:$0xff] }
  0xd9   : > { %1198 = vst.msk [vmem:[#allocation2 + $0x14] sm:$0xf] %vm457_vm0, %v1196_v35  ;;  %1194 = vst.msk [vmem:[#allocation2 + $0x10] sm:$0xf] %vm457_vm0, %v1192_v19  ;;  %2373 = vmatpush3.msra.mxu1 %v1090_v36  ;;  %v207_v35 = vadd.s32 32, %v2968_v55  ;;  %v3219_v36 = vmul.u32 2, %v210_v17 }
  0xda   : > { %1189 = vst.msk [vmem:[#allocation2 + $0xc] sm:$0xf] %vm457_vm0, %v2763_v20  ;;  %1179 = vst.msk [vmem:[#allocation2] sm:$0xf] %vm457_vm0, %v2770_v21  ;;  %2374 = vmatprep.subr.mxu1 %v2530_v0 }
  0xdb   : > { %2375 = vmatpush3.msra.mxu1 %v1089_v37  ;;  %v3221_v37 = vmul.u32 2, %v209_v18 }
  0xdc   : > { %v1182_v38 = vpop.permute.xlu1 %1181  ;;  %v1186_v39 = vpop.permute.xlu0 %1185  ;;  %v1213_v41 = vld [vmem:[#allocation2 + $0x20] sm:$0xf]  ;;  %v1212_v42 = vld [vmem:[#allocation2 + $0x18] sm:$0xff]  ;;  %2392 = vmatprep.subr.mxu1 %v2530_v0  ;;  %2377 = vmatmul.mubr.msk.f32.vlgmr.msra.gmra.mxu1 %vm493_vm3, %v2820_v40 }
  0xdd   : > { %1184 = vst.msk [vmem:[#allocation2 + $0x4] sm:$0xf] %vm457_vm0, %v1182_v38  ;;  %1188 = vst.msk [vmem:[#allocation2 + $0x8] sm:$0xf] %vm457_vm0, %v1186_v39  ;;  %2380 = vmatpush3.msk.msra.mxu0 %vm497_vm2, %v1213_v41  ;;  %2402 = vmatprep.mubr.msk.f32.mxu1 %vm2533_vm1, %v2530_v0  ;;  %vm3768_vm1 = vcmp.eq.s32.totalorder %v2974_v58, %v3069_v12  ;;  %v3223_v38 = vmul.u32 2, %v208_v34  ;;  %v3225_v39 = vmul.u32 2, %v207_v35 }
  0xde   : > { %1319 = vst.msk [vmem:[#allocation2 + $0x18] sm:$0xf] %vm457_vm0, %v2777_v22  ;;  %2381 = vmatprep.subr.mxu0 %v2530_v0  ;;  %v3228_v41 = vadd.s32 1, %v3219_v36 }
  0xdf   : > { %2382 = vmatpush3.msra.mxu0 %v1212_v42  ;;  %v3235_v42 = vadd.s32 1, %v3221_v37 }
  0xe0   : > { %v1322_v20 = vpop.permute.xlu1 %1321  ;;  %v1326_v21 = vpop.permute.xlu0 %1325  ;;  %2383 = vmatprep.subr.mxu0 %v2530_v0  ;;  %v1211_v43 = vld [vmem:[#allocation2 + $0x10] sm:$0xff] }
  0xe1   : > { %1324 = vst.msk [vmem:[#allocation2 + $0x1c] sm:$0xf] %vm457_vm0, %v1322_v20  ;;  %1328 = vst.msk [vmem:[#allocation2 + $0x20] sm:$0xf] %vm457_vm0, %v1326_v21  ;;  %2384 = vmatpush3.msra.mxu0 %v1211_v43  ;;  %v3246_v20 = vadd.s32 1, %v3223_v38  ;;  %v3273_v21 = vadd.s32 1, %v3225_v39 }
  0xe2   : > { %2385 = vmatprep.subr.mxu0 %v2530_v0 }
  0xe4   : > { %v1316_v44 = vpop.permute.xlu1 %1315  ;;  %v1312_v22 = vpop.permute.xlu0 %1311  ;;  %v1210_v45 = vld [vmem:[#allocation2 + $0x8] sm:$0xff]  ;;  %v1209_v46 = vld [vmem:[#allocation2] sm:$0xff] }
  0xe5   : > { %1318 = vst.msk [vmem:[#allocation2 + $0x14] sm:$0xf] %vm457_vm0, %v1316_v44  ;;  %1314 = vst.msk [vmem:[#allocation2 + $0x10] sm:$0xf] %vm457_vm0, %v1312_v22  ;;  %2386 = vmatpush3.msra.mxu0 %v1210_v45  ;;  %v206_v44 = vadd.s32 24, %v2968_v55 }
  0xe6   : > { %1309 = vst.msk [vmem:[#allocation2 + $0xc] sm:$0xf] %vm457_vm0, %v2784_v23  ;;  %1299 = vst.msk [vmem:[#allocation2] sm:$0xf] %vm457_vm0, %v2791_v24  ;;  %2387 = vmatprep.subr.mxu0 %v2530_v0 }
  0xe7   : > { %2388 = vmatpush3.msra.mxu0 %v1209_v46  ;;  %v3336_v45 = vmul.u32 2, %v206_v44  ;;  %v205_v46 = vadd.s32 16, %v2968_v55 }
  0xe8   : > { %v1306_v47 = vpop.permute.xlu0 %1305  ;;  %v1333_v48 = vld [vmem:[#allocation2 + $0x20] sm:$0xf]  ;;  %v1302_v49 = vpop.permute.xlu1 %1301  ;;  %v1332_v50 = vld [vmem:[#allocation2 + $0x18] sm:$0xff]  ;;  %2390 = vmatmul.mubr.msk.f32.vlgmr.msra.gmra.mxu0 %vm493_vm3, %v2820_v40  ;;  %2106 = vmatprep.subr.msk.mxu0 %vm381_vm9, %v2534_v2 }
  0xe9   : > { %1308 = vst.msk [vmem:[#allocation2 + $0x8] sm:$0xf] %vm457_vm0, %v1306_v47  ;;  %2393 = vmatpush3.msk.msra.mxu1 %vm497_vm2, %v1333_v48  ;;  %1304 = vst.msk [vmem:[#allocation2 + $0x4] sm:$0xf] %vm457_vm0, %v1302_v49  ;;  %1498 = vmatprep.mubr.f32.mxu0 %v2530_v0  ;;  %vm3771_vm2 = vcmp.eq.s32.totalorder %v2970_v56, %v3069_v12  ;;  %v3346_v47 = vadd.s32 1, %v3336_v45  ;;  %v3348_v48 = vmul.u32 2, %v205_v46 }
  0xea   : > { %2394 = vmatprep.subr.mxu1 %v2530_v0  ;;  %2107 = vmatpush1.msk.msra.mxu0 %vm380_vm10, %v2534_v2  ;;  %v204_v49 = vadd.s32 8, %v2968_v55 }
  0xeb   : > { %2395 = vmatpush3.msra.mxu1 %v1332_v50  ;;  %2108 = vmatprep.subr.msk.mxu0 %vm379_vm11, %v2534_v2  ;;  %v3354_v50 = vadd.s32 1, %v3348_v48 }
  0xec   : > { %2396 = vmatprep.subr.mxu1 %v2530_v0  ;;  %v1331_v23 = vld [vmem:[#allocation2 + $0x10] sm:$0xff]  ;;  %2109 = vmatpush1.msk.msra.mxu0 %vm378_vm12, %v2534_v2 }
  0xed   : > { %2397 = vmatpush3.msra.mxu1 %v1331_v23  ;;  %v3356_v23 = vmul.u32 2, %v204_v49 }
  0xee   : > { %2398 = vmatprep.subr.mxu1 %v2530_v0 }
  0xf0   : > { %v1330_v24 = vld [vmem:[#allocation2 + $0x8] sm:$0xff]  ;;  %v1329_v51 = vld [vmem:[#allocation2] sm:$0xff] }
  0xf1   : > { %2399 = vmatpush3.msra.mxu1 %v1330_v24 }
  0xf2   : > { %2400 = vmatprep.subr.mxu1 %v2530_v0 }
  0xf3   : > { %2401 = vmatpush3.msra.mxu1 %v1329_v51  ;;  %v3381_v51 = vadd.s32 1, %v3356_v23 }
  0xf4   : > { %2403 = vmatmul.mubr.msk.f32.vlgmr.msra.gmra.mxu1 %vm493_vm3, %v2820_v40  ;;  %v216_v40 = vadd.s32 104, %v2968_v55  ;;  %2138 = vmatprep.subr.msk.mxu1 %vm269_vm5, %v2534_v2  ;;  %vm3772_vm3 = vcmp.eq.s32.totalorder %v2974_v58, %v3071_v13 }
  0xf5   : > { %1569 = vmatprep.mubr.f32.mxu1 %v2530_v0  ;;  %2139 = vmatpush1.msk.msra.mxu1 %vm268_vm6, %v2534_v2 }
  0xf6   : > { %v2982_v62 = vmul.u32 2, %v216_v40  ;;  %2140 = vmatprep.subr.msk.mxu1 %vm267_vm7, %v2534_v2 }
  0xf7   : > { %2141 = vmatpush1.msk.msra.mxu1 %vm266_vm8, %v2534_v2 }
  0xf8   : > { %v3003_v3 = vadd.s32 1, %v2982_v62  ;;  %vm3769_vm13 = vcmp.eq.s32.totalorder %v2974_v58, %v2982_v62  ;;  %vm3766_vm15 = vcmp.eq.s32.totalorder %v2970_v56, %v2982_v62 }
  0xf9   : > { %2142 = vmatprep.subr.msk.mxu1 %vm3769_vm13, %v2534_v2  ;;  %vm3777_vm13 = vcmp.eq.s32.totalorder %v2974_v58, %v3073_v25 }
  0xfa   : > { %vm3770_vm14 = vcmp.eq.s32.totalorder %v2974_v58, %v3003_v3  ;;  %2143 = vmatpush1.msk.msra.mxu1 %vm3766_vm15, %v2534_v2  ;;  %vm3767_vm0 = vcmp.eq.s32.totalorder %v2970_v56, %v3003_v3  ;;  %vm3773_vm15 = vcmp.eq.s32.totalorder %v2974_v58, %v3079_v26 }
  0xfb   : > { %2110 = vmatprep.subr.msk.mxu0 %vm3770_vm14, %v2534_v2  ;;  %2144 = vmatprep.subr.msk.mxu1 %vm3768_vm1, %v2534_v2  ;;  %vm3776_vm1 = vcmp.eq.s32.totalorder %v2974_v58, %v3086_v27  ;;  %vm3790_vm14 = vcmp.eq.s32.totalorder %v2970_v56, %v3086_v27 }
  0xfc   : > { %2111 = vmatpush1.msk.msra.mxu0 %vm3767_vm0, %v2534_v2  ;;  %vm3775_vm0 = vcmp.eq.s32.totalorder %v2970_v56, %v3079_v26  ;;  %2145 = vmatpush1.msk.msra.mxu1 %vm3771_vm2, %v2534_v2  ;;  %vm3778_vm2 = vcmp.eq.s32.totalorder %v2970_v56, %v3073_v25 }
  0xfd   : > { %2112 = vmatprep.subr.msk.mxu0 %vm3773_vm15, %v2534_v2  ;;  %2146 = vmatprep.subr.msk.mxu1 %vm3772_vm3, %v2534_v2  ;;  %vm3780_vm3 = vcmp.eq.s32.totalorder %v2974_v58, %v3097_v16  ;;  %vm3779_vm15 = vcmp.eq.s32.totalorder %v2974_v58, %v3075_v14 }
  0xfe   : > { %2113 = vmatpush1.msk.msra.mxu0 %vm3775_vm0, %v2534_v2  ;;  %vm3781_vm0 = vcmp.eq.s32.totalorder %v2970_v56, %v3075_v14 }
  0xff   : > { %2114 = vmatprep.subr.msk.mxu0 %vm3776_vm1, %v2534_v2  ;;  %vm3787_vm1 = vcmp.eq.s32.totalorder %v2974_v58, %v3124_v28 }
 0x100   : > { %2115 = vmatpush1.msk.msra.mxu0 %vm3790_vm14, %v2534_v2  ;;  %vm362_vm14 = vcmp.eq.s32.totalorder %v2970_v56, %v3235_v42 }
 0x101   : > { %2116 = vmatprep.subr.msk.mxu0 %vm3780_vm3, %v2534_v2  ;;  %vm3782_vm3 = vcmp.eq.s32.totalorder %v2970_v56, %v3138_v29 }
 0x160   : > { %v567_v52 = vpop.f32.mrf.mxu0 }
 0x161   : > { %572 = vst.msk [vmem:[#allocation3] sm:$0xff] %vm571_vm4, %v567_v52  ;;  %vm3774_vm4 = vcmp.eq.s32.totalorder %v2970_v56, %v3071_v13  ;;  %v3392_v52 = vmul.u32 2, %v2968_v55 }
 0x162   : > { %v2313_v54 = vpop.f32.mrf.mxu0  ;;  %2147 = vmatpush1.msk.msra.mxu1 %vm3774_vm4, %v2534_v2  ;;  %vm3789_vm4 = vcmp.eq.s32.totalorder %v2970_v56, %v3097_v16 }
 0x163   : > { %2148 = vmatprep.subr.msk.mxu1 %vm3777_vm13, %v2534_v2  ;;  %vm3786_vm13 = vcmp.eq.s32.totalorder %v2970_v56, %v3124_v28  ;;  %2117 = vmatpush1.msk.msra.mxu0 %vm3789_vm4, %v2534_v2  ;;  %vm3797_vm4 = vcmp.eq.s32.totalorder %v2974_v58, %v3223_v38  ;;  %v3417_v54 = vadd.s32 1, %v3392_v52 }
 0x164   : > { %2149 = vmatpush1.msk.msra.mxu1 %vm3778_vm2, %v2534_v2  ;;  %vm3784_vm2 = vcmp.eq.s32.totalorder %v2974_v58, %v3138_v29  ;;  %2118 = vmatprep.subr.msk.mxu0 %vm3787_vm1, %v2534_v2  ;;  %vm3794_vm1 = vcmp.eq.s32.totalorder %v2970_v56, %v3228_v41 }
 0x165   : > { %2150 = vmatprep.subr.msk.mxu1 %vm3779_vm15, %v2534_v2  ;;  %vm3785_vm15 = vcmp.eq.s32.totalorder %v2974_v58, %v3163_v30  ;;  %2119 = vmatpush1.msk.msra.mxu0 %vm3786_vm13, %v2534_v2  ;;  %vm3793_vm13 = vcmp.eq.s32.totalorder %v2974_v58, %v3228_v41 }
 0x166   : > { %2151 = vmatpush1.msk.msra.mxu1 %vm3781_vm0, %v2534_v2  ;;  %2120 = vmatprep.subr.msk.mxu0 %vm3785_vm15, %v2534_v2  ;;  %vm3783_vm0 = vcmp.eq.s32.totalorder %v2970_v56, %v3163_v30  ;;  %vm3795_vm15 = vcmp.eq.s32.totalorder %v2970_v56, %v3221_v37 }
 0x167   : > { %2152 = vmatprep.subr.msk.mxu1 %vm3784_vm2, %v2534_v2  ;;  %2121 = vmatpush1.msk.msra.mxu0 %vm3783_vm0, %v2534_v2  ;;  %vm3791_vm0 = vcmp.eq.s32.totalorder %v2970_v56, %v3219_v36  ;;  %vm3792_vm2 = vcmp.eq.s32.totalorder %v2974_v58, %v3221_v37 }
 0x168   : > { %2153 = vmatpush1.msk.msra.mxu1 %vm3782_vm3, %v2534_v2  ;;  %vm3788_vm3 = vcmp.eq.s32.totalorder %v2974_v58, %v3219_v36  ;;  %2122 = vmatprep.subr.msk.mxu0 %vm3793_vm13, %v2534_v2  ;;  %vm3801_vm13 = vcmp.eq.s32.totalorder %v2974_v58, %v3225_v39 }
 0x169   : > { %2154 = vmatprep.subr.msk.mxu1 %vm3788_vm3, %v2534_v2  ;;  %vm3796_vm3 = vcmp.eq.s32.totalorder %v2974_v58, %v3235_v42  ;;  %2123 = vmatpush1.msk.msra.mxu0 %vm3794_vm1, %v2534_v2  ;;  %vm3808_vm1 = vcmp.eq.s32.totalorder %v2970_v56, %v3246_v20 }
 0x16a   : > { %2155 = vmatpush1.msk.msra.mxu1 %vm3791_vm0, %v2534_v2  ;;  %vm3804_vm0 = vcmp.eq.s32.totalorder %v2970_v56, %v3223_v38  ;;  %2124 = vmatprep.subr.msk.mxu0 %vm3796_vm3, %v2534_v2  ;;  %vm3803_vm3 = vcmp.eq.s32.totalorder %v2974_v58, %v3273_v21 }
 0x16b   : > { %2156 = vmatprep.subr.msk.mxu1 %vm3792_vm2, %v2534_v2  ;;  %vm3809_vm2 = vcmp.eq.s32.totalorder %v2974_v58, %v3246_v20  ;;  %2125 = vmatpush1.msk.msra.mxu0 %vm362_vm14, %v2534_v2 }
 0x16c   : > { %2157 = vmatpush1.msk.msra.mxu1 %vm3795_vm15, %v2534_v2  ;;  %vm3798_vm15 = vcmp.eq.s32.totalorder %v2970_v56, %v3225_v39  ;;  %2126 = vmatprep.subr.msk.mxu0 %vm3809_vm2, %v2534_v2  ;;  %vm3818_vm2 = vcmp.eq.s32.totalorder %v2970_v56, %v3356_v23 }
 0x16d   : > { %v683_v4 = vpop.f32.mrf.mxu1  ;;  %2158 = vmatprep.subr.msk.mxu1 %vm3797_vm4, %v2534_v2  ;;  %vm3799_vm4 = vcmp.eq.s32.totalorder %v2970_v56, %v3273_v21  ;;  %2127 = vmatpush1.msk.msra.mxu0 %vm3808_vm1, %v2534_v2  ;;  %vm3819_vm1 = vcmp.eq.s32.totalorder %v2970_v56, %v3381_v51 }
 0x16e   : > { %688 = vrot.lane.b32.xlu0 %v683_v4, %s2535_s21  ;;  %2159 = vmatpush1.msk.msra.mxu1 %vm3804_vm0, %v2534_v2  ;;  %vm3810_vm0 = vcmp.eq.s32.totalorder %v2970_v56, %v3354_v50  ;;  %s176_s21 = scalar_lea.vmem [#allocation4], %s1979_s11 }
 0x16f   : > { %v2326_v5 = vpop.f32.mrf.mxu1  ;;  %2160 = vmatprep.subr.msk.mxu1 %vm3801_vm13, %v2534_v2  ;;  %2128 = vmatprep.subr.msk.mxu0 %vm3803_vm3, %v2534_v2  ;;  %vm3805_vm13 = vcmp.eq.s32.totalorder %v2970_v56, %v3336_v45  ;;  %vm3813_vm3 = vcmp.eq.s32.totalorder %v2974_v58, %v3348_v48 }
 0x170   : > { %2161 = vmatpush1.msk.msra.mxu1 %vm3798_vm15, %v2534_v2  ;;  %2129 = vmatpush1.msk.msra.mxu0 %vm3799_vm4, %v2534_v2  ;;  %vm3800_vm15 = vcmp.eq.s32.totalorder %v2974_v58, %v3336_v45  ;;  %vm3802_vm4 = vcmp.eq.s32.totalorder %v2974_v58, %v3346_v47 }
 0x171   : > { %2162 = vmatprep.subr.msk.mxu1 %vm3800_vm15, %v2534_v2  ;;  %2130 = vmatprep.subr.msk.mxu0 %vm3802_vm4, %v2534_v2  ;;  %vm3806_vm15 = vcmp.eq.s32.totalorder %v2970_v56, %v3346_v47  ;;  %vm3807_vm4 = vcmp.eq.s32.totalorder %v2974_v58, %v3354_v50 }
 0x172   : > { %2131 = vmatpush1.msk.msra.mxu0 %vm3806_vm15, %v2534_v2  ;;  %2163 = vmatpush1.msk.msra.mxu1 %vm3805_vm13, %v2534_v2  ;;  %vm3811_vm13 = vcmp.eq.s32.totalorder %v2970_v56, %v3348_v48  ;;  %vm241_vm15 = vcmp.eq.s32.totalorder %v2974_v58, %v3356_v23 }
 0x173   : > { %2132 = vmatprep.subr.msk.mxu0 %vm3807_vm4, %v2534_v2  ;;  %2164 = vmatprep.subr.msk.mxu1 %vm3813_vm3, %v2534_v2  ;;  %vm3812_vm4 = vcmp.eq.s32.totalorder %v2974_v58, %v3381_v51  ;;  %vm3814_vm3 = vcmp.eq.s32.totalorder %v2970_v56, %v3417_v54 }
 0x174   : > { %2133 = vmatpush1.msk.msra.mxu0 %vm3810_vm0, %v2534_v2  ;;  %2165 = vmatpush1.msk.msra.mxu1 %vm3811_vm13, %v2534_v2  ;;  %vm3815_vm0 = vcmp.eq.s32.totalorder %v2974_v58, %v3392_v52  ;;  %vm3816_vm13 = vcmp.eq.s32.totalorder %v2970_v56, %v3392_v52 }
 0x175   : > { %2134 = vmatprep.subr.msk.mxu0 %vm3812_vm4, %v2534_v2  ;;  %2166 = vmatprep.subr.msk.mxu1 %vm241_vm15, %v2534_v2  ;;  %vm3817_vm4 = vcmp.eq.s32.totalorder %v2974_v58, %v3417_v54 }
 0x176   : > { %2135 = vmatpush1.msk.msra.mxu0 %vm3819_vm1, %v2534_v2  ;;  %2167 = vmatpush1.msk.msra.mxu1 %vm3818_vm2, %v2534_v2  ;;  %vm1411_vm2 = vcmask 1048448   ;;  %vm1414_vm1 = vcmask 1041408  }
 0x177   : > { %2136 = vmatprep.subr.msk.mxu0 %vm3817_vm4, %v2534_v2  ;;  %2168 = vmatprep.subr.msk.mxu1 %vm3815_vm0, %v2534_v2  ;;  %vm811_vm0 = vcmask 392448   ;;  %vm1051_vm4 = vcmask 654848  }
 0x178   : > { %v803_v6 = vpop.f32.mrf.mxu0  ;;  %2137 = vmatpush1.msk.msra.mxu0 %vm3814_vm3, %v2534_v2  ;;  %2169 = vmatpush1.msk.msra.mxu1 %vm3816_vm13, %v2534_v2  ;;  %vm691_vm3 = vcmask 261248   ;;  %vm931_vm13 = vcmask 523648  }
 0x179   : > { %808 = vrot.lane.b32.xlu1 %v803_v6, %s2536_s22  ;;  %2171 = vmatprep.subr.msk.mxu0 %vm381_vm9, %v2534_v2  ;;  %vm1171_vm9 = vcmask 786048   ;;  %s2238_s22 = sshll.u32 (%p2608_p5), %s2516_s15, 2 }
 0x17a   : > { %v2339_v11 = vpop.f32.mrf.mxu0  ;;  %2203 = vmatprep.subr.msk.mxu1 %vm269_vm5, %v2534_v2  ;;  %vm1291_vm5 = vcmask 917248  }
 0x184   : > { %v923_v31 = vpop.f32.mrf.mxu1 }
 0x185   : > { %928 = vrot.lane.b32.xlu0 %v923_v31, %s2537_s24  ;;  %s1784_s24 = sadd.s32 (%p2608_p5), %s2238_s22, %s2237_s12 }
 0x186   : > { %v2352_v32 = vpop.f32.mrf.mxu1 }
 0x190   : > { %v1043_v33 = vpop.f32.mrf.mxu0 }
 0x191   : > { %1048 = vrot.lane.b32.xlu1 %v1043_v33, %s2538_s25  ;;  %s2239_s25 = sshll.u32 (%p2608_p5), %s1784_s24, 1 }
 0x192   : > { %v2365_v19 = vpop.f32.mrf.mxu0 }
 0x19c   : > { %v1163_v43 = vpop.f32.mrf.mxu1 }
 0x19d   : > { %1168 = vrot.lane.b32.xlu0 %v1163_v43, %s2539_s26 }
 0x19e   : > { %v2378_v22 = vpop.f32.mrf.mxu1 }
 0x1a8   : > { %v1283_v24 = vpop.f32.mrf.mxu0 }
 0x1a9   : > { %1288 = vrot.lane.b32.xlu1 %v1283_v24, %s2540_s29 }
 0x1aa   : > { %v2391_v53 = vpop.f32.mrf.mxu0 }
 0x1b4   : > { %v1403_v55 = vpop.f32.mrf.mxu1 }
 0x1b5   : > { %1408 = vrot.lane.b32.xlu0 %v1403_v55, %s2541_s30  ;;  %s1786_s30 = scalar_lea.vmem (%p2608_p5), %s3764_s2, %s2239_s25 }
 0x1b6   : > { %v2404_v57 = vpop.f32.mrf.mxu1 }
 0x1e0   : > { %v689_v59 = vpop.permute.xlu0 %688 }
 0x1e1   : > { %692 = vst.msk [vmem:[#allocation3] sm:$0xff] %vm691_vm3, %v689_v59  ;;  %vm3830_vm3 = vcmp.eq.s32.totalorder %v2974_v58, %v3071_v13 }
 0x1eb   : > { %v809_v40 = vpop.permute.xlu1 %808 }
 0x1ec   : > { %812 = vst.msk [vmem:[#allocation3] sm:$0xff] %vm811_vm0, %v809_v40  ;;  %vm3828_vm0 = vcmp.eq.s32.totalorder %v2970_v56, %v3069_v12 }
 0x1f7   : > { %v929_v4 = vpop.permute.xlu0 %928 }
 0x1f8   : > { %932 = vst.msk [vmem:[#allocation3] sm:$0xff] %vm931_vm13, %v929_v4  ;;  %vm3827_vm13 = vcmp.eq.s32.totalorder %v2970_v56, %v3079_v26 }
 0x203   : > { %v1049_v5 = vpop.permute.xlu1 %1048 }
 0x204   : > { %1052 = vst.msk [vmem:[#allocation3] sm:$0xff] %vm1051_vm4, %v1049_v5  ;;  %vm3831_vm4 = vcmp.eq.s32.totalorder %v2970_v56, %v3086_v27 }
 0x20f   : > { %v1169_v6 = vpop.permute.xlu0 %1168 }
 0x210   : > { %1172 = vst.msk [vmem:[#allocation3] sm:$0xff] %vm1171_vm9, %v1169_v6  ;;  %vm3832_vm9 = vcmp.eq.s32.totalorder %v2970_v56, %v3071_v13 }
 0x21b   : > { %v1289_v7 = vpop.permute.xlu1 %1288 }
 0x21c   : > { %1292 = vst.msk [vmem:[#allocation3] sm:$0xff] %vm1291_vm5, %v1289_v7  ;;  %vm3833_vm5 = vcmp.eq.s32.totalorder %v2974_v58, %v3097_v16 }
 0x227   : > { %v1409_v8 = vpop.permute.xlu0 %1408 }
 0x228   : > { %1412 = vst.msk [vmem:[#allocation3] sm:$0xff] %vm1411_vm2, %v1409_v8  ;;  %vm3829_vm2 = vcmp.eq.s32.totalorder %v2974_v58, %v3086_v27 }
 0x22f   : > { %v1424_v9 = vld [vmem:[#allocation3 + $0x2] sm:$0x3]  ;;  %v1413_v10 = vld [vmem:[#allocation3] sm:$0x3]  ;;  %v3481_v31 = vld [vmem:[#allocation3 + $0x4] sm:$0x3] }
 0x230   : > { %1499 = vmatmul.mubr.f32.vlgmr.msra.gmra.mxu0 %v1424_v9  ;;  %1570 = vmatmul.mubr.f32.vlgmr.msra.gmra.mxu1 %v1413_v10  ;;  %v1425_v11 = vsel %vm1414_vm1, %v1424_v9, 0.0  ;;  %v1415_v15 = vsel %vm1414_vm1, %v1413_v10, 0.0  ;;  %v1429_v63 = vmul.f32 %v1424_v9, %v1424_v9  ;;  %v1589_v60 = vsel %vm1414_vm1, %v3481_v31, 0.0 }
 0x231   : > { %2172 = vmatpush1.msk.msra.mxu0 %vm380_vm10, %v2534_v2  ;;  %2204 = vmatpush1.msk.msra.mxu1 %vm268_vm6, %v2534_v2  ;;  %vm3821_vm6 = vcmp.eq.s32.totalorder %v2974_v58, %v3003_v3  ;;  %vm3823_vm10 = vcmp.eq.s32.totalorder %v2970_v56, %v3003_v3  ;;  %v1419_v1 = vmul.f32 %v1413_v10, %v1413_v10  ;;  %v1598_v3 = vld [vmem:[#allocation3 + $0x6] sm:$0x3] }
 0x232   : > { %2173 = vmatprep.subr.msk.mxu0 %vm379_vm11, %v2534_v2  ;;  %1426 = vadd.xlane.f32.xlu0 %v1425_v11  ;;  %vm3824_vm11 = vcmp.eq.s32.totalorder %v2970_v56, %v2982_v62  ;;  %v1430_v61 = vsel %vm1414_vm1, %v1429_v63, 0.0  ;;  %v1603_v27 = vmul.f32 %v1598_v3, %v1598_v3  ;;  %v1599_v13 = vsel %vm1414_vm1, %v1598_v3, 0.0 }
 0x233   : > { %2205 = vmatprep.subr.msk.mxu1 %vm267_vm7, %v2534_v2  ;;  %1416 = vadd.xlane.f32.xlu1 %v1415_v15  ;;  %vm3822_vm7 = vcmp.eq.s32.totalorder %v2974_v58, %v2982_v62  ;;  %v1593_v62 = vmul.f32 %v3481_v31, %v3481_v31 }
 0x234   : > { %2174 = vmatpush1.msk.msra.mxu0 %vm378_vm12, %v2534_v2  ;;  %2206 = vmatpush1.msk.msra.mxu1 %vm266_vm8, %v2534_v2  ;;  %vm3825_vm8 = vcmp.eq.s32.totalorder %v2974_v58, %v3079_v26  ;;  %vm3826_vm12 = vcmp.eq.s32.totalorder %v2974_v58, %v3069_v12  ;;  %v1420_v12 = vsel %vm1414_vm1, %v1419_v1, 0.0 }
 0x235   : > { %2175 = vmatprep.subr.msk.mxu0 %vm3821_vm6, %v2534_v2  ;;  %2207 = vmatprep.subr.msk.mxu1 %vm3822_vm7, %v2534_v2  ;;  %vm3834_vm6 = vcmp.eq.s32.totalorder %v2974_v58, %v3073_v25  ;;  %v1594_v26 = vsel %vm1414_vm1, %v1593_v62, 0.0  ;;  %vm3835_vm7 = vcmp.eq.s32.totalorder %v2970_v56, %v3097_v16 }
 0x236   : > { %2176 = vmatpush1.msk.msra.mxu0 %vm3823_vm10, %v2534_v2  ;;  %2208 = vmatpush1.msk.msra.mxu1 %vm3824_vm11, %v2534_v2  ;;  %vm3836_vm10 = vcmp.eq.s32.totalorder %v2970_v56, %v3073_v25  ;;  %vm3837_vm11 = vcmp.eq.s32.totalorder %v2974_v58, %v3124_v28  ;;  %v1604_v25 = vsel %vm1414_vm1, %v1603_v27, 0.0  ;;  %vm3846_vm1 = vcmp.eq.s32.totalorder %v2974_v58, %v3219_v36 }
 0x237   : > { %2177 = vmatprep.subr.msk.mxu0 %vm3825_vm8, %v2534_v2  ;;  %1590 = vadd.xlane.f32.xlu0 %v1589_v60  ;;  %vm3838_vm8 = vcmp.eq.s32.totalorder %v2974_v58, %v3075_v14 }
 0x238   : > { %2209 = vmatprep.subr.msk.mxu1 %vm3826_vm12, %v2534_v2  ;;  %1431 = vadd.xlane.f32.xlu1 %v1430_v61  ;;  %vm3839_vm12 = vcmp.eq.s32.totalorder %v2970_v56, %v3124_v28 }
 0x239   : > { %2178 = vmatpush1.msk.msra.mxu0 %vm3827_vm13, %v2534_v2  ;;  %2210 = vmatpush1.msk.msra.mxu1 %vm3828_vm0, %v2534_v2  ;;  %vm3840_vm13 = vcmp.eq.s32.totalorder %v2970_v56, %v3075_v14  ;;  %vm3841_vm0 = vcmp.eq.s32.totalorder %v2974_v58, %v3163_v30 }
 0x23a   : > { %2179 = vmatprep.subr.msk.mxu0 %vm3829_vm2, %v2534_v2  ;;  %2211 = vmatprep.subr.msk.mxu1 %vm3830_vm3, %v2534_v2  ;;  %vm3842_vm2 = vcmp.eq.s32.totalorder %v2974_v58, %v3138_v29  ;;  %vm3843_vm3 = vcmp.eq.s32.totalorder %v2970_v56, %v3163_v30 }
 0x23b   : > { %2180 = vmatpush1.msk.msra.mxu0 %vm3831_vm4, %v2534_v2  ;;  %2212 = vmatpush1.msk.msra.mxu1 %vm3832_vm9, %v2534_v2  ;;  %vm3844_vm4 = vcmp.eq.s32.totalorder %v2970_v56, %v3138_v29  ;;  %vm3845_vm9 = vcmp.eq.s32.totalorder %v2974_v58, %v3228_v41 }
 0x23c   : > { %2181 = vmatprep.subr.msk.mxu0 %vm3833_vm5, %v2534_v2  ;;  %2213 = vmatprep.subr.msk.mxu1 %vm3834_vm6, %v2534_v2  ;;  %vm3847_vm5 = vcmp.eq.s32.totalorder %v2970_v56, %v3228_v41  ;;  %vm3848_vm6 = vcmp.eq.s32.totalorder %v2970_v56, %v3219_v36 }
 0x23d   : > { %1421 = vadd.xlane.f32.xlu0 %v1420_v12  ;;  %1595 = vadd.xlane.f32.xlu1 %v1594_v26 }
 0x23e   : > { %2182 = vmatpush1.msk.msra.mxu0 %vm3835_vm7, %v2534_v2  ;;  %2214 = vmatpush1.msk.msra.mxu1 %vm3836_vm10, %v2534_v2  ;;  %vm3849_vm7 = vcmp.eq.s32.totalorder %v2974_v58, %v3235_v42  ;;  %vm3850_vm10 = vcmp.eq.s32.totalorder %v2974_v58, %v3221_v37 }
 0x23f   : > { %2183 = vmatprep.subr.msk.mxu0 %vm3837_vm11, %v2534_v2  ;;  %2215 = vmatprep.subr.msk.mxu1 %vm3838_vm8, %v2534_v2  ;;  %vm3851_vm11 = vcmp.eq.s32.totalorder %v2970_v56, %v3221_v37  ;;  %vm3852_vm8 = vcmp.eq.s32.totalorder %v2974_v58, %v3246_v20 }
 0x240   : > { %2184 = vmatpush1.msk.msra.mxu0 %vm3839_vm12, %v2534_v2  ;;  %2216 = vmatpush1.msk.msra.mxu1 %vm3840_vm13, %v2534_v2  ;;  %vm3853_vm12 = vcmp.eq.s32.totalorder %v2974_v58, %v3223_v38  ;;  %vm3854_vm13 = vcmp.eq.s32.totalorder %v2970_v56, %v3246_v20 }
 0x241   : > { %2185 = vmatprep.subr.msk.mxu0 %vm3841_vm0, %v2534_v2  ;;  %2217 = vmatprep.subr.msk.mxu1 %vm3842_vm2, %v2534_v2  ;;  %vm3856_vm0 = vcmp.eq.s32.totalorder %v2974_v58, %v3273_v21  ;;  %vm3857_vm2 = vcmp.eq.s32.totalorder %v2974_v58, %v3225_v39 }
 0x242   : > { %1600 = vadd.xlane.f32.xlu0 %v1599_v13  ;;  %1605 = vadd.xlane.f32.xlu1 %v1604_v25 }
 0x243   : > { %2186 = vmatpush1.msk.msra.mxu0 %vm3843_vm3, %v2534_v2  ;;  %2218 = vmatpush1.msk.msra.mxu1 %vm3844_vm4, %v2534_v2  ;;  %vm3858_vm3 = vcmp.eq.s32.totalorder %v2970_v56, %v3273_v21  ;;  %vm3859_vm4 = vcmp.eq.s32.totalorder %v2970_v56, %v3225_v39 }
 0x244   : > { %2187 = vmatprep.subr.msk.mxu0 %vm3845_vm9, %v2534_v2  ;;  %2219 = vmatprep.subr.msk.mxu1 %vm3846_vm1, %v2534_v2  ;;  %vm3860_vm9 = vcmp.eq.s32.totalorder %v2974_v58, %v3346_v47  ;;  %vm3861_vm1 = vcmp.eq.s32.totalorder %v2974_v58, %v3336_v45 }
 0x245   : > { %2188 = vmatpush1.msk.msra.mxu0 %vm3847_vm5, %v2534_v2  ;;  %2220 = vmatpush1.msk.msra.mxu1 %vm3848_vm6, %v2534_v2  ;;  %vm3862_vm5 = vcmp.eq.s32.totalorder %v2970_v56, %v3346_v47  ;;  %vm3863_vm6 = vcmp.eq.s32.totalorder %v2970_v56, %v3336_v45 }
 0x246   : > { %2189 = vmatprep.subr.msk.mxu0 %vm3849_vm7, %v2534_v2  ;;  %2221 = vmatprep.subr.msk.mxu1 %vm3850_vm10, %v2534_v2  ;;  %vm3864_vm7 = vcmp.eq.s32.totalorder %v2974_v58, %v3354_v50  ;;  %vm3865_vm10 = vcmp.eq.s32.totalorder %v2974_v58, %v3348_v48 }
 0x247   : > { %2190 = vmatpush1.msk.msra.mxu0 %vm362_vm14, %v2534_v2  ;;  %2222 = vmatpush1.msk.msra.mxu1 %vm3851_vm11, %v2534_v2  ;;  %vm3855_vm14 = vcmp.eq.s32.totalorder %v2970_v56, %v3223_v38  ;;  %vm3866_vm11 = vcmp.eq.s32.totalorder %v2970_v56, %v3354_v50 }
 0x248   : > { %2191 = vmatprep.subr.msk.mxu0 %vm3852_vm8, %v2534_v2  ;;  %2223 = vmatprep.subr.msk.mxu1 %vm3853_vm12, %v2534_v2  ;;  %vm3867_vm8 = vcmp.eq.s32.totalorder %v2970_v56, %v3348_v48  ;;  %vm3868_vm12 = vcmp.eq.s32.totalorder %v2974_v58, %v3381_v51 }
 0x249   : > { %2192 = vmatpush1.msk.msra.mxu0 %vm3854_vm13, %v2534_v2  ;;  %2224 = vmatpush1.msk.msra.mxu1 %vm3855_vm14, %v2534_v2  ;;  %vm3869_vm13 = vcmp.eq.s32.totalorder %v2970_v56, %v3381_v51  ;;  %vm3870_vm14 = vcmp.eq.s32.totalorder %v2970_v56, %v3356_v23 }
 0x24a   : > { %2193 = vmatprep.subr.msk.mxu0 %vm3856_vm0, %v2534_v2  ;;  %2225 = vmatprep.subr.msk.mxu1 %vm3857_vm2, %v2534_v2  ;;  %vm3871_vm0 = vcmp.eq.s32.totalorder %v2974_v58, %v3417_v54  ;;  %vm3873_vm2 = vcmp.eq.s32.totalorder %v2970_v56, %v3417_v54 }
 0x24b   : > { %2194 = vmatpush1.msk.msra.mxu0 %vm3858_vm3, %v2534_v2  ;;  %2226 = vmatpush1.msk.msra.mxu1 %vm3859_vm4, %v2534_v2  ;;  %vm3874_vm3 = vcmp.eq.s32.totalorder %v2970_v56, %v3392_v52  ;;  %vm1763_vm4 = vcmask 7168  }
 0x24c   : > { %2195 = vmatprep.subr.msk.mxu0 %vm3860_vm9, %v2534_v2  ;;  %2227 = vmatprep.subr.msk.mxu1 %vm3861_vm1, %v2534_v2  ;;  %vm1765_vm9 = vcmask 9216  }
 0x24d   : > { %2196 = vmatpush1.msk.msra.mxu0 %vm3862_vm5, %v2534_v2  ;;  %2228 = vmatpush1.msk.msra.mxu1 %vm3863_vm6, %v2534_v2 }
 0x24e   : > { %2197 = vmatprep.subr.msk.mxu0 %vm3864_vm7, %v2534_v2  ;;  %2229 = vmatprep.subr.msk.mxu1 %vm3865_vm10, %v2534_v2 }
 0x24f   : > { %2198 = vmatpush1.msk.msra.mxu0 %vm3866_vm11, %v2534_v2  ;;  %2230 = vmatpush1.msk.msra.mxu1 %vm3867_vm8, %v2534_v2 }
 0x250   : > { %2199 = vmatprep.subr.msk.mxu0 %vm3868_vm12, %v2534_v2  ;;  %2231 = vmatprep.subr.msk.mxu1 %vm241_vm15, %v2534_v2  ;;  %vm3872_vm15 = vcmp.eq.s32.totalorder %v2974_v58, %v3392_v52 }
 0x251   : > { %2200 = vmatpush1.msk.msra.mxu0 %vm3869_vm13, %v2534_v2  ;;  %2232 = vmatpush1.msk.msra.mxu1 %vm3870_vm14, %v2534_v2 }
 0x252   : > { %2201 = vmatprep.subr.msk.mxu0 %vm3871_vm0, %v2534_v2  ;;  %2233 = vmatprep.subr.msk.mxu1 %vm3872_vm15, %v2534_v2 }
 0x253   : > { %2202 = vmatpush1.msk.msra.mxu0 %vm3873_vm2, %v2534_v2  ;;  %1672 = vmatprep.mubr.f32.mxu0 %v2530_v0 }
 0x254   : > { %2234 = vmatpush1.msk.msra.mxu1 %vm3874_vm3, %v2534_v2  ;;  %1743 = vmatprep.mubr.f32.mxu1 %v2530_v0 }
 0x255   : > { %1673 = vmatmul.mubr.f32.vlgmr.msra.gmra.mxu0 %v1598_v3  ;;  %1744 = vmatmul.mubr.f32.vlgmr.msra.gmra.mxu1 %v3481_v31 }
 0x2bb   : > { %v1427_v14 = vpop.xlane.xlu0 %1426 }
 0x2bc   : > { %v1417_v58 = vpop.xlane.xlu1 %1416 }
 0x2bd   : > { %v1428_v33 = vadd.f32 %v1427_v14, %v1417_v58 }
 0x2c0   : > { %v1591_v16 = vpop.xlane.xlu0 %1590 }
 0x2c1   : > { %v1432_v28 = vpop.xlane.xlu1 %1431  ;;  %v1592_v2 = vadd.f32 %v1591_v16, %v1428_v33 }
 0x2c6   : > { %v1422_v29 = vpop.xlane.xlu0 %1421  ;;  %v1596_v30 = vpop.xlane.xlu1 %1595 }
 0x2c7   : > { %v1433_v32 = vadd.f32 %v1432_v28, %v1422_v29 }
 0x2c9   : > { %v1597_v56 = vadd.f32 %v1596_v30, %v1433_v32 }
 0x2cb   : > { %v1601_v0 = vpop.xlane.xlu0 %1600  ;;  %v1606_v17 = vpop.xlane.xlu1 %1605 }
 0x2cc   : > { %v1602_v18 = vadd.f32 %v1601_v0, %v1592_v2  ;;  %v1607_v34 = vadd.f32 %v1606_v17, %v1597_v56 }
 0x2ce   : > { %v1764_v35 = vsel %vm1763_vm4, %v1602_v18, %v1607_v34 }
 0x2cf   : > { %1766 = vst.msk [vmem:[%s199_s10] sm:$0x3] %vm1765_vm9, %v1764_v35 }
 0x2f0   : > { %v1500_v19 = vpop.f32.mrf.mxu0  ;;  %v1571_v36 = vpop.f32.mrf.mxu1 }
 0x2f1   : > { %v1572_v39 = vadd.f32 %v1571_v36, %v1500_v19 }
 0x2f2   : > { %v1502_v37 = vpop.f32.mrf.mxu0  ;;  %v1573_v38 = vpop.f32.mrf.mxu1 }
 0x2f3   : > { %v1574_v41 = vadd.f32 %v1573_v38, %v1502_v37 }
 0x2f5   : > { %v1578_v42 = vcombine.low %v1572_v39, %v1574_v41 }
 0x2f7   : > { %2170 = vst.sshfl [vmem:[%s176_s21] sm:$0x33 pattern:$0x76325410] %v1578_v42 }
 0x2fe   : > { %v1803_v47 = vld [vmem:[%s176_s21] sm:$0xf] (%p2608_p5) }
 0x2ff   : > { %1804 = vst [vmem:[%s1786_s30] sm:$0xf] (%p2608_p5), %v1803_v47 }
 0x315   : > { %v1674_v20 = vpop.f32.mrf.mxu0  ;;  %v1745_v21 = vpop.f32.mrf.mxu1 }
 0x316   : > { %v1746_v22 = vadd.f32 %v1745_v21, %v1674_v20 }
 0x317   : > { %v1676_v43 = vpop.f32.mrf.mxu0  ;;  %v1747_v44 = vpop.f32.mrf.mxu1 }
 0x318   : > { %v1748_v45 = vadd.f32 %v1747_v44, %v1676_v43  ;;  %1781 = sbr.rel (!%p2608_p5) target bundleno = 805 (0x325), region = 32 }
 0x31a   : > { %v1752_v46 = vcombine.low %v1746_v22, %v1748_v45 }
 0x31c   : > { %2252 = vst.sshfl [vmem:[%s176_s21 + $0x4] sm:$0x33 pattern:$0x76325410] %v1752_v46 }
 0x323   : > { %v1805_v48 = vld [vmem:[%s176_s21 + $0x4] sm:$0xf] }
 0x324   : > { %1806 = vst [vmem:[%s1786_s30 + $0x10] sm:$0xf] %v1805_v48 }
 0x325 PF: > { %s14_s18 = sadd.s32 1, %s2528_s18   ;;  %s3875_s12 = smov %s2508_s13 }
 0x326   : > { %p11_p11 = scmp.ge.s32.totalorder %s14_s18, 6   ;;  %s3876_s13 = smov %s2619_s27 }
 0x327   : > { %s3877_s14 = smov %s2520_s16  ;;  %s3878_s15 = smov %s2524_s17 }
 0x328   : > { %s3879_s16 = smov %s3882_s19  ;;  %s3880_s17 = smov %s3886_s20 }
 0x329   :  { %13 = sbr.rel (!%p11_p11) target bundleno = 4 (0x4), region = 122 }

</bundles_post_ra>
